<compile_context>
chip_gen: v7x
topology: tpu7x:2x2x1
jax: 0.10.0
libtpu: 0.0.40
codegen_flags: <defaults>
</compile_context>

<pallas_src>
import functools

import numpy as np

import jax
import jax.numpy as jnp
from jax.experimental import pallas as pl
from jax.experimental.pallas import tpu as pltpu

_VMEM = pl.BlockSpec(memory_space=pltpu.MemorySpace.VMEM)
_PARALLEL = pltpu.CompilerParams(dimension_semantics=("parallel",))
BN_EPS = 1e-5


def _pick_tile_m(M):
    """Tile the lane axis (M = N*H*W) only when large; tiles are x128."""
    if M <= 2048:
        return M
    for t in (2048, 1024, 512, 256, 128):
        if M % t == 0:
            return t
    return M


# ------------------------------ Pallas kernels ------------------------------

def _mm_bn_kernel(x_ref, w_ref, scale_ref, shift_ref, *rest,
                  pre_relu, post_relu, has_add):
    """y = [relu](x) @ W^T fused with BN scale/shift, optional partner add,
    optional trailing ReLU.  x:(K,M)  W:(Cout,K)  out:(Cout,M)."""
    if has_add:
        add_ref, o_ref = rest
    else:
        (o_ref,) = rest
    x = x_ref[...]
    if pre_relu:
        x = jnp.maximum(x, 0.0)
    # bf16 MXU operands, f32 accumulation.
    y = jnp.dot(w_ref[...], x.astype(jnp.bfloat16),
                preferred_element_type=jnp.float32)
    y = y * scale_ref[...] + shift_ref[...]
    if has_add:
        y = y + add_ref[...]
    if post_relu:
        y = jnp.maximum(y, 0.0)
    o_ref[...] = y


def matmul_bn(x_cm, w, scale, shift, *, pre_relu=False, post_relu=False,
              add=None):
    K, M = x_cm.shape
    Cout = w.shape[0]
    tm = _pick_tile_m(M)
    in_specs = [pl.BlockSpec((K, tm), lambda i: (0, i)),
                pl.BlockSpec((Cout, K), lambda i: (0, 0)),
                pl.BlockSpec((Cout, 1), lambda i: (0, 0)),
                pl.BlockSpec((Cout, 1), lambda i: (0, 0))]
    args = [x_cm, w, scale, shift]
    if add is not None:
        in_specs.append(pl.BlockSpec((Cout, tm), lambda i: (0, i)))
        args.append(add)
    return pl.pallas_call(
        functools.partial(_mm_bn_kernel, pre_relu=pre_relu,
                          post_relu=post_relu, has_add=add is not None),
        out_shape=jax.ShapeDtypeStruct((Cout, M), jnp.float32),
        grid=(M // tm,),
        in_specs=in_specs,
        out_specs=pl.BlockSpec((Cout, tm), lambda i: (0, i)),
        compiler_params=_PARALLEL,
    )(*args)


def _maxpool_bn_kernel(xt_ref, scale_ref, shift_ref, *rest, taps, has_add):
    if has_add:
        add_ref, o_ref = rest
    else:
        (o_ref,) = rest
    m = xt_ref[0]
    for t in range(1, taps):
        m = jnp.maximum(m, xt_ref[t])
    y = m * scale_ref[...] + shift_ref[...]
    if has_add:
        y = y + add_ref[...]
    o_ref[...] = y


def maxpool_bn(xt, scale, shift, *, add=None):
    T, C, M = xt.shape
    tm = _pick_tile_m(M)
    in_specs = [pl.BlockSpec((T, C, tm), lambda i: (0, 0, i)),
                pl.BlockSpec((C, 1), lambda i: (0, 0)),
                pl.BlockSpec((C, 1), lambda i: (0, 0))]
    args = [xt, scale, shift]
    if add is not None:
        in_specs.append(pl.BlockSpec((C, tm), lambda i: (0, i)))
        args.append(add)
    return pl.pallas_call(
        functools.partial(_maxpool_bn_kernel, taps=T, has_add=add is not None),
        out_shape=jax.ShapeDtypeStruct((C, M), jnp.float32),
        grid=(M // tm,),
        in_specs=in_specs,
        out_specs=pl.BlockSpec((C, tm), lambda i: (0, i)),
        compiler_params=_PARALLEL,
    )(*args)


def _avgpool_bn_kernel(xt_ref, inv_ref, scale_ref, shift_ref, *rest,
                       taps, has_add):
    if has_add:
        add_ref, o_ref = rest
    else:
        (o_ref,) = rest
    acc = xt_ref[0]
    for t in range(1, taps):
        acc = acc + xt_ref[t]
    y = (acc * inv_ref[...]) * scale_ref[...] + shift_ref[...]
    if has_add:
        y = y + add_ref[...]
    o_ref[...] = y


def avgpool_bn(xt, inv, scale, shift, *, add=None):
    T, C, M = xt.shape
    tm = _pick_tile_m(M)
    in_specs = [pl.BlockSpec((T, C, tm), lambda i: (0, 0, i)),
                pl.BlockSpec((1, tm), lambda i: (0, i)),
                pl.BlockSpec((C, 1), lambda i: (0, 0)),
                pl.BlockSpec((C, 1), lambda i: (0, 0))]
    args = [xt, inv, scale, shift]
    if add is not None:
        in_specs.append(pl.BlockSpec((C, tm), lambda i: (0, i)))
        args.append(add)
    return pl.pallas_call(
        functools.partial(_avgpool_bn_kernel, taps=T, has_add=add is not None),
        out_shape=jax.ShapeDtypeStruct((C, M), jnp.float32),
        grid=(M // tm,),
        in_specs=in_specs,
        out_specs=pl.BlockSpec((C, tm), lambda i: (0, i)),
        compiler_params=_PARALLEL,
    )(*args)


def _add_kernel(a_ref, b_ref, o_ref):
    o_ref[...] = a_ref[...] + b_ref[...]


def add2_cm(a2, b2):
    """Fallback plain add (only needed if both edges of a step are identity)."""
    return pl.pallas_call(
        _add_kernel,
        out_shape=jax.ShapeDtypeStruct(a2.shape, jnp.float32),
        in_specs=[_VMEM] * 2,
        out_specs=_VMEM,
    )(a2, b2)


def _tail_kernel(x_ref, w1_ref, b1_ref, w2_ref, b2_ref, o_ref, *, inv_hw):
    """Fused global-avg-pool -> Linear -> ReLU -> Linear (channel-major)."""
    pooled = jnp.sum(x_ref[...], axis=-1) * inv_hw            # (P, N)
    h = jnp.dot(w1_ref[...], pooled.astype(jnp.bfloat16),
                preferred_element_type=jnp.float32) + b1_ref[...]
    h = jnp.maximum(h, 0.0)
    o_ref[...] = jnp.dot(w2_ref[...], h.astype(jnp.bfloat16),
                         preferred_element_type=jnp.float32) + b2_ref[...]


def classifier_tail(x3, params):
    P, N, HW = x3.shape
    return pl.pallas_call(
        functools.partial(_tail_kernel, inv_hw=1.0 / HW),
        out_shape=jax.ShapeDtypeStruct((128, N), jnp.float32),
        in_specs=[_VMEM] * 5,
        out_specs=_VMEM,
    )(x3, params['fc1_w'], params['fc1_b'], params['fc2_w'], params['fc2_b'])


# --------------------------------- glue -------------------------------------

def cm_flat(x):
    """(C, N, H, W) -> ((C, N*H*W), (N, H, W))."""
    C, N, H, W = x.shape
    return x.reshape(C, N * H * W), (N, H, W)


def extract_taps_flat(x, ksize, stride, padding, pad_value=0.0):
    """(C,N,H,W) -> (k*k*C, N*OH*OW), rows ordered tap-major / channel-minor."""
    C, N, H, W = x.shape
    xp = jnp.pad(x, ((0, 0), (0, 0), (padding, padding), (padding, padding)),
                 constant_values=pad_value)
    OH = (H + 2 * padding - ksize) // stride + 1
    OW = (W + 2 * padding - ksize) // stride + 1
    taps = []
    for kh in range(ksize):
        for kw in range(ksize):
            sl = xp[:, :, kh:kh + (OH - 1) * stride + 1:stride,
                          kw:kw + (OW - 1) * stride + 1:stride]
            taps.append(sl.reshape(C, N * OH * OW))
    return jnp.concatenate(taps, axis=0), (N, OH, OW)


def extract_taps_stack(x, ksize, stride, padding, pad_value=0.0):
    """(C,N,H,W) -> (k*k, C, N*OH*OW) stacked taps (for pooling reductions)."""
    C, N, H, W = x.shape
    xp = jnp.pad(x, ((0, 0), (0, 0), (padding, padding), (padding, padding)),
                 constant_values=pad_value)
    OH = (H + 2 * padding - ksize) // stride + 1
    OW = (W + 2 * padding - ksize) // stride + 1
    taps = []
    for kh in range(ksize):
        for kw in range(ksize):
            sl = xp[:, :, kh:kh + (OH - 1) * stride + 1:stride,
                          kw:kw + (OW - 1) * stride + 1:stride]
            taps.append(sl.reshape(C, N * OH * OW))
    return jnp.stack(taps, axis=0), (N, OH, OW)


def _avg_inv_const(N, H, W, stride):
    """Trace-time constant 1/valid_count per output position (AvgPool2d with
    count_include_pad=False, as in the DARTS OPS table)."""
    OH = (H + 2 - 3) // stride + 1
    OW = (W + 2 - 3) // stride + 1
    ones = np.pad(np.ones((H, W), np.float32), 1)
    cnt = np.zeros((OH, OW), np.float32)
    for kh in range(3):
        for kw in range(3):
            cnt += ones[kh:kh + (OH - 1) * stride + 1:stride,
                        kw:kw + (OW - 1) * stride + 1:stride]
    inv = np.tile((1.0 / cnt).reshape(-1), N)
    return jnp.asarray(inv).reshape(1, N * OH * OW)


# ------------------------------- operators ----------------------------------

def relu_conv_bn_1x1(x, p, add=None):               # ReLUConvBN(1x1, stride 1)
    x2, (N, H, W) = cm_flat(x)
    y = matmul_bn(x2, p['w'], p['scale'], p['shift'], pre_relu=True, add=add)
    return y.reshape(-1, N, H, W)


def stem_conv3x3(x, p):                              # Conv2d(3x3, pad 1) + BN
    xt, (N, OH, OW) = extract_taps_flat(x, 3, 1, 1)
    y = matmul_bn(xt.astype(jnp.bfloat16), p['w'], p['scale'], p['shift'])
    return y.reshape(-1, N, OH, OW)


def sep_conv_3x3(x, p, *, stride, add=None):
    """DARTS SepConv: 2 x (ReLU -> dw3x3 -> pw1x1 -> BN); dw∘pw pre-folded into
    a single dense (C, 9C) weight per block, inter-block ReLU fused in-kernel."""
    # ReLU applied once on the activation (not per overlapping tap).
    yr = jnp.maximum(x, 0.0)
    xt, (N, OH, OW) = extract_taps_flat(yr, 3, stride, 1)
    y = matmul_bn(xt.astype(jnp.bfloat16), p['w0'], p['scale0'], p['shift0'],
                  post_relu=True)                    # block0 + next block's ReLU
    y = y.reshape(-1, N, OH, OW)
    xt, (N, OH, OW) = extract_taps_flat(y, 3, 1, 1)  # already ReLU'd
    y = matmul_bn(xt.astype(jnp.bfloat16), p['w1'], p['scale1'], p['shift1'],
                  add=add)
    return y.reshape(-1, N, OH, OW)


def max_pool_3x3(x, p, *, stride, add=None):         # MaxPool2d(3,s,1) + BN
    # -1e30 sentinel is safe: every 3x3/pad-1 window holds >=1 real element.
    xt, (N, OH, OW) = extract_taps_stack(x, 3, stride, 1, pad_value=-1e30)
    y = maxpool_bn(xt, p['scale'], p['shift'], add=add)
    return y.reshape(-1, N, OH, OW)


def avg_pool_3x3(x, p, *, stride, add=None):         # AvgPool2d(3,s,1,cip=F)+BN
    C, N, H, W = x.shape
    xt, (N, OH, OW) = extract_taps_stack(x, 3, stride, 1, pad_value=0.0)
    inv = _avg_inv_const(N, H, W, stride)
    y = avgpool_bn(xt, inv, p['scale'], p['shift'], add=add)
    return y.reshape(-1, N, OH, OW)


def factorized_reduce(x, p, add=None):
    """FactorizedReduce as ONE matmul: channel-concat of even/odd subsamples
    times a block-diagonal (Cout, 2Cin) weight (no in-kernel lane concat).
    NOTE: assumes even H, W (true for this network)."""
    xa = x[:, :, 0::2, 0::2]
    xb = x[:, :, 1::2, 1::2]
    C, N, OH, OW = xa.shape
    xx = jnp.concatenate([xa.reshape(C, N * OH * OW),
                          xb.reshape(C, N * OH * OW)], axis=0)
    y = matmul_bn(xx, p['w'], p['scale'], p['shift'], pre_relu=True, add=add)
    return y.reshape(-1, N, OH, OW)


def apply_op(name, p, x, stride, add=None):
    if name == 'skip_connect':
        if stride == 1:                 # Identity: folded into partner by caller
            return x
        return factorized_reduce(x, p, add=add)
    if name == 'sep_conv_3x3':
        return sep_conv_3x3(x, p, stride=stride, add=add)
    if name == 'max_pool_3x3':
        return max_pool_3x3(x, p, stride=stride, add=add)
    if name == 'avg_pool_3x3':
        return avg_pool_3x3(x, p, stride=stride, add=add)
    raise ValueError(name)


# --------------------------------- Cell --------------------------------------

def cell_forward(p, s0, s1, arch, reduction, reduction_prev):
    if reduction_prev:
        s0 = factorized_reduce(s0, p['pre0'])
    else:
        s0 = relu_conv_bn_1x1(s0, p['pre0'])
    s1 = relu_conv_bn_1x1(s1, p['pre1'])

    op_names, indices = zip(*arch)
    steps = len(op_names) // 2
    states = [s0, s1]
    for i in range(steps):
        k1, k2 = 2 * i, 2 * i + 1
        n1, i1 = op_names[k1], indices[k1]
        n2, i2 = op_names[k2], indices[k2]
        st1 = 2 if (reduction and i1 < 2) else 1
        st2 = 2 if (reduction and i2 < 2) else 1
        id1 = (n1 == 'skip_connect' and st1 == 1)
        id2 = (n2 == 'skip_connect' and st2 == 1)
        # TODO(synk): drop_path is training-only stochastic depth; inference
        # (drop_path_prob == 0 / eval) makes it a no-op, so it is omitted.
        if id1 and id2:
            s2 = add2_cm(cm_flat(states[i1])[0], cm_flat(states[i2])[0])
            s = s2.reshape(states[i1].shape)
        elif id1:            # fold identity edge into the other op's kernel
            s = apply_op(n2, p['ops'][k2], states[i2], st2,
                         add=cm_flat(states[i1])[0])
        elif id2:
            s = apply_op(n1, p['ops'][k1], states[i1], st1,
                         add=cm_flat(states[i2])[0])
        else:                # fuse the h1 + h2 add into the second op's kernel
            h1 = apply_op(n1, p['ops'][k1], states[i1], st1)
            s = apply_op(n2, p['ops'][k2], states[i2], st2,
                         add=cm_flat(h1)[0])
        states.append(s)
    return jnp.concatenate(states[2:6], axis=0)       # concat = range(2, 6)


# -------------------------------- Network ------------------------------------

def network_forward(params, x_nchw, architecture):
    # Channel-major layout: (N,C,H,W) -> (C,N,H,W) so M=N*H*W is the lane axis.
    x = jnp.transpose(x_nchw, (1, 0, 2, 3)).astype(jnp.float32)
    s = stem_conv3x3(x, params['stem'])
    s0 = s1 = s
    layers = len(architecture)
    reduction_prev = False
    for idx, cell_p in enumerate(params['cells']):
        reduction = idx in (layers // 3, 2 * layers // 3)
        s0, s1 = s1, cell_forward(cell_p, s0, s1, architecture[idx],
                                  reduction, reduction_prev)
        reduction_prev = reduction

    C, N, H, W = s1.shape
    logits_cm = classifier_tail(s1.reshape(C, N, H * W), params)   # (128, N)
    return jnp.transpose(logits_cm), None


# ---------------------------- deterministic init ------------------------------

class KeyGen:
    def __init__(self, seed=0):
        self._key = jax.random.PRNGKey(seed)

    def __call__(self):
        self._key, sub = jax.random.split(self._key)
        return sub


def _w(kg, shape):
    return (0.1 * jax.random.normal(kg(), shape)).astype(jnp.float32)


def init_bn(kg, C, affine):
    if affine:
        gamma = jax.random.uniform(kg(), (C,), minval=0.5, maxval=1.5)
        beta = 0.1 * jax.random.normal(kg(), (C,))
    else:
        gamma = jnp.ones((C,), jnp.float32)
        beta = jnp.zeros((C,), jnp.float32)
    mean = 0.1 * jax.random.normal(kg(), (C,))
    var = jax.random.uniform(kg(), (C,), minval=0.5, maxval=1.5)
    scale = gamma / jnp.sqrt(var + BN_EPS)            # eval-mode BN folded
    shift = beta - mean * scale
    return (scale.reshape(C, 1).astype(jnp.float32),
            shift.reshape(C, 1).astype(jnp.float32))


def init_relu_conv_bn_1x1(kg, Cin, Cout, affine):
    s, b = init_bn(kg, Cout, affine)
    return {'w': _w(kg, (Cout, Cin)).astype(jnp.bfloat16), 'scale': s, 'shift': b}


def init_conv3x3_bn(kg, Cin, Cout, affine):           # stem: weight as (Cout, 9Cin)
    s, b = init_bn(kg, Cout, affine)
    return {'w': _w(kg, (Cout, 9 * Cin)).astype(jnp.bfloat16),
            'scale': s, 'shift': b}


def init_sep_conv(kg, C, affine):
    p = {}
    for blk in (0, 1):
        dw = _w(kg, (9, C))                            # depthwise taps
        pw = _w(kg, (C, C))                            # pointwise [out, in]
        # Fold dw followed by pw into one dense 3x3 weight (conv linearity):
        # W[co, k*C + ci] = pw[co, ci] * dw[k, ci]
        wc = (pw[:, None, :] * dw[None, :, :]).reshape(C, 9 * C)
        s, b = init_bn(kg, C, affine)
        p['w%d' % blk] = wc.astype(jnp.bfloat16)
        p['scale%d' % blk] = s
        p['shift%d' % blk] = b
    return p


def init_fact_reduce(kg, Cin, Cout, affine):
    w1 = _w(kg, (Cout // 2, Cin))
    w2 = _w(kg, (Cout // 2, Cin))
    wbd = jnp.zeros((Cout, 2 * Cin), jnp.float32)      # block-diagonal weight
    wbd = wbd.at[:Cout // 2, :Cin].set(w1)
    wbd = wbd.at[Cout // 2:, Cin:].set(w2)
    s, b = init_bn(kg, Cout, affine)
    return {'w': wbd.astype(jnp.bfloat16), 'scale': s, 'shift': b}


def init_pool(kg, C):
    s, b = init_bn(kg, C, affine=False)                # pool ops get BN(affine=False)
    return {'scale': s, 'shift': b}


def init_op(kg, name, C, stride, affine):
    if name == 'skip_connect':
        return init_fact_reduce(kg, C, C, affine) if stride == 2 else {}
    if name == 'sep_conv_3x3':
        return init_sep_conv(kg, C, affine)
    if name in ('max_pool_3x3', 'avg_pool_3x3'):
        return init_pool(kg, C)
    raise ValueError(name)


def init_cell(kg, arch, Cpp, Cp, C, reduction, reduction_prev, affine):
    p = {}
    if reduction_prev:
        p['pre0'] = init_fact_reduce(kg, Cpp, C, affine)
    else:
        p['pre0'] = init_relu_conv_bn_1x1(kg, Cpp, C, affine)
    p['pre1'] = init_relu_conv_bn_1x1(kg, Cp, C, affine)
    ops = []
    for name, index in arch:
        stride = 2 if (reduction and index < 2) else 1
        ops.append(init_op(kg, name, C, stride, affine))
    p['ops'] = ops
    return p


def init_network(kg, init_channel, architecture, affine,
                 multiplier=4, stem_multiplier=3):
    layers = len(architecture)
    C_stem = stem_multiplier * init_channel
    params = {'stem': init_conv3x3_bn(kg, 3, C_stem, affine=True)}
    prev_prev, prev, curr = C_stem, C_stem, init_channel
    cells = []
    reduction_prev = False
    for idx in range(layers):
        if idx in (layers // 3, 2 * layers // 3):
            curr *= 2
            reduction = True
        else:
            reduction = False
        cells.append(init_cell(kg, architecture[idx], prev_prev, prev, curr,
                               reduction, reduction_prev, affine))
        reduction_prev = reduction
        prev_prev, prev = prev, multiplier * curr
    params['cells'] = cells
    # Classifier: Linear(prev, prev) -> ReLU -> Linear(prev, 128), column-major.
    params['fc1_w'] = _w(kg, (prev, prev)).astype(jnp.bfloat16)
    params['fc1_b'] = _w(kg, (prev, 1))
    params['fc2_w'] = _w(kg, (128, prev)).astype(jnp.bfloat16)
    params['fc2_b'] = _w(kg, (128, 1))
    return params


# ---------------------------------- main -------------------------------------

if __name__ == "__main__":
    # DARTS-style genotype: 8 (op, input-index) edges per cell, 4 steps.
    NORMAL = [('sep_conv_3x3', 0), ('skip_connect', 1),
              ('sep_conv_3x3', 0), ('sep_conv_3x3', 1),
              ('skip_connect', 0), ('avg_pool_3x3', 2),
              ('skip_connect', 0), ('max_pool_3x3', 1)]
    REDUCE = [('max_pool_3x3', 0), ('sep_conv_3x3', 1),
              ('skip_connect', 2), ('max_pool_3x3', 1),
              ('avg_pool_3x3', 0), ('skip_connect', 2),
              ('skip_connect', 2), ('max_pool_3x3', 1)]
    # layers = 3 -> cells at idx 1 and 2 are reduction cells (layers//3, 2*layers//3)
    architecture = [NORMAL, REDUCE, REDUCE]

    kg = KeyGen(0)
    init_channel = 4
    params = init_network(kg, init_channel, architecture, affine=True)

    x = jax.random.normal(jax.random.PRNGKey(0), (2, 3, 16, 16), dtype=jnp.float32)

    fwd = jax.jit(lambda p, xx: network_forward(p, xx, architecture))
    logits, aux = fwd(params, x)
    logits = jax.block_until_ready(logits)

    assert logits.shape == (2, 128), logits.shape
    assert aux is None
    assert bool(jnp.all(jnp.isfinite(logits)))
    print("KERNEL_OK")
</pallas_src>

<mosaic_0001>
module attributes {stable_mosaic.version = 11 : i64} {
  func.func @_mm_bn_kernel(%arg0: i32, %arg1: memref<27x512xbf16, #tpu.memory_space<vmem>>, %arg2: memref<12x27xbf16, #tpu.memory_space<vmem>>, %arg3: memref<12x1xf32, #tpu.memory_space<vmem>>, %arg4: memref<12x1xf32, #tpu.memory_space<vmem>>, %arg5: memref<12x512xf32, #tpu.memory_space<vmem>>) attributes {dimension_semantics = [#tpu.dimension_semantics<parallel>], iteration_bounds = array<i64: 1>, scalar_prefetch = 0 : i64, scratch_operands = 0 : i64, tpu.core_type = #tpu.core_type<tc>, window_params = [{transform_indices = @transform_0, window_bounds = array<i64: 27, 512>}, {pipeline_mode = #tpu.pipeline_mode<synchronous>, transform_indices = @transform_1, window_bounds = array<i64: 12, 27>}, {pipeline_mode = #tpu.pipeline_mode<synchronous>, transform_indices = @transform_2, window_bounds = array<i64: 12, 1>}, {pipeline_mode = #tpu.pipeline_mode<synchronous>, transform_indices = @transform_3, window_bounds = array<i64: 12, 1>}, {transform_indices = @transform_4, window_bounds = array<i64: 12, 512>}]} {
    %c0 = arith.constant 0 : index
    %c0_0 = arith.constant 0 : index
    %0 = vector.load %arg1[%c0, %c0_0] : memref<27x512xbf16, #tpu.memory_space<vmem>>, vector<27x512xbf16>
    %c0_1 = arith.constant 0 : index
    %c0_2 = arith.constant 0 : index
    %1 = vector.load %arg2[%c0_1, %c0_2] : memref<12x27xbf16, #tpu.memory_space<vmem>>, vector<12x27xbf16>
    %cst = arith.constant dense<0.000000e+00> : vector<12x512xf32>
    %2 = tpu.matmul %1, %0, %cst {dimension_numbers = #tpu.dot_dimension_numbers<[1], [0], [0], [1], [0, 0, 1, 1], [], []>} : vector<12x27xbf16>, vector<27x512xbf16>, vector<12x512xf32> -> vector<12x512xf32>
    %c0_3 = arith.constant 0 : index
    %c0_4 = arith.constant 0 : index
    %3 = vector.load %arg3[%c0_3, %c0_4] : memref<12x1xf32, #tpu.memory_space<vmem>>, vector<12x1xf32>
    %4 = vector.broadcast %3 : vector<12x1xf32> to vector<12x512xf32>
    %5 = arith.mulf %2, %4 : vector<12x512xf32>
    %c0_5 = arith.constant 0 : index
    %c0_6 = arith.constant 0 : index
    %6 = vector.load %arg4[%c0_5, %c0_6] : memref<12x1xf32, #tpu.memory_space<vmem>>, vector<12x1xf32>
    %7 = vector.broadcast %6 : vector<12x1xf32> to vector<12x512xf32>
    %8 = arith.addf %5, %7 : vector<12x512xf32>
    %c0_7 = arith.constant 0 : index
    %c0_8 = arith.constant 0 : index
    %9 = vector.load %arg5[%c0_7, %c0_8] : memref<12x512xf32, #tpu.memory_space<vmem>>, vector<12x512xf32>
    tpu.vector_store %arg5[%c0_7, %c0_8], %8 {strides = array<i32>} : memref<12x512xf32, #tpu.memory_space<vmem>>, vector<12x512xf32>,
    return
  }
  func.func @transform_0(%arg0: i32) -> (i32, i32) {
    %c0_i32 = arith.constant 0 : i32
    %c0_i32_0 = arith.constant 0 : i32
    return %c0_i32, %arg0 : i32, i32
  }
  func.func @transform_1(%arg0: i32) -> (i32, i32) {
    %c0_i32 = arith.constant 0 : i32
    %c0_i32_0 = arith.constant 0 : i32
    %c0_i32_1 = arith.constant 0 : i32
    return %c0_i32, %c0_i32_0 : i32, i32
  }
  func.func @transform_2(%arg0: i32) -> (i32, i32) {
    %c0_i32 = arith.constant 0 : i32
    %c0_i32_0 = arith.constant 0 : i32
    %c0_i32_1 = arith.constant 0 : i32
    return %c0_i32, %c0_i32_0 : i32, i32
  }
  func.func @transform_3(%arg0: i32) -> (i32, i32) {
    %c0_i32 = arith.constant 0 : i32
    %c0_i32_0 = arith.constant 0 : i32
    %c0_i32_1 = arith.constant 0 : i32
    return %c0_i32, %c0_i32_0 : i32, i32
  }
  func.func @transform_4(%arg0: i32) -> (i32, i32) {
    %c0_i32 = arith.constant 0 : i32
    %c0_i32_0 = arith.constant 0 : i32
    return %c0_i32, %arg0 : i32, i32
  }
}

module attributes {stable_mosaic.version = 11 : i64} {
  func.func @_mm_bn_kernel(%arg0: i32, %arg1: memref<12x512xf32, #tpu.memory_space<vmem>>, %arg2: memref<4x12xbf16, #tpu.memory_space<vmem>>, %arg3: memref<4x1xf32, #tpu.memory_space<vmem>>, %arg4: memref<4x1xf32, #tpu.memory_space<vmem>>, %arg5: memref<4x512xf32, #tpu.memory_space<vmem>>) attributes {dimension_semantics = [#tpu.dimension_semantics<parallel>], iteration_bounds = array<i64: 1>, scalar_prefetch = 0 : i64, scratch_operands = 0 : i64, tpu.core_type = #tpu.core_type<tc>, window_params = [{transform_indices = @transform_0, window_bounds = array<i64: 12, 512>}, {pipeline_mode = #tpu.pipeline_mode<synchronous>, transform_indices = @transform_1, window_bounds = array<i64: 4, 12>}, {pipeline_mode = #tpu.pipeline_mode<synchronous>, transform_indices = @transform_2, window_bounds = array<i64: 4, 1>}, {pipeline_mode = #tpu.pipeline_mode<synchronous>, transform_indices = @transform_3, window_bounds = array<i64: 4, 1>}, {transform_indices = @transform_4, window_bounds = array<i64: 4, 512>}]} {
    %c0 = arith.constant 0 : index
    %c0_0 = arith.constant 0 : index
    %0 = vector.load %arg1[%c0, %c0_0] : memref<12x512xf32, #tpu.memory_space<vmem>>, vector<12x512xf32>
    %cst = arith.constant 0.000000e+00 : f32
    %1 = vector.broadcast %cst : f32 to vector<12x512xf32>
    %2 = arith.maximumf %0, %1 : vector<12x512xf32>
    %c0_1 = arith.constant 0 : index
    %c0_2 = arith.constant 0 : index
    %3 = vector.load %arg2[%c0_1, %c0_2] : memref<4x12xbf16, #tpu.memory_space<vmem>>, vector<4x12xbf16>
    %4 = arith.truncf %2 : vector<12x512xf32> to vector<12x512xbf16>
    %cst_3 = arith.constant dense<0.000000e+00> : vector<4x512xf32>
    %5 = tpu.matmul %3, %4, %cst_3 {dimension_numbers = #tpu.dot_dimension_numbers<[1], [0], [0], [1], [0, 0, 1, 1], [], []>} : vector<4x12xbf16>, vector<12x512xbf16>, vector<4x512xf32> -> vector<4x512xf32>
    %c0_4 = arith.constant 0 : index
    %c0_5 = arith.constant 0 : index
    %6 = vector.load %arg3[%c0_4, %c0_5] : memref<4x1xf32, #tpu.memory_space<vmem>>, vector<4x1xf32>
    %7 = vector.broadcast %6 : vector<4x1xf32> to vector<4x512xf32>
    %8 = arith.mulf %5, %7 : vector<4x512xf32>
    %c0_6 = arith.constant 0 : index
    %c0_7 = arith.constant 0 : index
    %9 = vector.load %arg4[%c0_6, %c0_7] : memref<4x1xf32, #tpu.memory_space<vmem>>, vector<4x1xf32>
    %10 = vector.broadcast %9 : vector<4x1xf32> to vector<4x512xf32>
    %11 = arith.addf %8, %10 : vector<4x512xf32>
    %c0_8 = arith.constant 0 : index
    %c0_9 = arith.constant 0 : index
    %12 = vector.load %arg5[%c0_8, %c0_9] : memref<4x512xf32, #tpu.memory_space<vmem>>, vector<4x512xf32>
    tpu.vector_store %arg5[%c0_8, %c0_9], %11 {strides = array<i32>} : memref<4x512xf32, #tpu.memory_space<vmem>>, vector<4x512xf32>,
    return
  }
  func.func @transform_0(%arg0: i32) -> (i32, i32) {
    %c0_i32 = arith.constant 0 : i32
    %c0_i32_0 = arith.constant 0 : i32
    return %c0_i32, %arg0 : i32, i32
  }
  func.func @transform_1(%arg0: i32) -> (i32, i32) {
    %c0_i32 = arith.constant 0 : i32
    %c0_i32_0 = arith.constant 0 : i32
    %c0_i32_1 = arith.constant 0 : i32
    return %c0_i32, %c0_i32_0 : i32, i32
  }
  func.func @transform_2(%arg0: i32) -> (i32, i32) {
    %c0_i32 = arith.constant 0 : i32
    %c0_i32_0 = arith.constant 0 : i32
    %c0_i32_1 = arith.constant 0 : i32
    return %c0_i32, %c0_i32_0 : i32, i32
  }
  func.func @transform_3(%arg0: i32) -> (i32, i32) {
    %c0_i32 = arith.constant 0 : i32
    %c0_i32_0 = arith.constant 0 : i32
    %c0_i32_1 = arith.constant 0 : i32
    return %c0_i32, %c0_i32_0 : i32, i32
  }
  func.func @transform_4(%arg0: i32) -> (i32, i32) {
    %c0_i32 = arith.constant 0 : i32
    %c0_i32_0 = arith.constant 0 : i32
    return %c0_i32, %arg0 : i32, i32
  }
}

module attributes {stable_mosaic.version = 11 : i64} {
  func.func @_mm_bn_kernel(%arg0: i32, %arg1: memref<36x512xbf16, #tpu.memory_space<vmem>>, %arg2: memref<4x36xbf16, #tpu.memory_space<vmem>>, %arg3: memref<4x1xf32, #tpu.memory_space<vmem>>, %arg4: memref<4x1xf32, #tpu.memory_space<vmem>>, %arg5: memref<4x512xf32, #tpu.memory_space<vmem>>) attributes {dimension_semantics = [#tpu.dimension_semantics<parallel>], iteration_bounds = array<i64: 1>, scalar_prefetch = 0 : i64, scratch_operands = 0 : i64, tpu.core_type = #tpu.core_type<tc>, window_params = [{transform_indices = @transform_0, window_bounds = array<i64: 36, 512>}, {pipeline_mode = #tpu.pipeline_mode<synchronous>, transform_indices = @transform_1, window_bounds = array<i64: 4, 36>}, {pipeline_mode = #tpu.pipeline_mode<synchronous>, transform_indices = @transform_2, window_bounds = array<i64: 4, 1>}, {pipeline_mode = #tpu.pipeline_mode<synchronous>, transform_indices = @transform_3, window_bounds = array<i64: 4, 1>}, {transform_indices = @transform_4, window_bounds = array<i64: 4, 512>}]} {
    %c0 = arith.constant 0 : index
    %c0_0 = arith.constant 0 : index
    %0 = vector.load %arg1[%c0, %c0_0] : memref<36x512xbf16, #tpu.memory_space<vmem>>, vector<36x512xbf16>
    %c0_1 = arith.constant 0 : index
    %c0_2 = arith.constant 0 : index
    %1 = vector.load %arg2[%c0_1, %c0_2] : memref<4x36xbf16, #tpu.memory_space<vmem>>, vector<4x36xbf16>
    %cst = arith.constant dense<0.000000e+00> : vector<4x512xf32>
    %2 = tpu.matmul %1, %0, %cst {dimension_numbers = #tpu.dot_dimension_numbers<[1], [0], [0], [1], [0, 0, 1, 1], [], []>} : vector<4x36xbf16>, vector<36x512xbf16>, vector<4x512xf32> -> vector<4x512xf32>
    %c0_3 = arith.constant 0 : index
    %c0_4 = arith.constant 0 : index
    %3 = vector.load %arg3[%c0_3, %c0_4] : memref<4x1xf32, #tpu.memory_space<vmem>>, vector<4x1xf32>
    %4 = vector.broadcast %3 : vector<4x1xf32> to vector<4x512xf32>
    %5 = arith.mulf %2, %4 : vector<4x512xf32>
    %c0_5 = arith.constant 0 : index
    %c0_6 = arith.constant 0 : index
    %6 = vector.load %arg4[%c0_5, %c0_6] : memref<4x1xf32, #tpu.memory_space<vmem>>, vector<4x1xf32>
    %7 = vector.broadcast %6 : vector<4x1xf32> to vector<4x512xf32>
    %8 = arith.addf %5, %7 : vector<4x512xf32>
    %cst_7 = arith.constant 0.000000e+00 : f32
    %9 = vector.broadcast %cst_7 : f32 to vector<4x512xf32>
    %10 = arith.maximumf %8, %9 : vector<4x512xf32>
    %c0_8 = arith.constant 0 : index
    %c0_9 = arith.constant 0 : index
    %11 = vector.load %arg5[%c0_8, %c0_9] : memref<4x512xf32, #tpu.memory_space<vmem>>, vector<4x512xf32>
    tpu.vector_store %arg5[%c0_8, %c0_9], %10 {strides = array<i32>} : memref<4x512xf32, #tpu.memory_space<vmem>>, vector<4x512xf32>,
    return
  }
  func.func @transform_0(%arg0: i32) -> (i32, i32) {
    %c0_i32 = arith.constant 0 : i32
    %c0_i32_0 = arith.constant 0 : i32
    return %c0_i32, %arg0 : i32, i32
  }
  func.func @transform_1(%arg0: i32) -> (i32, i32) {
    %c0_i32 = arith.constant 0 : i32
    %c0_i32_0 = arith.constant 0 : i32
    %c0_i32_1 = arith.constant 0 : i32
    return %c0_i32, %c0_i32_0 : i32, i32
  }
  func.func @transform_2(%arg0: i32) -> (i32, i32) {
    %c0_i32 = arith.constant 0 : i32
    %c0_i32_0 = arith.constant 0 : i32
    %c0_i32_1 = arith.constant 0 : i32
    return %c0_i32, %c0_i32_0 : i32, i32
  }
  func.func @transform_3(%arg0: i32) -> (i32, i32) {
    %c0_i32 = arith.constant 0 : i32
    %c0_i32_0 = arith.constant 0 : i32
    %c0_i32_1 = arith.constant 0 : i32
    return %c0_i32, %c0_i32_0 : i32, i32
  }
  func.func @transform_4(%arg0: i32) -> (i32, i32) {
    %c0_i32 = arith.constant 0 : i32
    %c0_i32_0 = arith.constant 0 : i32
    return %c0_i32, %arg0 : i32, i32
  }
}

module attributes {stable_mosaic.version = 11 : i64} {
  func.func @_mm_bn_kernel(%arg0: i32, %arg1: memref<36x512xbf16, #tpu.memory_space<vmem>>, %arg2: memref<4x36xbf16, #tpu.memory_space<vmem>>, %arg3: memref<4x1xf32, #tpu.memory_space<vmem>>, %arg4: memref<4x1xf32, #tpu.memory_space<vmem>>, %arg5: memref<4x512xf32, #tpu.memory_space<vmem>>) attributes {dimension_semantics = [#tpu.dimension_semantics<parallel>], iteration_bounds = array<i64: 1>, scalar_prefetch = 0 : i64, scratch_operands = 0 : i64, tpu.core_type = #tpu.core_type<tc>, window_params = [{transform_indices = @transform_0, window_bounds = array<i64: 36, 512>}, {pipeline_mode = #tpu.pipeline_mode<synchronous>, transform_indices = @transform_1, window_bounds = array<i64: 4, 36>}, {pipeline_mode = #tpu.pipeline_mode<synchronous>, transform_indices = @transform_2, window_bounds = array<i64: 4, 1>}, {pipeline_mode = #tpu.pipeline_mode<synchronous>, transform_indices = @transform_3, window_bounds = array<i64: 4, 1>}, {transform_indices = @transform_4, window_bounds = array<i64: 4, 512>}]} {
    %c0 = arith.constant 0 : index
    %c0_0 = arith.constant 0 : index
    %0 = vector.load %arg1[%c0, %c0_0] : memref<36x512xbf16, #tpu.memory_space<vmem>>, vector<36x512xbf16>
    %c0_1 = arith.constant 0 : index
    %c0_2 = arith.constant 0 : index
    %1 = vector.load %arg2[%c0_1, %c0_2] : memref<4x36xbf16, #tpu.memory_space<vmem>>, vector<4x36xbf16>
    %cst = arith.constant dense<0.000000e+00> : vector<4x512xf32>
    %2 = tpu.matmul %1, %0, %cst {dimension_numbers = #tpu.dot_dimension_numbers<[1], [0], [0], [1], [0, 0, 1, 1], [], []>} : vector<4x36xbf16>, vector<36x512xbf16>, vector<4x512xf32> -> vector<4x512xf32>
    %c0_3 = arith.constant 0 : index
    %c0_4 = arith.constant 0 : index
    %3 = vector.load %arg3[%c0_3, %c0_4] : memref<4x1xf32, #tpu.memory_space<vmem>>, vector<4x1xf32>
    %4 = vector.broadcast %3 : vector<4x1xf32> to vector<4x512xf32>
    %5 = arith.mulf %2, %4 : vector<4x512xf32>
    %c0_5 = arith.constant 0 : index
    %c0_6 = arith.constant 0 : index
    %6 = vector.load %arg4[%c0_5, %c0_6] : memref<4x1xf32, #tpu.memory_space<vmem>>, vector<4x1xf32>
    %7 = vector.broadcast %6 : vector<4x1xf32> to vector<4x512xf32>
    %8 = arith.addf %5, %7 : vector<4x512xf32>
    %c0_7 = arith.constant 0 : index
    %c0_8 = arith.constant 0 : index
    %9 = vector.load %arg5[%c0_7, %c0_8] : memref<4x512xf32, #tpu.memory_space<vmem>>, vector<4x512xf32>
    tpu.vector_store %arg5[%c0_7, %c0_8], %8 {strides = array<i32>} : memref<4x512xf32, #tpu.memory_space<vmem>>, vector<4x512xf32>,
    return
  }
  func.func @transform_0(%arg0: i32) -> (i32, i32) {
    %c0_i32 = arith.constant 0 : i32
    %c0_i32_0 = arith.constant 0 : i32
    return %c0_i32, %arg0 : i32, i32
  }
  func.func @transform_1(%arg0: i32) -> (i32, i32) {
    %c0_i32 = arith.constant 0 : i32
    %c0_i32_0 = arith.constant 0 : i32
    %c0_i32_1 = arith.constant 0 : i32
    return %c0_i32, %c0_i32_0 : i32, i32
  }
  func.func @transform_2(%arg0: i32) -> (i32, i32) {
    %c0_i32 = arith.constant 0 : i32
    %c0_i32_0 = arith.constant 0 : i32
    %c0_i32_1 = arith.constant 0 : i32
    return %c0_i32, %c0_i32_0 : i32, i32
  }
  func.func @transform_3(%arg0: i32) -> (i32, i32) {
    %c0_i32 = arith.constant 0 : i32
    %c0_i32_0 = arith.constant 0 : i32
    %c0_i32_1 = arith.constant 0 : i32
    return %c0_i32, %c0_i32_0 : i32, i32
  }
  func.func @transform_4(%arg0: i32) -> (i32, i32) {
    %c0_i32 = arith.constant 0 : i32
    %c0_i32_0 = arith.constant 0 : i32
    return %c0_i32, %arg0 : i32, i32
  }
}

module attributes {stable_mosaic.version = 11 : i64} {
  func.func @_mm_bn_kernel(%arg0: i32, %arg1: memref<36x512xbf16, #tpu.memory_space<vmem>>, %arg2: memref<4x36xbf16, #tpu.memory_space<vmem>>, %arg3: memref<4x1xf32, #tpu.memory_space<vmem>>, %arg4: memref<4x1xf32, #tpu.memory_space<vmem>>, %arg5: memref<4x512xf32, #tpu.memory_space<vmem>>, %arg6: memref<4x512xf32, #tpu.memory_space<vmem>>) attributes {dimension_semantics = [#tpu.dimension_semantics<parallel>], iteration_bounds = array<i64: 1>, scalar_prefetch = 0 : i64, scratch_operands = 0 : i64, tpu.core_type = #tpu.core_type<tc>, window_params = [{transform_indices = @transform_0, window_bounds = array<i64: 36, 512>}, {pipeline_mode = #tpu.pipeline_mode<synchronous>, transform_indices = @transform_1, window_bounds = array<i64: 4, 36>}, {pipeline_mode = #tpu.pipeline_mode<synchronous>, transform_indices = @transform_2, window_bounds = array<i64: 4, 1>}, {pipeline_mode = #tpu.pipeline_mode<synchronous>, transform_indices = @transform_3, window_bounds = array<i64: 4, 1>}, {transform_indices = @transform_4, window_bounds = array<i64: 4, 512>}, {transform_indices = @transform_5, window_bounds = array<i64: 4, 512>}]} {
    %c0 = arith.constant 0 : index
    %c0_0 = arith.constant 0 : index
    %0 = vector.load %arg1[%c0, %c0_0] : memref<36x512xbf16, #tpu.memory_space<vmem>>, vector<36x512xbf16>
    %c0_1 = arith.constant 0 : index
    %c0_2 = arith.constant 0 : index
    %1 = vector.load %arg2[%c0_1, %c0_2] : memref<4x36xbf16, #tpu.memory_space<vmem>>, vector<4x36xbf16>
    %cst = arith.constant dense<0.000000e+00> : vector<4x512xf32>
    %2 = tpu.matmul %1, %0, %cst {dimension_numbers = #tpu.dot_dimension_numbers<[1], [0], [0], [1], [0, 0, 1, 1], [], []>} : vector<4x36xbf16>, vector<36x512xbf16>, vector<4x512xf32> -> vector<4x512xf32>
    %c0_3 = arith.constant 0 : index
    %c0_4 = arith.constant 0 : index
    %3 = vector.load %arg3[%c0_3, %c0_4] : memref<4x1xf32, #tpu.memory_space<vmem>>, vector<4x1xf32>
    %4 = vector.broadcast %3 : vector<4x1xf32> to vector<4x512xf32>
    %5 = arith.mulf %2, %4 : vector<4x512xf32>
    %c0_5 = arith.constant 0 : index
    %c0_6 = arith.constant 0 : index
    %6 = vector.load %arg4[%c0_5, %c0_6] : memref<4x1xf32, #tpu.memory_space<vmem>>, vector<4x1xf32>
    %7 = vector.broadcast %6 : vector<4x1xf32> to vector<4x512xf32>
    %8 = arith.addf %5, %7 : vector<4x512xf32>
    %c0_7 = arith.constant 0 : index
    %c0_8 = arith.constant 0 : index
    %9 = vector.load %arg5[%c0_7, %c0_8] : memref<4x512xf32, #tpu.memory_space<vmem>>, vector<4x512xf32>
    %10 = arith.addf %8, %9 : vector<4x512xf32>
    %c0_9 = arith.constant 0 : index
    %c0_10 = arith.constant 0 : index
    %11 = vector.load %arg6[%c0_9, %c0_10] : memref<4x512xf32, #tpu.memory_space<vmem>>, vector<4x512xf32>
    tpu.vector_store %arg6[%c0_9, %c0_10], %10 {strides = array<i32>} : memref<4x512xf32, #tpu.memory_space<vmem>>, vector<4x512xf32>,
    return
  }
  func.func @transform_0(%arg0: i32) -> (i32, i32) {
    %c0_i32 = arith.constant 0 : i32
    %c0_i32_0 = arith.constant 0 : i32
    return %c0_i32, %arg0 : i32, i32
  }
  func.func @transform_1(%arg0: i32) -> (i32, i32) {
    %c0_i32 = arith.constant 0 : i32
    %c0_i32_0 = arith.constant 0 : i32
    %c0_i32_1 = arith.constant 0 : i32
    return %c0_i32, %c0_i32_0 : i32, i32
  }
  func.func @transform_2(%arg0: i32) -> (i32, i32) {
    %c0_i32 = arith.constant 0 : i32
    %c0_i32_0 = arith.constant 0 : i32
    %c0_i32_1 = arith.constant 0 : i32
    return %c0_i32, %c0_i32_0 : i32, i32
  }
  func.func @transform_3(%arg0: i32) -> (i32, i32) {
    %c0_i32 = arith.constant 0 : i32
    %c0_i32_0 = arith.constant 0 : i32
    %c0_i32_1 = arith.constant 0 : i32
    return %c0_i32, %c0_i32_0 : i32, i32
  }
  func.func @transform_4(%arg0: i32) -> (i32, i32) {
    %c0_i32 = arith.constant 0 : i32
    %c0_i32_0 = arith.constant 0 : i32
    return %c0_i32, %arg0 : i32, i32
  }
  func.func @transform_5(%arg0: i32) -> (i32, i32) {
    %c0_i32 = arith.constant 0 : i32
    %c0_i32_0 = arith.constant 0 : i32
    return %c0_i32, %arg0 : i32, i32
  }
}

module attributes {stable_mosaic.version = 11 : i64} {
  func.func @_avgpool_bn_kernel(%arg0: i32, %arg1: memref<9x4x512xf32, #tpu.memory_space<vmem>>, %arg2: memref<1x512xf32, #tpu.memory_space<vmem>>, %arg3: memref<4x1xf32, #tpu.memory_space<vmem>>, %arg4: memref<4x1xf32, #tpu.memory_space<vmem>>, %arg5: memref<4x512xf32, #tpu.memory_space<vmem>>, %arg6: memref<4x512xf32, #tpu.memory_space<vmem>>) attributes {dimension_semantics = [#tpu.dimension_semantics<parallel>], iteration_bounds = array<i64: 1>, scalar_prefetch = 0 : i64, scratch_operands = 0 : i64, tpu.core_type = #tpu.core_type<tc>, window_params = [{transform_indices = @transform_0, window_bounds = array<i64: 9, 4, 512>}, {transform_indices = @transform_1, window_bounds = array<i64: 1, 512>}, {pipeline_mode = #tpu.pipeline_mode<synchronous>, transform_indices = @transform_2, window_bounds = array<i64: 4, 1>}, {pipeline_mode = #tpu.pipeline_mode<synchronous>, transform_indices = @transform_3, window_bounds = array<i64: 4, 1>}, {transform_indices = @transform_4, window_bounds = array<i64: 4, 512>}, {transform_indices = @transform_5, window_bounds = array<i64: 4, 512>}]} {
    %c0 = arith.constant 0 : index
    %c0_0 = arith.constant 0 : index
    %c0_1 = arith.constant 0 : index
    %0 = vector.load %arg1[%c0, %c0_0, %c0_1] : memref<9x4x512xf32, #tpu.memory_space<vmem>>, vector<1x4x512xf32>
    %1 = vector.shape_cast %0 : vector<1x4x512xf32> to vector<4x512xf32>
    %c1 = arith.constant 1 : index
    %c0_2 = arith.constant 0 : index
    %c0_3 = arith.constant 0 : index
    %2 = vector.load %arg1[%c1, %c0_2, %c0_3] : memref<9x4x512xf32, #tpu.memory_space<vmem>>, vector<1x4x512xf32>
    %3 = vector.shape_cast %2 : vector<1x4x512xf32> to vector<4x512xf32>
    %4 = arith.addf %1, %3 : vector<4x512xf32>
    %c2 = arith.constant 2 : index
    %c0_4 = arith.constant 0 : index
    %c0_5 = arith.constant 0 : index
    %5 = vector.load %arg1[%c2, %c0_4, %c0_5] : memref<9x4x512xf32, #tpu.memory_space<vmem>>, vector<1x4x512xf32>
    %6 = vector.shape_cast %5 : vector<1x4x512xf32> to vector<4x512xf32>
    %7 = arith.addf %4, %6 : vector<4x512xf32>
    %c3 = arith.constant 3 : index
    %c0_6 = arith.constant 0 : index
    %c0_7 = arith.constant 0 : index
    %8 = vector.load %arg1[%c3, %c0_6, %c0_7] : memref<9x4x512xf32, #tpu.memory_space<vmem>>, vector<1x4x512xf32>
    %9 = vector.shape_cast %8 : vector<1x4x512xf32> to vector<4x512xf32>
    %10 = arith.addf %7, %9 : vector<4x512xf32>
    %c4 = arith.constant 4 : index
    %c0_8 = arith.constant 0 : index
    %c0_9 = arith.constant 0 : index
    %11 = vector.load %arg1[%c4, %c0_8, %c0_9] : memref<9x4x512xf32, #tpu.memory_space<vmem>>, vector<1x4x512xf32>
    %12 = vector.shape_cast %11 : vector<1x4x512xf32> to vector<4x512xf32>
    %13 = arith.addf %10, %12 : vector<4x512xf32>
    %c5 = arith.constant 5 : index
    %c0_10 = arith.constant 0 : index
    %c0_11 = arith.constant 0 : index
    %14 = vector.load %arg1[%c5, %c0_10, %c0_11] : memref<9x4x512xf32, #tpu.memory_space<vmem>>, vector<1x4x512xf32>
    %15 = vector.shape_cast %14 : vector<1x4x512xf32> to vector<4x512xf32>
    %16 = arith.addf %13, %15 : vector<4x512xf32>
    %c6 = arith.constant 6 : index
    %c0_12 = arith.constant 0 : index
    %c0_13 = arith.constant 0 : index
    %17 = vector.load %arg1[%c6, %c0_12, %c0_13] : memref<9x4x512xf32, #tpu.memory_space<vmem>>, vector<1x4x512xf32>
    %18 = vector.shape_cast %17 : vector<1x4x512xf32> to vector<4x512xf32>
    %19 = arith.addf %16, %18 : vector<4x512xf32>
    %c7 = arith.constant 7 : index
    %c0_14 = arith.constant 0 : index
    %c0_15 = arith.constant 0 : index
    %20 = vector.load %arg1[%c7, %c0_14, %c0_15] : memref<9x4x512xf32, #tpu.memory_space<vmem>>, vector<1x4x512xf32>
    %21 = vector.shape_cast %20 : vector<1x4x512xf32> to vector<4x512xf32>
    %22 = arith.addf %19, %21 : vector<4x512xf32>
    %c8 = arith.constant 8 : index
    %c0_16 = arith.constant 0 : index
    %c0_17 = arith.constant 0 : index
    %23 = vector.load %arg1[%c8, %c0_16, %c0_17] : memref<9x4x512xf32, #tpu.memory_space<vmem>>, vector<1x4x512xf32>
    %24 = vector.shape_cast %23 : vector<1x4x512xf32> to vector<4x512xf32>
    %25 = arith.addf %22, %24 : vector<4x512xf32>
    %c0_18 = arith.constant 0 : index
    %c0_19 = arith.constant 0 : index
    %26 = vector.load %arg2[%c0_18, %c0_19] : memref<1x512xf32, #tpu.memory_space<vmem>>, vector<1x512xf32>
    %27 = vector.broadcast %26 : vector<1x512xf32> to vector<4x512xf32>
    %28 = arith.mulf %25, %27 : vector<4x512xf32>
    %c0_20 = arith.constant 0 : index
    %c0_21 = arith.constant 0 : index
    %29 = vector.load %arg3[%c0_20, %c0_21] : memref<4x1xf32, #tpu.memory_space<vmem>>, vector<4x1xf32>
    %30 = vector.broadcast %29 : vector<4x1xf32> to vector<4x512xf32>
    %31 = arith.mulf %28, %30 : vector<4x512xf32>
    %c0_22 = arith.constant 0 : index
    %c0_23 = arith.constant 0 : index
    %32 = vector.load %arg4[%c0_22, %c0_23] : memref<4x1xf32, #tpu.memory_space<vmem>>, vector<4x1xf32>
    %33 = vector.broadcast %32 : vector<4x1xf32> to vector<4x512xf32>
    %34 = arith.addf %31, %33 : vector<4x512xf32>
    %c0_24 = arith.constant 0 : index
    %c0_25 = arith.constant 0 : index
    %35 = vector.load %arg5[%c0_24, %c0_25] : memref<4x512xf32, #tpu.memory_space<vmem>>, vector<4x512xf32>
    %36 = arith.addf %34, %35 : vector<4x512xf32>
    %c0_26 = arith.constant 0 : index
    %c0_27 = arith.constant 0 : index
    %37 = vector.load %arg6[%c0_26, %c0_27] : memref<4x512xf32, #tpu.memory_space<vmem>>, vector<4x512xf32>
    tpu.vector_store %arg6[%c0_26, %c0_27], %36 {strides = array<i32>} : memref<4x512xf32, #tpu.memory_space<vmem>>, vector<4x512xf32>,
    return
  }
  func.func @transform_0(%arg0: i32) -> (i32, i32, i32) {
    %c0_i32 = arith.constant 0 : i32
    %c0_i32_0 = arith.constant 0 : i32
    %c0_i32_1 = arith.constant 0 : i32
    return %c0_i32, %c0_i32_0, %arg0 : i32, i32, i32
  }
  func.func @transform_1(%arg0: i32) -> (i32, i32) {
    %c0_i32 = arith.constant 0 : i32
    %c0_i32_0 = arith.constant 0 : i32
    return %c0_i32, %arg0 : i32, i32
  }
  func.func @transform_2(%arg0: i32) -> (i32, i32) {
    %c0_i32 = arith.constant 0 : i32
    %c0_i32_0 = arith.constant 0 : i32
    %c0_i32_1 = arith.constant 0 : i32
    return %c0_i32, %c0_i32_0 : i32, i32
  }
  func.func @transform_3(%arg0: i32) -> (i32, i32) {
    %c0_i32 = arith.constant 0 : i32
    %c0_i32_0 = arith.constant 0 : i32
    %c0_i32_1 = arith.constant 0 : i32
    return %c0_i32, %c0_i32_0 : i32, i32
  }
  func.func @transform_4(%arg0: i32) -> (i32, i32) {
    %c0_i32 = arith.constant 0 : i32
    %c0_i32_0 = arith.constant 0 : i32
    return %c0_i32, %arg0 : i32, i32
  }
  func.func @transform_5(%arg0: i32) -> (i32, i32) {
    %c0_i32 = arith.constant 0 : i32
    %c0_i32_0 = arith.constant 0 : i32
    return %c0_i32, %arg0 : i32, i32
  }
}

module attributes {stable_mosaic.version = 11 : i64} {
  func.func @_maxpool_bn_kernel(%arg0: i32, %arg1: memref<9x4x512xf32, #tpu.memory_space<vmem>>, %arg2: memref<4x1xf32, #tpu.memory_space<vmem>>, %arg3: memref<4x1xf32, #tpu.memory_space<vmem>>, %arg4: memref<4x512xf32, #tpu.memory_space<vmem>>, %arg5: memref<4x512xf32, #tpu.memory_space<vmem>>) attributes {dimension_semantics = [#tpu.dimension_semantics<parallel>], iteration_bounds = array<i64: 1>, scalar_prefetch = 0 : i64, scratch_operands = 0 : i64, tpu.core_type = #tpu.core_type<tc>, window_params = [{transform_indices = @transform_0, window_bounds = array<i64: 9, 4, 512>}, {pipeline_mode = #tpu.pipeline_mode<synchronous>, transform_indices = @transform_1, window_bounds = array<i64: 4, 1>}, {pipeline_mode = #tpu.pipeline_mode<synchronous>, transform_indices = @transform_2, window_bounds = array<i64: 4, 1>}, {transform_indices = @transform_3, window_bounds = array<i64: 4, 512>}, {transform_indices = @transform_4, window_bounds = array<i64: 4, 512>}]} {
    %c0 = arith.constant 0 : index
    %c0_0 = arith.constant 0 : index
    %c0_1 = arith.constant 0 : index
    %0 = vector.load %arg1[%c0, %c0_0, %c0_1] : memref<9x4x512xf32, #tpu.memory_space<vmem>>, vector<1x4x512xf32>
    %1 = vector.shape_cast %0 : vector<1x4x512xf32> to vector<4x512xf32>
    %c1 = arith.constant 1 : index
    %c0_2 = arith.constant 0 : index
    %c0_3 = arith.constant 0 : index
    %2 = vector.load %arg1[%c1, %c0_2, %c0_3] : memref<9x4x512xf32, #tpu.memory_space<vmem>>, vector<1x4x512xf32>
    %3 = vector.shape_cast %2 : vector<1x4x512xf32> to vector<4x512xf32>
    %4 = arith.maximumf %1, %3 : vector<4x512xf32>
    %c2 = arith.constant 2 : index
    %c0_4 = arith.constant 0 : index
    %c0_5 = arith.constant 0 : index
    %5 = vector.load %arg1[%c2, %c0_4, %c0_5] : memref<9x4x512xf32, #tpu.memory_space<vmem>>, vector<1x4x512xf32>
    %6 = vector.shape_cast %5 : vector<1x4x512xf32> to vector<4x512xf32>
    %7 = arith.maximumf %4, %6 : vector<4x512xf32>
    %c3 = arith.constant 3 : index
    %c0_6 = arith.constant 0 : index
    %c0_7 = arith.constant 0 : index
    %8 = vector.load %arg1[%c3, %c0_6, %c0_7] : memref<9x4x512xf32, #tpu.memory_space<vmem>>, vector<1x4x512xf32>
    %9 = vector.shape_cast %8 : vector<1x4x512xf32> to vector<4x512xf32>
    %10 = arith.maximumf %7, %9 : vector<4x512xf32>
    %c4 = arith.constant 4 : index
    %c0_8 = arith.constant 0 : index
    %c0_9 = arith.constant 0 : index
    %11 = vector.load %arg1[%c4, %c0_8, %c0_9] : memref<9x4x512xf32, #tpu.memory_space<vmem>>, vector<1x4x512xf32>
    %12 = vector.shape_cast %11 : vector<1x4x512xf32> to vector<4x512xf32>
    %13 = arith.maximumf %10, %12 : vector<4x512xf32>
    %c5 = arith.constant 5 : index
    %c0_10 = arith.constant 0 : index
    %c0_11 = arith.constant 0 : index
    %14 = vector.load %arg1[%c5, %c0_10, %c0_11] : memref<9x4x512xf32, #tpu.memory_space<vmem>>, vector<1x4x512xf32>
    %15 = vector.shape_cast %14 : vector<1x4x512xf32> to vector<4x512xf32>
    %16 = arith.maximumf %13, %15 : vector<4x512xf32>
    %c6 = arith.constant 6 : index
    %c0_12 = arith.constant 0 : index
    %c0_13 = arith.constant 0 : index
    %17 = vector.load %arg1[%c6, %c0_12, %c0_13] : memref<9x4x512xf32, #tpu.memory_space<vmem>>, vector<1x4x512xf32>
    %18 = vector.shape_cast %17 : vector<1x4x512xf32> to vector<4x512xf32>
    %19 = arith.maximumf %16, %18 : vector<4x512xf32>
    %c7 = arith.constant 7 : index
    %c0_14 = arith.constant 0 : index
    %c0_15 = arith.constant 0 : index
    %20 = vector.load %arg1[%c7, %c0_14, %c0_15] : memref<9x4x512xf32, #tpu.memory_space<vmem>>, vector<1x4x512xf32>
    %21 = vector.shape_cast %20 : vector<1x4x512xf32> to vector<4x512xf32>
    %22 = arith.maximumf %19, %21 : vector<4x512xf32>
    %c8 = arith.constant 8 : index
    %c0_16 = arith.constant 0 : index
    %c0_17 = arith.constant 0 : index
    %23 = vector.load %arg1[%c8, %c0_16, %c0_17] : memref<9x4x512xf32, #tpu.memory_space<vmem>>, vector<1x4x512xf32>
    %24 = vector.shape_cast %23 : vector<1x4x512xf32> to vector<4x512xf32>
    %25 = arith.maximumf %22, %24 : vector<4x512xf32>
    %c0_18 = arith.constant 0 : index
    %c0_19 = arith.constant 0 : index
    %26 = vector.load %arg2[%c0_18, %c0_19] : memref<4x1xf32, #tpu.memory_space<vmem>>, vector<4x1xf32>
    %27 = vector.broadcast %26 : vector<4x1xf32> to vector<4x512xf32>
    %28 = arith.mulf %25, %27 : vector<4x512xf32>
    %c0_20 = arith.constant 0 : index
    %c0_21 = arith.constant 0 : index
    %29 = vector.load %arg3[%c0_20, %c0_21] : memref<4x1xf32, #tpu.memory_space<vmem>>, vector<4x1xf32>
    %30 = vector.broadcast %29 : vector<4x1xf32> to vector<4x512xf32>
    %31 = arith.addf %28, %30 : vector<4x512xf32>
    %c0_22 = arith.constant 0 : index
    %c0_23 = arith.constant 0 : index
    %32 = vector.load %arg4[%c0_22, %c0_23] : memref<4x512xf32, #tpu.memory_space<vmem>>, vector<4x512xf32>
    %33 = arith.addf %31, %32 : vector<4x512xf32>
    %c0_24 = arith.constant 0 : index
    %c0_25 = arith.constant 0 : index
    %34 = vector.load %arg5[%c0_24, %c0_25] : memref<4x512xf32, #tpu.memory_space<vmem>>, vector<4x512xf32>
    tpu.vector_store %arg5[%c0_24, %c0_25], %33 {strides = array<i32>} : memref<4x512xf32, #tpu.memory_space<vmem>>, vector<4x512xf32>,
    return
  }
  func.func @transform_0(%arg0: i32) -> (i32, i32, i32) {
    %c0_i32 = arith.constant 0 : i32
    %c0_i32_0 = arith.constant 0 : i32
    %c0_i32_1 = arith.constant 0 : i32
    return %c0_i32, %c0_i32_0, %arg0 : i32, i32, i32
  }
  func.func @transform_1(%arg0: i32) -> (i32, i32) {
    %c0_i32 = arith.constant 0 : i32
    %c0_i32_0 = arith.constant 0 : i32
    %c0_i32_1 = arith.constant 0 : i32
    return %c0_i32, %c0_i32_0 : i32, i32
  }
  func.func @transform_2(%arg0: i32) -> (i32, i32) {
    %c0_i32 = arith.constant 0 : i32
    %c0_i32_0 = arith.constant 0 : i32
    %c0_i32_1 = arith.constant 0 : i32
    return %c0_i32, %c0_i32_0 : i32, i32
  }
  func.func @transform_3(%arg0: i32) -> (i32, i32) {
    %c0_i32 = arith.constant 0 : i32
    %c0_i32_0 = arith.constant 0 : i32
    return %c0_i32, %arg0 : i32, i32
  }
  func.func @transform_4(%arg0: i32) -> (i32, i32) {
    %c0_i32 = arith.constant 0 : i32
    %c0_i32_0 = arith.constant 0 : i32
    return %c0_i32, %arg0 : i32, i32
  }
}

module attributes {stable_mosaic.version = 11 : i64} {
  func.func @_mm_bn_kernel(%arg0: i32, %arg1: memref<32x128xf32, #tpu.memory_space<vmem>>, %arg2: memref<16x32xbf16, #tpu.memory_space<vmem>>, %arg3: memref<16x1xf32, #tpu.memory_space<vmem>>, %arg4: memref<16x1xf32, #tpu.memory_space<vmem>>, %arg5: memref<16x128xf32, #tpu.memory_space<vmem>>) attributes {dimension_semantics = [#tpu.dimension_semantics<parallel>], iteration_bounds = array<i64: 1>, scalar_prefetch = 0 : i64, scratch_operands = 0 : i64, tpu.core_type = #tpu.core_type<tc>, window_params = [{transform_indices = @transform_0, window_bounds = array<i64: 32, 128>}, {pipeline_mode = #tpu.pipeline_mode<synchronous>, transform_indices = @transform_1, window_bounds = array<i64: 16, 32>}, {pipeline_mode = #tpu.pipeline_mode<synchronous>, transform_indices = @transform_2, window_bounds = array<i64: 16, 1>}, {pipeline_mode = #tpu.pipeline_mode<synchronous>, transform_indices = @transform_3, window_bounds = array<i64: 16, 1>}, {transform_indices = @transform_4, window_bounds = array<i64: 16, 128>}]} {
    %c0 = arith.constant 0 : index
    %c0_0 = arith.constant 0 : index
    %0 = vector.load %arg1[%c0, %c0_0] : memref<32x128xf32, #tpu.memory_space<vmem>>, vector<32x128xf32>
    %cst = arith.constant 0.000000e+00 : f32
    %1 = vector.broadcast %cst : f32 to vector<32x128xf32>
    %2 = arith.maximumf %0, %1 : vector<32x128xf32>
    %c0_1 = arith.constant 0 : index
    %c0_2 = arith.constant 0 : index
    %3 = vector.load %arg2[%c0_1, %c0_2] : memref<16x32xbf16, #tpu.memory_space<vmem>>, vector<16x32xbf16>
    %4 = arith.truncf %2 : vector<32x128xf32> to vector<32x128xbf16>
    %cst_3 = arith.constant dense<0.000000e+00> : vector<16x128xf32>
    %5 = tpu.matmul %3, %4, %cst_3 {dimension_numbers = #tpu.dot_dimension_numbers<[1], [0], [0], [1], [0, 0, 1, 1], [], []>} : vector<16x32xbf16>, vector<32x128xbf16>, vector<16x128xf32> -> vector<16x128xf32>
    %c0_4 = arith.constant 0 : index
    %c0_5 = arith.constant 0 : index
    %6 = vector.load %arg3[%c0_4, %c0_5] : memref<16x1xf32, #tpu.memory_space<vmem>>, vector<16x1xf32>
    %7 = vector.broadcast %6 : vector<16x1xf32> to vector<16x128xf32>
    %8 = arith.mulf %5, %7 : vector<16x128xf32>
    %c0_6 = arith.constant 0 : index
    %c0_7 = arith.constant 0 : index
    %9 = vector.load %arg4[%c0_6, %c0_7] : memref<16x1xf32, #tpu.memory_space<vmem>>, vector<16x1xf32>
    %10 = vector.broadcast %9 : vector<16x1xf32> to vector<16x128xf32>
    %11 = arith.addf %8, %10 : vector<16x128xf32>
    %c0_8 = arith.constant 0 : index
    %c0_9 = arith.constant 0 : index
    %12 = vector.load %arg5[%c0_8, %c0_9] : memref<16x128xf32, #tpu.memory_space<vmem>>, vector<16x128xf32>
    tpu.vector_store %arg5[%c0_8, %c0_9], %11 {strides = array<i32>} : memref<16x128xf32, #tpu.memory_space<vmem>>, vector<16x128xf32>,
    return
  }
  func.func @transform_0(%arg0: i32) -> (i32, i32) {
    %c0_i32 = arith.constant 0 : i32
    %c0_i32_0 = arith.constant 0 : i32
    return %c0_i32, %arg0 : i32, i32
  }
  func.func @transform_1(%arg0: i32) -> (i32, i32) {
    %c0_i32 = arith.constant 0 : i32
    %c0_i32_0 = arith.constant 0 : i32
    %c0_i32_1 = arith.constant 0 : i32
    return %c0_i32, %c0_i32_0 : i32, i32
  }
  func.func @transform_2(%arg0: i32) -> (i32, i32) {
    %c0_i32 = arith.constant 0 : i32
    %c0_i32_0 = arith.constant 0 : i32
    %c0_i32_1 = arith.constant 0 : i32
    return %c0_i32, %c0_i32_0 : i32, i32
  }
  func.func @transform_3(%arg0: i32) -> (i32, i32) {
    %c0_i32 = arith.constant 0 : i32
    %c0_i32_0 = arith.constant 0 : i32
    %c0_i32_1 = arith.constant 0 : i32
    return %c0_i32, %c0_i32_0 : i32, i32
  }
  func.func @transform_4(%arg0: i32) -> (i32, i32) {
    %c0_i32 = arith.constant 0 : i32
    %c0_i32_0 = arith.constant 0 : i32
    return %c0_i32, %arg0 : i32, i32
  }
}

module attributes {stable_mosaic.version = 11 : i64} {
  func.func @_maxpool_bn_kernel(%arg0: i32, %arg1: memref<9x16x32xf32, #tpu.memory_space<vmem>>, %arg2: memref<16x1xf32, #tpu.memory_space<vmem>>, %arg3: memref<16x1xf32, #tpu.memory_space<vmem>>, %arg4: memref<16x32xf32, #tpu.memory_space<vmem>>) attributes {dimension_semantics = [#tpu.dimension_semantics<parallel>], iteration_bounds = array<i64: 1>, scalar_prefetch = 0 : i64, scratch_operands = 0 : i64, tpu.core_type = #tpu.core_type<tc>, window_params = [{transform_indices = @transform_0, window_bounds = array<i64: 9, 16, 32>}, {pipeline_mode = #tpu.pipeline_mode<synchronous>, transform_indices = @transform_1, window_bounds = array<i64: 16, 1>}, {pipeline_mode = #tpu.pipeline_mode<synchronous>, transform_indices = @transform_2, window_bounds = array<i64: 16, 1>}, {transform_indices = @transform_3, window_bounds = array<i64: 16, 32>}]} {
    %c0 = arith.constant 0 : index
    %c0_0 = arith.constant 0 : index
    %c0_1 = arith.constant 0 : index
    %0 = vector.load %arg1[%c0, %c0_0, %c0_1] : memref<9x16x32xf32, #tpu.memory_space<vmem>>, vector<1x16x32xf32>
    %1 = vector.shape_cast %0 : vector<1x16x32xf32> to vector<16x32xf32>
    %c1 = arith.constant 1 : index
    %c0_2 = arith.constant 0 : index
    %c0_3 = arith.constant 0 : index
    %2 = vector.load %arg1[%c1, %c0_2, %c0_3] : memref<9x16x32xf32, #tpu.memory_space<vmem>>, vector<1x16x32xf32>
    %3 = vector.shape_cast %2 : vector<1x16x32xf32> to vector<16x32xf32>
    %4 = arith.maximumf %1, %3 : vector<16x32xf32>
    %c2 = arith.constant 2 : index
    %c0_4 = arith.constant 0 : index
    %c0_5 = arith.constant 0 : index
    %5 = vector.load %arg1[%c2, %c0_4, %c0_5] : memref<9x16x32xf32, #tpu.memory_space<vmem>>, vector<1x16x32xf32>
    %6 = vector.shape_cast %5 : vector<1x16x32xf32> to vector<16x32xf32>
    %7 = arith.maximumf %4, %6 : vector<16x32xf32>
    %c3 = arith.constant 3 : index
    %c0_6 = arith.constant 0 : index
    %c0_7 = arith.constant 0 : index
    %8 = vector.load %arg1[%c3, %c0_6, %c0_7] : memref<9x16x32xf32, #tpu.memory_space<vmem>>, vector<1x16x32xf32>
    %9 = vector.shape_cast %8 : vector<1x16x32xf32> to vector<16x32xf32>
    %10 = arith.maximumf %7, %9 : vector<16x32xf32>
    %c4 = arith.constant 4 : index
    %c0_8 = arith.constant 0 : index
    %c0_9 = arith.constant 0 : index
    %11 = vector.load %arg1[%c4, %c0_8, %c0_9] : memref<9x16x32xf32, #tpu.memory_space<vmem>>, vector<1x16x32xf32>
    %12 = vector.shape_cast %11 : vector<1x16x32xf32> to vector<16x32xf32>
    %13 = arith.maximumf %10, %12 : vector<16x32xf32>
    %c5 = arith.constant 5 : index
    %c0_10 = arith.constant 0 : index
    %c0_11 = arith.constant 0 : index
    %14 = vector.load %arg1[%c5, %c0_10, %c0_11] : memref<9x16x32xf32, #tpu.memory_space<vmem>>, vector<1x16x32xf32>
    %15 = vector.shape_cast %14 : vector<1x16x32xf32> to vector<16x32xf32>
    %16 = arith.maximumf %13, %15 : vector<16x32xf32>
    %c6 = arith.constant 6 : index
    %c0_12 = arith.constant 0 : index
    %c0_13 = arith.constant 0 : index
    %17 = vector.load %arg1[%c6, %c0_12, %c0_13] : memref<9x16x32xf32, #tpu.memory_space<vmem>>, vector<1x16x32xf32>
    %18 = vector.shape_cast %17 : vector<1x16x32xf32> to vector<16x32xf32>
    %19 = arith.maximumf %16, %18 : vector<16x32xf32>
    %c7 = arith.constant 7 : index
    %c0_14 = arith.constant 0 : index
    %c0_15 = arith.constant 0 : index
    %20 = vector.load %arg1[%c7, %c0_14, %c0_15] : memref<9x16x32xf32, #tpu.memory_space<vmem>>, vector<1x16x32xf32>
    %21 = vector.shape_cast %20 : vector<1x16x32xf32> to vector<16x32xf32>
    %22 = arith.maximumf %19, %21 : vector<16x32xf32>
    %c8 = arith.constant 8 : index
    %c0_16 = arith.constant 0 : index
    %c0_17 = arith.constant 0 : index
    %23 = vector.load %arg1[%c8, %c0_16, %c0_17] : memref<9x16x32xf32, #tpu.memory_space<vmem>>, vector<1x16x32xf32>
    %24 = vector.shape_cast %23 : vector<1x16x32xf32> to vector<16x32xf32>
    %25 = arith.maximumf %22, %24 : vector<16x32xf32>
    %c0_18 = arith.constant 0 : index
    %c0_19 = arith.constant 0 : index
    %26 = vector.load %arg2[%c0_18, %c0_19] : memref<16x1xf32, #tpu.memory_space<vmem>>, vector<16x1xf32>
    %27 = vector.broadcast %26 : vector<16x1xf32> to vector<16x32xf32>
    %28 = arith.mulf %25, %27 : vector<16x32xf32>
    %c0_20 = arith.constant 0 : index
    %c0_21 = arith.constant 0 : index
    %29 = vector.load %arg3[%c0_20, %c0_21] : memref<16x1xf32, #tpu.memory_space<vmem>>, vector<16x1xf32>
    %30 = vector.broadcast %29 : vector<16x1xf32> to vector<16x32xf32>
    %31 = arith.addf %28, %30 : vector<16x32xf32>
    %c0_22 = arith.constant 0 : index
    %c0_23 = arith.constant 0 : index
    %32 = vector.load %arg4[%c0_22, %c0_23] : memref<16x32xf32, #tpu.memory_space<vmem>>, vector<16x32xf32>
    tpu.vector_store %arg4[%c0_22, %c0_23], %31 {strides = array<i32>} : memref<16x32xf32, #tpu.memory_space<vmem>>, vector<16x32xf32>,
    return
  }
  func.func @transform_0(%arg0: i32) -> (i32, i32, i32) {
    %c0_i32 = arith.constant 0 : i32
    %c0_i32_0 = arith.constant 0 : i32
    %c0_i32_1 = arith.constant 0 : i32
    return %c0_i32, %c0_i32_0, %arg0 : i32, i32, i32
  }
  func.func @transform_1(%arg0: i32) -> (i32, i32) {
    %c0_i32 = arith.constant 0 : i32
    %c0_i32_0 = arith.constant 0 : i32
    %c0_i32_1 = arith.constant 0 : i32
    return %c0_i32, %c0_i32_0 : i32, i32
  }
  func.func @transform_2(%arg0: i32) -> (i32, i32) {
    %c0_i32 = arith.constant 0 : i32
    %c0_i32_0 = arith.constant 0 : i32
    %c0_i32_1 = arith.constant 0 : i32
    return %c0_i32, %c0_i32_0 : i32, i32
  }
  func.func @transform_3(%arg0: i32) -> (i32, i32) {
    %c0_i32 = arith.constant 0 : i32
    %c0_i32_0 = arith.constant 0 : i32
    return %c0_i32, %arg0 : i32, i32
  }
}

module attributes {stable_mosaic.version = 11 : i64} {
  func.func @_mm_bn_kernel(%arg0: i32, %arg1: memref<16x512xf32, #tpu.memory_space<vmem>>, %arg2: memref<8x16xbf16, #tpu.memory_space<vmem>>, %arg3: memref<8x1xf32, #tpu.memory_space<vmem>>, %arg4: memref<8x1xf32, #tpu.memory_space<vmem>>, %arg5: memref<8x512xf32, #tpu.memory_space<vmem>>) attributes {dimension_semantics = [#tpu.dimension_semantics<parallel>], iteration_bounds = array<i64: 1>, scalar_prefetch = 0 : i64, scratch_operands = 0 : i64, tpu.core_type = #tpu.core_type<tc>, window_params = [{transform_indices = @transform_0, window_bounds = array<i64: 16, 512>}, {pipeline_mode = #tpu.pipeline_mode<synchronous>, transform_indices = @transform_1, window_bounds = array<i64: 8, 16>}, {pipeline_mode = #tpu.pipeline_mode<synchronous>, transform_indices = @transform_2, window_bounds = array<i64: 8, 1>}, {pipeline_mode = #tpu.pipeline_mode<synchronous>, transform_indices = @transform_3, window_bounds = array<i64: 8, 1>}, {transform_indices = @transform_4, window_bounds = array<i64: 8, 512>}]} {
    %c0 = arith.constant 0 : index
    %c0_0 = arith.constant 0 : index
    %0 = vector.load %arg1[%c0, %c0_0] : memref<16x512xf32, #tpu.memory_space<vmem>>, vector<16x512xf32>
    %cst = arith.constant 0.000000e+00 : f32
    %1 = vector.broadcast %cst : f32 to vector<16x512xf32>
    %2 = arith.maximumf %0, %1 : vector<16x512xf32>
    %c0_1 = arith.constant 0 : index
    %c0_2 = arith.constant 0 : index
    %3 = vector.load %arg2[%c0_1, %c0_2] : memref<8x16xbf16, #tpu.memory_space<vmem>>, vector<8x16xbf16>
    %4 = arith.truncf %2 : vector<16x512xf32> to vector<16x512xbf16>
    %cst_3 = arith.constant dense<0.000000e+00> : vector<8x512xf32>
    %5 = tpu.matmul %3, %4, %cst_3 {dimension_numbers = #tpu.dot_dimension_numbers<[1], [0], [0], [1], [0, 0, 1, 1], [], []>} : vector<8x16xbf16>, vector<16x512xbf16>, vector<8x512xf32> -> vector<8x512xf32>
    %c0_4 = arith.constant 0 : index
    %c0_5 = arith.constant 0 : index
    %6 = vector.load %arg3[%c0_4, %c0_5] : memref<8x1xf32, #tpu.memory_space<vmem>>, vector<8x1xf32>
    %7 = vector.broadcast %6 : vector<8x1xf32> to vector<8x512xf32>
    %8 = arith.mulf %5, %7 : vector<8x512xf32>
    %c0_6 = arith.constant 0 : index
    %c0_7 = arith.constant 0 : index
    %9 = vector.load %arg4[%c0_6, %c0_7] : memref<8x1xf32, #tpu.memory_space<vmem>>, vector<8x1xf32>
    %10 = vector.broadcast %9 : vector<8x1xf32> to vector<8x512xf32>
    %11 = arith.addf %8, %10 : vector<8x512xf32>
    %c0_8 = arith.constant 0 : index
    %c0_9 = arith.constant 0 : index
    %12 = vector.load %arg5[%c0_8, %c0_9] : memref<8x512xf32, #tpu.memory_space<vmem>>, vector<8x512xf32>
    tpu.vector_store %arg5[%c0_8, %c0_9], %11 {strides = array<i32>} : memref<8x512xf32, #tpu.memory_space<vmem>>, vector<8x512xf32>,
    return
  }
  func.func @transform_0(%arg0: i32) -> (i32, i32) {
    %c0_i32 = arith.constant 0 : i32
    %c0_i32_0 = arith.constant 0 : i32
    return %c0_i32, %arg0 : i32, i32
  }
  func.func @transform_1(%arg0: i32) -> (i32, i32) {
    %c0_i32 = arith.constant 0 : i32
    %c0_i32_0 = arith.constant 0 : i32
    %c0_i32_1 = arith.constant 0 : i32
    return %c0_i32, %c0_i32_0 : i32, i32
  }
  func.func @transform_2(%arg0: i32) -> (i32, i32) {
    %c0_i32 = arith.constant 0 : i32
    %c0_i32_0 = arith.constant 0 : i32
    %c0_i32_1 = arith.constant 0 : i32
    return %c0_i32, %c0_i32_0 : i32, i32
  }
  func.func @transform_3(%arg0: i32) -> (i32, i32) {
    %c0_i32 = arith.constant 0 : i32
    %c0_i32_0 = arith.constant 0 : i32
    %c0_i32_1 = arith.constant 0 : i32
    return %c0_i32, %c0_i32_0 : i32, i32
  }
  func.func @transform_4(%arg0: i32) -> (i32, i32) {
    %c0_i32 = arith.constant 0 : i32
    %c0_i32_0 = arith.constant 0 : i32
    return %c0_i32, %arg0 : i32, i32
  }
}

module attributes {stable_mosaic.version = 11 : i64} {
  func.func @_mm_bn_kernel(%arg0: i32, %arg1: memref<72x128xbf16, #tpu.memory_space<vmem>>, %arg2: memref<8x72xbf16, #tpu.memory_space<vmem>>, %arg3: memref<8x1xf32, #tpu.memory_space<vmem>>, %arg4: memref<8x1xf32, #tpu.memory_space<vmem>>, %arg5: memref<8x128xf32, #tpu.memory_space<vmem>>) attributes {dimension_semantics = [#tpu.dimension_semantics<parallel>], iteration_bounds = array<i64: 1>, scalar_prefetch = 0 : i64, scratch_operands = 0 : i64, tpu.core_type = #tpu.core_type<tc>, window_params = [{transform_indices = @transform_0, window_bounds = array<i64: 72, 128>}, {pipeline_mode = #tpu.pipeline_mode<synchronous>, transform_indices = @transform_1, window_bounds = array<i64: 8, 72>}, {pipeline_mode = #tpu.pipeline_mode<synchronous>, transform_indices = @transform_2, window_bounds = array<i64: 8, 1>}, {pipeline_mode = #tpu.pipeline_mode<synchronous>, transform_indices = @transform_3, window_bounds = array<i64: 8, 1>}, {transform_indices = @transform_4, window_bounds = array<i64: 8, 128>}]} {
    %c0 = arith.constant 0 : index
    %c0_0 = arith.constant 0 : index
    %0 = vector.load %arg1[%c0, %c0_0] : memref<72x128xbf16, #tpu.memory_space<vmem>>, vector<72x128xbf16>
    %c0_1 = arith.constant 0 : index
    %c0_2 = arith.constant 0 : index
    %1 = vector.load %arg2[%c0_1, %c0_2] : memref<8x72xbf16, #tpu.memory_space<vmem>>, vector<8x72xbf16>
    %cst = arith.constant dense<0.000000e+00> : vector<8x128xf32>
    %2 = tpu.matmul %1, %0, %cst {dimension_numbers = #tpu.dot_dimension_numbers<[1], [0], [0], [1], [0, 0, 1, 1], [], []>} : vector<8x72xbf16>, vector<72x128xbf16>, vector<8x128xf32> -> vector<8x128xf32>
    %c0_3 = arith.constant 0 : index
    %c0_4 = arith.constant 0 : index
    %3 = vector.load %arg3[%c0_3, %c0_4] : memref<8x1xf32, #tpu.memory_space<vmem>>, vector<8x1xf32>
    %4 = vector.broadcast %3 : vector<8x1xf32> to vector<8x128xf32>
    %5 = arith.mulf %2, %4 : vector<8x128xf32>
    %c0_5 = arith.constant 0 : index
    %c0_6 = arith.constant 0 : index
    %6 = vector.load %arg4[%c0_5, %c0_6] : memref<8x1xf32, #tpu.memory_space<vmem>>, vector<8x1xf32>
    %7 = vector.broadcast %6 : vector<8x1xf32> to vector<8x128xf32>
    %8 = arith.addf %5, %7 : vector<8x128xf32>
    %cst_7 = arith.constant 0.000000e+00 : f32
    %9 = vector.broadcast %cst_7 : f32 to vector<8x128xf32>
    %10 = arith.maximumf %8, %9 : vector<8x128xf32>
    %c0_8 = arith.constant 0 : index
    %c0_9 = arith.constant 0 : index
    %11 = vector.load %arg5[%c0_8, %c0_9] : memref<8x128xf32, #tpu.memory_space<vmem>>, vector<8x128xf32>
    tpu.vector_store %arg5[%c0_8, %c0_9], %10 {strides = array<i32>} : memref<8x128xf32, #tpu.memory_space<vmem>>, vector<8x128xf32>,
    return
  }
  func.func @transform_0(%arg0: i32) -> (i32, i32) {
    %c0_i32 = arith.constant 0 : i32
    %c0_i32_0 = arith.constant 0 : i32
    return %c0_i32, %arg0 : i32, i32
  }
  func.func @transform_1(%arg0: i32) -> (i32, i32) {
    %c0_i32 = arith.constant 0 : i32
    %c0_i32_0 = arith.constant 0 : i32
    %c0_i32_1 = arith.constant 0 : i32
    return %c0_i32, %c0_i32_0 : i32, i32
  }
  func.func @transform_2(%arg0: i32) -> (i32, i32) {
    %c0_i32 = arith.constant 0 : i32
    %c0_i32_0 = arith.constant 0 : i32
    %c0_i32_1 = arith.constant 0 : i32
    return %c0_i32, %c0_i32_0 : i32, i32
  }
  func.func @transform_3(%arg0: i32) -> (i32, i32) {
    %c0_i32 = arith.constant 0 : i32
    %c0_i32_0 = arith.constant 0 : i32
    %c0_i32_1 = arith.constant 0 : i32
    return %c0_i32, %c0_i32_0 : i32, i32
  }
  func.func @transform_4(%arg0: i32) -> (i32, i32) {
    %c0_i32 = arith.constant 0 : i32
    %c0_i32_0 = arith.constant 0 : i32
    return %c0_i32, %arg0 : i32, i32
  }
}

module attributes {stable_mosaic.version = 11 : i64} {
  func.func @_mm_bn_kernel(%arg0: i32, %arg1: memref<12x512xf32, #tpu.memory_space<vmem>>, %arg2: memref<8x12xbf16, #tpu.memory_space<vmem>>, %arg3: memref<8x1xf32, #tpu.memory_space<vmem>>, %arg4: memref<8x1xf32, #tpu.memory_space<vmem>>, %arg5: memref<8x512xf32, #tpu.memory_space<vmem>>) attributes {dimension_semantics = [#tpu.dimension_semantics<parallel>], iteration_bounds = array<i64: 1>, scalar_prefetch = 0 : i64, scratch_operands = 0 : i64, tpu.core_type = #tpu.core_type<tc>, window_params = [{transform_indices = @transform_0, window_bounds = array<i64: 12, 512>}, {pipeline_mode = #tpu.pipeline_mode<synchronous>, transform_indices = @transform_1, window_bounds = array<i64: 8, 12>}, {pipeline_mode = #tpu.pipeline_mode<synchronous>, transform_indices = @transform_2, window_bounds = array<i64: 8, 1>}, {pipeline_mode = #tpu.pipeline_mode<synchronous>, transform_indices = @transform_3, window_bounds = array<i64: 8, 1>}, {transform_indices = @transform_4, window_bounds = array<i64: 8, 512>}]} {
    %c0 = arith.constant 0 : index
    %c0_0 = arith.constant 0 : index
    %0 = vector.load %arg1[%c0, %c0_0] : memref<12x512xf32, #tpu.memory_space<vmem>>, vector<12x512xf32>
    %cst = arith.constant 0.000000e+00 : f32
    %1 = vector.broadcast %cst : f32 to vector<12x512xf32>
    %2 = arith.maximumf %0, %1 : vector<12x512xf32>
    %c0_1 = arith.constant 0 : index
    %c0_2 = arith.constant 0 : index
    %3 = vector.load %arg2[%c0_1, %c0_2] : memref<8x12xbf16, #tpu.memory_space<vmem>>, vector<8x12xbf16>
    %4 = arith.truncf %2 : vector<12x512xf32> to vector<12x512xbf16>
    %cst_3 = arith.constant dense<0.000000e+00> : vector<8x512xf32>
    %5 = tpu.matmul %3, %4, %cst_3 {dimension_numbers = #tpu.dot_dimension_numbers<[1], [0], [0], [1], [0, 0, 1, 1], [], []>} : vector<8x12xbf16>, vector<12x512xbf16>, vector<8x512xf32> -> vector<8x512xf32>
    %c0_4 = arith.constant 0 : index
    %c0_5 = arith.constant 0 : index
    %6 = vector.load %arg3[%c0_4, %c0_5] : memref<8x1xf32, #tpu.memory_space<vmem>>, vector<8x1xf32>
    %7 = vector.broadcast %6 : vector<8x1xf32> to vector<8x512xf32>
    %8 = arith.mulf %5, %7 : vector<8x512xf32>
    %c0_6 = arith.constant 0 : index
    %c0_7 = arith.constant 0 : index
    %9 = vector.load %arg4[%c0_6, %c0_7] : memref<8x1xf32, #tpu.memory_space<vmem>>, vector<8x1xf32>
    %10 = vector.broadcast %9 : vector<8x1xf32> to vector<8x512xf32>
    %11 = arith.addf %8, %10 : vector<8x512xf32>
    %c0_8 = arith.constant 0 : index
    %c0_9 = arith.constant 0 : index
    %12 = vector.load %arg5[%c0_8, %c0_9] : memref<8x512xf32, #tpu.memory_space<vmem>>, vector<8x512xf32>
    tpu.vector_store %arg5[%c0_8, %c0_9], %11 {strides = array<i32>} : memref<8x512xf32, #tpu.memory_space<vmem>>, vector<8x512xf32>,
    return
  }
  func.func @transform_0(%arg0: i32) -> (i32, i32) {
    %c0_i32 = arith.constant 0 : i32
    %c0_i32_0 = arith.constant 0 : i32
    return %c0_i32, %arg0 : i32, i32
  }
  func.func @transform_1(%arg0: i32) -> (i32, i32) {
    %c0_i32 = arith.constant 0 : i32
    %c0_i32_0 = arith.constant 0 : i32
    %c0_i32_1 = arith.constant 0 : i32
    return %c0_i32, %c0_i32_0 : i32, i32
  }
  func.func @transform_2(%arg0: i32) -> (i32, i32) {
    %c0_i32 = arith.constant 0 : i32
    %c0_i32_0 = arith.constant 0 : i32
    %c0_i32_1 = arith.constant 0 : i32
    return %c0_i32, %c0_i32_0 : i32, i32
  }
  func.func @transform_3(%arg0: i32) -> (i32, i32) {
    %c0_i32 = arith.constant 0 : i32
    %c0_i32_0 = arith.constant 0 : i32
    %c0_i32_1 = arith.constant 0 : i32
    return %c0_i32, %c0_i32_0 : i32, i32
  }
  func.func @transform_4(%arg0: i32) -> (i32, i32) {
    %c0_i32 = arith.constant 0 : i32
    %c0_i32_0 = arith.constant 0 : i32
    return %c0_i32, %arg0 : i32, i32
  }
}

module attributes {stable_mosaic.version = 11 : i64} {
  func.func @_maxpool_bn_kernel(%arg0: i32, %arg1: memref<9x8x128xf32, #tpu.memory_space<vmem>>, %arg2: memref<8x1xf32, #tpu.memory_space<vmem>>, %arg3: memref<8x1xf32, #tpu.memory_space<vmem>>, %arg4: memref<8x128xf32, #tpu.memory_space<vmem>>) attributes {dimension_semantics = [#tpu.dimension_semantics<parallel>], iteration_bounds = array<i64: 1>, scalar_prefetch = 0 : i64, scratch_operands = 0 : i64, tpu.core_type = #tpu.core_type<tc>, window_params = [{transform_indices = @transform_0, window_bounds = array<i64: 9, 8, 128>}, {pipeline_mode = #tpu.pipeline_mode<synchronous>, transform_indices = @transform_1, window_bounds = array<i64: 8, 1>}, {pipeline_mode = #tpu.pipeline_mode<synchronous>, transform_indices = @transform_2, window_bounds = array<i64: 8, 1>}, {transform_indices = @transform_3, window_bounds = array<i64: 8, 128>}]} {
    %c0 = arith.constant 0 : index
    %c0_0 = arith.constant 0 : index
    %c0_1 = arith.constant 0 : index
    %0 = vector.load %arg1[%c0, %c0_0, %c0_1] : memref<9x8x128xf32, #tpu.memory_space<vmem>>, vector<1x8x128xf32>
    %1 = vector.shape_cast %0 : vector<1x8x128xf32> to vector<8x128xf32>
    %c1 = arith.constant 1 : index
    %c0_2 = arith.constant 0 : index
    %c0_3 = arith.constant 0 : index
    %2 = vector.load %arg1[%c1, %c0_2, %c0_3] : memref<9x8x128xf32, #tpu.memory_space<vmem>>, vector<1x8x128xf32>
    %3 = vector.shape_cast %2 : vector<1x8x128xf32> to vector<8x128xf32>
    %4 = arith.maximumf %1, %3 : vector<8x128xf32>
    %c2 = arith.constant 2 : index
    %c0_4 = arith.constant 0 : index
    %c0_5 = arith.constant 0 : index
    %5 = vector.load %arg1[%c2, %c0_4, %c0_5] : memref<9x8x128xf32, #tpu.memory_space<vmem>>, vector<1x8x128xf32>
    %6 = vector.shape_cast %5 : vector<1x8x128xf32> to vector<8x128xf32>
    %7 = arith.maximumf %4, %6 : vector<8x128xf32>
    %c3 = arith.constant 3 : index
    %c0_6 = arith.constant 0 : index
    %c0_7 = arith.constant 0 : index
    %8 = vector.load %arg1[%c3, %c0_6, %c0_7] : memref<9x8x128xf32, #tpu.memory_space<vmem>>, vector<1x8x128xf32>
    %9 = vector.shape_cast %8 : vector<1x8x128xf32> to vector<8x128xf32>
    %10 = arith.maximumf %7, %9 : vector<8x128xf32>
    %c4 = arith.constant 4 : index
    %c0_8 = arith.constant 0 : index
    %c0_9 = arith.constant 0 : index
    %11 = vector.load %arg1[%c4, %c0_8, %c0_9] : memref<9x8x128xf32, #tpu.memory_space<vmem>>, vector<1x8x128xf32>
    %12 = vector.shape_cast %11 : vector<1x8x128xf32> to vector<8x128xf32>
    %13 = arith.maximumf %10, %12 : vector<8x128xf32>
    %c5 = arith.constant 5 : index
    %c0_10 = arith.constant 0 : index
    %c0_11 = arith.constant 0 : index
    %14 = vector.load %arg1[%c5, %c0_10, %c0_11] : memref<9x8x128xf32, #tpu.memory_space<vmem>>, vector<1x8x128xf32>
    %15 = vector.shape_cast %14 : vector<1x8x128xf32> to vector<8x128xf32>
    %16 = arith.maximumf %13, %15 : vector<8x128xf32>
    %c6 = arith.constant 6 : index
    %c0_12 = arith.constant 0 : index
    %c0_13 = arith.constant 0 : index
    %17 = vector.load %arg1[%c6, %c0_12, %c0_13] : memref<9x8x128xf32, #tpu.memory_space<vmem>>, vector<1x8x128xf32>
    %18 = vector.shape_cast %17 : vector<1x8x128xf32> to vector<8x128xf32>
    %19 = arith.maximumf %16, %18 : vector<8x128xf32>
    %c7 = arith.constant 7 : index
    %c0_14 = arith.constant 0 : index
    %c0_15 = arith.constant 0 : index
    %20 = vector.load %arg1[%c7, %c0_14, %c0_15] : memref<9x8x128xf32, #tpu.memory_space<vmem>>, vector<1x8x128xf32>
    %21 = vector.shape_cast %20 : vector<1x8x128xf32> to vector<8x128xf32>
    %22 = arith.maximumf %19, %21 : vector<8x128xf32>
    %c8 = arith.constant 8 : index
    %c0_16 = arith.constant 0 : index
    %c0_17 = arith.constant 0 : index
    %23 = vector.load %arg1[%c8, %c0_16, %c0_17] : memref<9x8x128xf32, #tpu.memory_space<vmem>>, vector<1x8x128xf32>
    %24 = vector.shape_cast %23 : vector<1x8x128xf32> to vector<8x128xf32>
    %25 = arith.maximumf %22, %24 : vector<8x128xf32>
    %c0_18 = arith.constant 0 : index
    %c0_19 = arith.constant 0 : index
    %26 = vector.load %arg2[%c0_18, %c0_19] : memref<8x1xf32, #tpu.memory_space<vmem>>, vector<8x1xf32>
    %27 = vector.broadcast %26 : vector<8x1xf32> to vector<8x128xf32>
    %28 = arith.mulf %25, %27 : vector<8x128xf32>
    %c0_20 = arith.constant 0 : index
    %c0_21 = arith.constant 0 : index
    %29 = vector.load %arg3[%c0_20, %c0_21] : memref<8x1xf32, #tpu.memory_space<vmem>>, vector<8x1xf32>
    %30 = vector.broadcast %29 : vector<8x1xf32> to vector<8x128xf32>
    %31 = arith.addf %28, %30 : vector<8x128xf32>
    %c0_22 = arith.constant 0 : index
    %c0_23 = arith.constant 0 : index
    %32 = vector.load %arg4[%c0_22, %c0_23] : memref<8x128xf32, #tpu.memory_space<vmem>>, vector<8x128xf32>
    tpu.vector_store %arg4[%c0_22, %c0_23], %31 {strides = array<i32>} : memref<8x128xf32, #tpu.memory_space<vmem>>, vector<8x128xf32>,
    return
  }
  func.func @transform_0(%arg0: i32) -> (i32, i32, i32) {
    %c0_i32 = arith.constant 0 : i32
    %c0_i32_0 = arith.constant 0 : i32
    %c0_i32_1 = arith.constant 0 : i32
    return %c0_i32, %c0_i32_0, %arg0 : i32, i32, i32
  }
  func.func @transform_1(%arg0: i32) -> (i32, i32) {
    %c0_i32 = arith.constant 0 : i32
    %c0_i32_0 = arith.constant 0 : i32
    %c0_i32_1 = arith.constant 0 : i32
    return %c0_i32, %c0_i32_0 : i32, i32
  }
  func.func @transform_2(%arg0: i32) -> (i32, i32) {
    %c0_i32 = arith.constant 0 : i32
    %c0_i32_0 = arith.constant 0 : i32
    %c0_i32_1 = arith.constant 0 : i32
    return %c0_i32, %c0_i32_0 : i32, i32
  }
  func.func @transform_3(%arg0: i32) -> (i32, i32) {
    %c0_i32 = arith.constant 0 : i32
    %c0_i32_0 = arith.constant 0 : i32
    return %c0_i32, %arg0 : i32, i32
  }
}

module attributes {stable_mosaic.version = 11 : i64} {
  func.func @_mm_bn_kernel(%arg0: i32, %arg1: memref<72x128xbf16, #tpu.memory_space<vmem>>, %arg2: memref<8x72xbf16, #tpu.memory_space<vmem>>, %arg3: memref<8x1xf32, #tpu.memory_space<vmem>>, %arg4: memref<8x1xf32, #tpu.memory_space<vmem>>, %arg5: memref<8x128xf32, #tpu.memory_space<vmem>>, %arg6: memref<8x128xf32, #tpu.memory_space<vmem>>) attributes {dimension_semantics = [#tpu.dimension_semantics<parallel>], iteration_bounds = array<i64: 1>, scalar_prefetch = 0 : i64, scratch_operands = 0 : i64, tpu.core_type = #tpu.core_type<tc>, window_params = [{transform_indices = @transform_0, window_bounds = array<i64: 72, 128>}, {pipeline_mode = #tpu.pipeline_mode<synchronous>, transform_indices = @transform_1, window_bounds = array<i64: 8, 72>}, {pipeline_mode = #tpu.pipeline_mode<synchronous>, transform_indices = @transform_2, window_bounds = array<i64: 8, 1>}, {pipeline_mode = #tpu.pipeline_mode<synchronous>, transform_indices = @transform_3, window_bounds = array<i64: 8, 1>}, {transform_indices = @transform_4, window_bounds = array<i64: 8, 128>}, {transform_indices = @transform_5, window_bounds = array<i64: 8, 128>}]} {
    %c0 = arith.constant 0 : index
    %c0_0 = arith.constant 0 : index
    %0 = vector.load %arg1[%c0, %c0_0] : memref<72x128xbf16, #tpu.memory_space<vmem>>, vector<72x128xbf16>
    %c0_1 = arith.constant 0 : index
    %c0_2 = arith.constant 0 : index
    %1 = vector.load %arg2[%c0_1, %c0_2] : memref<8x72xbf16, #tpu.memory_space<vmem>>, vector<8x72xbf16>
    %cst = arith.constant dense<0.000000e+00> : vector<8x128xf32>
    %2 = tpu.matmul %1, %0, %cst {dimension_numbers = #tpu.dot_dimension_numbers<[1], [0], [0], [1], [0, 0, 1, 1], [], []>} : vector<8x72xbf16>, vector<72x128xbf16>, vector<8x128xf32> -> vector<8x128xf32>
    %c0_3 = arith.constant 0 : index
    %c0_4 = arith.constant 0 : index
    %3 = vector.load %arg3[%c0_3, %c0_4] : memref<8x1xf32, #tpu.memory_space<vmem>>, vector<8x1xf32>
    %4 = vector.broadcast %3 : vector<8x1xf32> to vector<8x128xf32>
    %5 = arith.mulf %2, %4 : vector<8x128xf32>
    %c0_5 = arith.constant 0 : index
    %c0_6 = arith.constant 0 : index
    %6 = vector.load %arg4[%c0_5, %c0_6] : memref<8x1xf32, #tpu.memory_space<vmem>>, vector<8x1xf32>
    %7 = vector.broadcast %6 : vector<8x1xf32> to vector<8x128xf32>
    %8 = arith.addf %5, %7 : vector<8x128xf32>
    %c0_7 = arith.constant 0 : index
    %c0_8 = arith.constant 0 : index
    %9 = vector.load %arg5[%c0_7, %c0_8] : memref<8x128xf32, #tpu.memory_space<vmem>>, vector<8x128xf32>
    %10 = arith.addf %8, %9 : vector<8x128xf32>
    %c0_9 = arith.constant 0 : index
    %c0_10 = arith.constant 0 : index
    %11 = vector.load %arg6[%c0_9, %c0_10] : memref<8x128xf32, #tpu.memory_space<vmem>>, vector<8x128xf32>
    tpu.vector_store %arg6[%c0_9, %c0_10], %10 {strides = array<i32>} : memref<8x128xf32, #tpu.memory_space<vmem>>, vector<8x128xf32>,
    return
  }
  func.func @transform_0(%arg0: i32) -> (i32, i32) {
    %c0_i32 = arith.constant 0 : i32
    %c0_i32_0 = arith.constant 0 : i32
    return %c0_i32, %arg0 : i32, i32
  }
  func.func @transform_1(%arg0: i32) -> (i32, i32) {
    %c0_i32 = arith.constant 0 : i32
    %c0_i32_0 = arith.constant 0 : i32
    %c0_i32_1 = arith.constant 0 : i32
    return %c0_i32, %c0_i32_0 : i32, i32
  }
  func.func @transform_2(%arg0: i32) -> (i32, i32) {
    %c0_i32 = arith.constant 0 : i32
    %c0_i32_0 = arith.constant 0 : i32
    %c0_i32_1 = arith.constant 0 : i32
    return %c0_i32, %c0_i32_0 : i32, i32
  }
  func.func @transform_3(%arg0: i32) -> (i32, i32) {
    %c0_i32 = arith.constant 0 : i32
    %c0_i32_0 = arith.constant 0 : i32
    %c0_i32_1 = arith.constant 0 : i32
    return %c0_i32, %c0_i32_0 : i32, i32
  }
  func.func @transform_4(%arg0: i32) -> (i32, i32) {
    %c0_i32 = arith.constant 0 : i32
    %c0_i32_0 = arith.constant 0 : i32
    return %c0_i32, %arg0 : i32, i32
  }
  func.func @transform_5(%arg0: i32) -> (i32, i32) {
    %c0_i32 = arith.constant 0 : i32
    %c0_i32_0 = arith.constant 0 : i32
    return %c0_i32, %arg0 : i32, i32
  }
}

module attributes {stable_mosaic.version = 11 : i64} {
  func.func @_maxpool_bn_kernel(%arg0: i32, %arg1: memref<9x8x128xf32, #tpu.memory_space<vmem>>, %arg2: memref<8x1xf32, #tpu.memory_space<vmem>>, %arg3: memref<8x1xf32, #tpu.memory_space<vmem>>, %arg4: memref<8x128xf32, #tpu.memory_space<vmem>>, %arg5: memref<8x128xf32, #tpu.memory_space<vmem>>) attributes {dimension_semantics = [#tpu.dimension_semantics<parallel>], iteration_bounds = array<i64: 1>, scalar_prefetch = 0 : i64, scratch_operands = 0 : i64, tpu.core_type = #tpu.core_type<tc>, window_params = [{transform_indices = @transform_0, window_bounds = array<i64: 9, 8, 128>}, {pipeline_mode = #tpu.pipeline_mode<synchronous>, transform_indices = @transform_1, window_bounds = array<i64: 8, 1>}, {pipeline_mode = #tpu.pipeline_mode<synchronous>, transform_indices = @transform_2, window_bounds = array<i64: 8, 1>}, {transform_indices = @transform_3, window_bounds = array<i64: 8, 128>}, {transform_indices = @transform_4, window_bounds = array<i64: 8, 128>}]} {
    %c0 = arith.constant 0 : index
    %c0_0 = arith.constant 0 : index
    %c0_1 = arith.constant 0 : index
    %0 = vector.load %arg1[%c0, %c0_0, %c0_1] : memref<9x8x128xf32, #tpu.memory_space<vmem>>, vector<1x8x128xf32>
    %1 = vector.shape_cast %0 : vector<1x8x128xf32> to vector<8x128xf32>
    %c1 = arith.constant 1 : index
    %c0_2 = arith.constant 0 : index
    %c0_3 = arith.constant 0 : index
    %2 = vector.load %arg1[%c1, %c0_2, %c0_3] : memref<9x8x128xf32, #tpu.memory_space<vmem>>, vector<1x8x128xf32>
    %3 = vector.shape_cast %2 : vector<1x8x128xf32> to vector<8x128xf32>
    %4 = arith.maximumf %1, %3 : vector<8x128xf32>
    %c2 = arith.constant 2 : index
    %c0_4 = arith.constant 0 : index
    %c0_5 = arith.constant 0 : index
    %5 = vector.load %arg1[%c2, %c0_4, %c0_5] : memref<9x8x128xf32, #tpu.memory_space<vmem>>, vector<1x8x128xf32>
    %6 = vector.shape_cast %5 : vector<1x8x128xf32> to vector<8x128xf32>
    %7 = arith.maximumf %4, %6 : vector<8x128xf32>
    %c3 = arith.constant 3 : index
    %c0_6 = arith.constant 0 : index
    %c0_7 = arith.constant 0 : index
    %8 = vector.load %arg1[%c3, %c0_6, %c0_7] : memref<9x8x128xf32, #tpu.memory_space<vmem>>, vector<1x8x128xf32>
    %9 = vector.shape_cast %8 : vector<1x8x128xf32> to vector<8x128xf32>
    %10 = arith.maximumf %7, %9 : vector<8x128xf32>
    %c4 = arith.constant 4 : index
    %c0_8 = arith.constant 0 : index
    %c0_9 = arith.constant 0 : index
    %11 = vector.load %arg1[%c4, %c0_8, %c0_9] : memref<9x8x128xf32, #tpu.memory_space<vmem>>, vector<1x8x128xf32>
    %12 = vector.shape_cast %11 : vector<1x8x128xf32> to vector<8x128xf32>
    %13 = arith.maximumf %10, %12 : vector<8x128xf32>
    %c5 = arith.constant 5 : index
    %c0_10 = arith.constant 0 : index
    %c0_11 = arith.constant 0 : index
    %14 = vector.load %arg1[%c5, %c0_10, %c0_11] : memref<9x8x128xf32, #tpu.memory_space<vmem>>, vector<1x8x128xf32>
    %15 = vector.shape_cast %14 : vector<1x8x128xf32> to vector<8x128xf32>
    %16 = arith.maximumf %13, %15 : vector<8x128xf32>
    %c6 = arith.constant 6 : index
    %c0_12 = arith.constant 0 : index
    %c0_13 = arith.constant 0 : index
    %17 = vector.load %arg1[%c6, %c0_12, %c0_13] : memref<9x8x128xf32, #tpu.memory_space<vmem>>, vector<1x8x128xf32>
    %18 = vector.shape_cast %17 : vector<1x8x128xf32> to vector<8x128xf32>
    %19 = arith.maximumf %16, %18 : vector<8x128xf32>
    %c7 = arith.constant 7 : index
    %c0_14 = arith.constant 0 : index
    %c0_15 = arith.constant 0 : index
    %20 = vector.load %arg1[%c7, %c0_14, %c0_15] : memref<9x8x128xf32, #tpu.memory_space<vmem>>, vector<1x8x128xf32>
    %21 = vector.shape_cast %20 : vector<1x8x128xf32> to vector<8x128xf32>
    %22 = arith.maximumf %19, %21 : vector<8x128xf32>
    %c8 = arith.constant 8 : index
    %c0_16 = arith.constant 0 : index
    %c0_17 = arith.constant 0 : index
    %23 = vector.load %arg1[%c8, %c0_16, %c0_17] : memref<9x8x128xf32, #tpu.memory_space<vmem>>, vector<1x8x128xf32>
    %24 = vector.shape_cast %23 : vector<1x8x128xf32> to vector<8x128xf32>
    %25 = arith.maximumf %22, %24 : vector<8x128xf32>
    %c0_18 = arith.constant 0 : index
    %c0_19 = arith.constant 0 : index
    %26 = vector.load %arg2[%c0_18, %c0_19] : memref<8x1xf32, #tpu.memory_space<vmem>>, vector<8x1xf32>
    %27 = vector.broadcast %26 : vector<8x1xf32> to vector<8x128xf32>
    %28 = arith.mulf %25, %27 : vector<8x128xf32>
    %c0_20 = arith.constant 0 : index
    %c0_21 = arith.constant 0 : index
    %29 = vector.load %arg3[%c0_20, %c0_21] : memref<8x1xf32, #tpu.memory_space<vmem>>, vector<8x1xf32>
    %30 = vector.broadcast %29 : vector<8x1xf32> to vector<8x128xf32>
    %31 = arith.addf %28, %30 : vector<8x128xf32>
    %c0_22 = arith.constant 0 : index
    %c0_23 = arith.constant 0 : index
    %32 = vector.load %arg4[%c0_22, %c0_23] : memref<8x128xf32, #tpu.memory_space<vmem>>, vector<8x128xf32>
    %33 = arith.addf %31, %32 : vector<8x128xf32>
    %c0_24 = arith.constant 0 : index
    %c0_25 = arith.constant 0 : index
    %34 = vector.load %arg5[%c0_24, %c0_25] : memref<8x128xf32, #tpu.memory_space<vmem>>, vector<8x128xf32>
    tpu.vector_store %arg5[%c0_24, %c0_25], %33 {strides = array<i32>} : memref<8x128xf32, #tpu.memory_space<vmem>>, vector<8x128xf32>,
    return
  }
  func.func @transform_0(%arg0: i32) -> (i32, i32, i32) {
    %c0_i32 = arith.constant 0 : i32
    %c0_i32_0 = arith.constant 0 : i32
    %c0_i32_1 = arith.constant 0 : i32
    return %c0_i32, %c0_i32_0, %arg0 : i32, i32, i32
  }
  func.func @transform_1(%arg0: i32) -> (i32, i32) {
    %c0_i32 = arith.constant 0 : i32
    %c0_i32_0 = arith.constant 0 : i32
    %c0_i32_1 = arith.constant 0 : i32
    return %c0_i32, %c0_i32_0 : i32, i32
  }
  func.func @transform_2(%arg0: i32) -> (i32, i32) {
    %c0_i32 = arith.constant 0 : i32
    %c0_i32_0 = arith.constant 0 : i32
    %c0_i32_1 = arith.constant 0 : i32
    return %c0_i32, %c0_i32_0 : i32, i32
  }
  func.func @transform_3(%arg0: i32) -> (i32, i32) {
    %c0_i32 = arith.constant 0 : i32
    %c0_i32_0 = arith.constant 0 : i32
    return %c0_i32, %arg0 : i32, i32
  }
  func.func @transform_4(%arg0: i32) -> (i32, i32) {
    %c0_i32 = arith.constant 0 : i32
    %c0_i32_0 = arith.constant 0 : i32
    return %c0_i32, %arg0 : i32, i32
  }
}

module attributes {stable_mosaic.version = 11 : i64} {
  func.func @_avgpool_bn_kernel(%arg0: i32, %arg1: memref<9x8x128xf32, #tpu.memory_space<vmem>>, %arg2: memref<1x128xf32, #tpu.memory_space<vmem>>, %arg3: memref<8x1xf32, #tpu.memory_space<vmem>>, %arg4: memref<8x1xf32, #tpu.memory_space<vmem>>, %arg5: memref<8x128xf32, #tpu.memory_space<vmem>>, %arg6: memref<8x128xf32, #tpu.memory_space<vmem>>) attributes {dimension_semantics = [#tpu.dimension_semantics<parallel>], iteration_bounds = array<i64: 1>, scalar_prefetch = 0 : i64, scratch_operands = 0 : i64, tpu.core_type = #tpu.core_type<tc>, window_params = [{transform_indices = @transform_0, window_bounds = array<i64: 9, 8, 128>}, {transform_indices = @transform_1, window_bounds = array<i64: 1, 128>}, {pipeline_mode = #tpu.pipeline_mode<synchronous>, transform_indices = @transform_2, window_bounds = array<i64: 8, 1>}, {pipeline_mode = #tpu.pipeline_mode<synchronous>, transform_indices = @transform_3, window_bounds = array<i64: 8, 1>}, {transform_indices = @transform_4, window_bounds = array<i64: 8, 128>}, {transform_indices = @transform_5, window_bounds = array<i64: 8, 128>}]} {
    %c0 = arith.constant 0 : index
    %c0_0 = arith.constant 0 : index
    %c0_1 = arith.constant 0 : index
    %0 = vector.load %arg1[%c0, %c0_0, %c0_1] : memref<9x8x128xf32, #tpu.memory_space<vmem>>, vector<1x8x128xf32>
    %1 = vector.shape_cast %0 : vector<1x8x128xf32> to vector<8x128xf32>
    %c1 = arith.constant 1 : index
    %c0_2 = arith.constant 0 : index
    %c0_3 = arith.constant 0 : index
    %2 = vector.load %arg1[%c1, %c0_2, %c0_3] : memref<9x8x128xf32, #tpu.memory_space<vmem>>, vector<1x8x128xf32>
    %3 = vector.shape_cast %2 : vector<1x8x128xf32> to vector<8x128xf32>
    %4 = arith.addf %1, %3 : vector<8x128xf32>
    %c2 = arith.constant 2 : index
    %c0_4 = arith.constant 0 : index
    %c0_5 = arith.constant 0 : index
    %5 = vector.load %arg1[%c2, %c0_4, %c0_5] : memref<9x8x128xf32, #tpu.memory_space<vmem>>, vector<1x8x128xf32>
    %6 = vector.shape_cast %5 : vector<1x8x128xf32> to vector<8x128xf32>
    %7 = arith.addf %4, %6 : vector<8x128xf32>
    %c3 = arith.constant 3 : index
    %c0_6 = arith.constant 0 : index
    %c0_7 = arith.constant 0 : index
    %8 = vector.load %arg1[%c3, %c0_6, %c0_7] : memref<9x8x128xf32, #tpu.memory_space<vmem>>, vector<1x8x128xf32>
    %9 = vector.shape_cast %8 : vector<1x8x128xf32> to vector<8x128xf32>
    %10 = arith.addf %7, %9 : vector<8x128xf32>
    %c4 = arith.constant 4 : index
    %c0_8 = arith.constant 0 : index
    %c0_9 = arith.constant 0 : index
    %11 = vector.load %arg1[%c4, %c0_8, %c0_9] : memref<9x8x128xf32, #tpu.memory_space<vmem>>, vector<1x8x128xf32>
    %12 = vector.shape_cast %11 : vector<1x8x128xf32> to vector<8x128xf32>
    %13 = arith.addf %10, %12 : vector<8x128xf32>
    %c5 = arith.constant 5 : index
    %c0_10 = arith.constant 0 : index
    %c0_11 = arith.constant 0 : index
    %14 = vector.load %arg1[%c5, %c0_10, %c0_11] : memref<9x8x128xf32, #tpu.memory_space<vmem>>, vector<1x8x128xf32>
    %15 = vector.shape_cast %14 : vector<1x8x128xf32> to vector<8x128xf32>
    %16 = arith.addf %13, %15 : vector<8x128xf32>
    %c6 = arith.constant 6 : index
    %c0_12 = arith.constant 0 : index
    %c0_13 = arith.constant 0 : index
    %17 = vector.load %arg1[%c6, %c0_12, %c0_13] : memref<9x8x128xf32, #tpu.memory_space<vmem>>, vector<1x8x128xf32>
    %18 = vector.shape_cast %17 : vector<1x8x128xf32> to vector<8x128xf32>
    %19 = arith.addf %16, %18 : vector<8x128xf32>
    %c7 = arith.constant 7 : index
    %c0_14 = arith.constant 0 : index
    %c0_15 = arith.constant 0 : index
    %20 = vector.load %arg1[%c7, %c0_14, %c0_15] : memref<9x8x128xf32, #tpu.memory_space<vmem>>, vector<1x8x128xf32>
    %21 = vector.shape_cast %20 : vector<1x8x128xf32> to vector<8x128xf32>
    %22 = arith.addf %19, %21 : vector<8x128xf32>
    %c8 = arith.constant 8 : index
    %c0_16 = arith.constant 0 : index
    %c0_17 = arith.constant 0 : index
    %23 = vector.load %arg1[%c8, %c0_16, %c0_17] : memref<9x8x128xf32, #tpu.memory_space<vmem>>, vector<1x8x128xf32>
    %24 = vector.shape_cast %23 : vector<1x8x128xf32> to vector<8x128xf32>
    %25 = arith.addf %22, %24 : vector<8x128xf32>
    %c0_18 = arith.constant 0 : index
    %c0_19 = arith.constant 0 : index
    %26 = vector.load %arg2[%c0_18, %c0_19] : memref<1x128xf32, #tpu.memory_space<vmem>>, vector<1x128xf32>
    %27 = vector.broadcast %26 : vector<1x128xf32> to vector<8x128xf32>
    %28 = arith.mulf %25, %27 : vector<8x128xf32>
    %c0_20 = arith.constant 0 : index
    %c0_21 = arith.constant 0 : index
    %29 = vector.load %arg3[%c0_20, %c0_21] : memref<8x1xf32, #tpu.memory_space<vmem>>, vector<8x1xf32>
    %30 = vector.broadcast %29 : vector<8x1xf32> to vector<8x128xf32>
    %31 = arith.mulf %28, %30 : vector<8x128xf32>
    %c0_22 = arith.constant 0 : index
    %c0_23 = arith.constant 0 : index
    %32 = vector.load %arg4[%c0_22, %c0_23] : memref<8x1xf32, #tpu.memory_space<vmem>>, vector<8x1xf32>
    %33 = vector.broadcast %32 : vector<8x1xf32> to vector<8x128xf32>
    %34 = arith.addf %31, %33 : vector<8x128xf32>
    %c0_24 = arith.constant 0 : index
    %c0_25 = arith.constant 0 : index
    %35 = vector.load %arg5[%c0_24, %c0_25] : memref<8x128xf32, #tpu.memory_space<vmem>>, vector<8x128xf32>
    %36 = arith.addf %34, %35 : vector<8x128xf32>
    %c0_26 = arith.constant 0 : index
    %c0_27 = arith.constant 0 : index
    %37 = vector.load %arg6[%c0_26, %c0_27] : memref<8x128xf32, #tpu.memory_space<vmem>>, vector<8x128xf32>
    tpu.vector_store %arg6[%c0_26, %c0_27], %36 {strides = array<i32>} : memref<8x128xf32, #tpu.memory_space<vmem>>, vector<8x128xf32>,
    return
  }
  func.func @transform_0(%arg0: i32) -> (i32, i32, i32) {
    %c0_i32 = arith.constant 0 : i32
    %c0_i32_0 = arith.constant 0 : i32
    %c0_i32_1 = arith.constant 0 : i32
    return %c0_i32, %c0_i32_0, %arg0 : i32, i32, i32
  }
  func.func @transform_1(%arg0: i32) -> (i32, i32) {
    %c0_i32 = arith.constant 0 : i32
    %c0_i32_0 = arith.constant 0 : i32
    return %c0_i32, %arg0 : i32, i32
  }
  func.func @transform_2(%arg0: i32) -> (i32, i32) {
    %c0_i32 = arith.constant 0 : i32
    %c0_i32_0 = arith.constant 0 : i32
    %c0_i32_1 = arith.constant 0 : i32
    return %c0_i32, %c0_i32_0 : i32, i32
  }
  func.func @transform_3(%arg0: i32) -> (i32, i32) {
    %c0_i32 = arith.constant 0 : i32
    %c0_i32_0 = arith.constant 0 : i32
    %c0_i32_1 = arith.constant 0 : i32
    return %c0_i32, %c0_i32_0 : i32, i32
  }
  func.func @transform_4(%arg0: i32) -> (i32, i32) {
    %c0_i32 = arith.constant 0 : i32
    %c0_i32_0 = arith.constant 0 : i32
    return %c0_i32, %arg0 : i32, i32
  }
  func.func @transform_5(%arg0: i32) -> (i32, i32) {
    %c0_i32 = arith.constant 0 : i32
    %c0_i32_0 = arith.constant 0 : i32
    return %c0_i32, %arg0 : i32, i32
  }
}

module attributes {stable_mosaic.version = 11 : i64} {
  func.func @_mm_bn_kernel(%arg0: i32, %arg1: memref<144x32xbf16, #tpu.memory_space<vmem>>, %arg2: memref<16x144xbf16, #tpu.memory_space<vmem>>, %arg3: memref<16x1xf32, #tpu.memory_space<vmem>>, %arg4: memref<16x1xf32, #tpu.memory_space<vmem>>, %arg5: memref<16x32xf32, #tpu.memory_space<vmem>>) attributes {dimension_semantics = [#tpu.dimension_semantics<parallel>], iteration_bounds = array<i64: 1>, scalar_prefetch = 0 : i64, scratch_operands = 0 : i64, tpu.core_type = #tpu.core_type<tc>, window_params = [{transform_indices = @transform_0, window_bounds = array<i64: 144, 32>}, {pipeline_mode = #tpu.pipeline_mode<synchronous>, transform_indices = @transform_1, window_bounds = array<i64: 16, 144>}, {pipeline_mode = #tpu.pipeline_mode<synchronous>, transform_indices = @transform_2, window_bounds = array<i64: 16, 1>}, {pipeline_mode = #tpu.pipeline_mode<synchronous>, transform_indices = @transform_3, window_bounds = array<i64: 16, 1>}, {transform_indices = @transform_4, window_bounds = array<i64: 16, 32>}]} {
    %c0 = arith.constant 0 : index
    %c0_0 = arith.constant 0 : index
    %0 = vector.load %arg1[%c0, %c0_0] : memref<144x32xbf16, #tpu.memory_space<vmem>>, vector<144x32xbf16>
    %c0_1 = arith.constant 0 : index
    %c0_2 = arith.constant 0 : index
    %1 = vector.load %arg2[%c0_1, %c0_2] : memref<16x144xbf16, #tpu.memory_space<vmem>>, vector<16x144xbf16>
    %cst = arith.constant dense<0.000000e+00> : vector<16x32xf32>
    %2 = tpu.matmul %1, %0, %cst {dimension_numbers = #tpu.dot_dimension_numbers<[1], [0], [0], [1], [0, 0, 1, 1], [], []>} : vector<16x144xbf16>, vector<144x32xbf16>, vector<16x32xf32> -> vector<16x32xf32>
    %c0_3 = arith.constant 0 : index
    %c0_4 = arith.constant 0 : index
    %3 = vector.load %arg3[%c0_3, %c0_4] : memref<16x1xf32, #tpu.memory_space<vmem>>, vector<16x1xf32>
    %4 = vector.broadcast %3 : vector<16x1xf32> to vector<16x32xf32>
    %5 = arith.mulf %2, %4 : vector<16x32xf32>
    %c0_5 = arith.constant 0 : index
    %c0_6 = arith.constant 0 : index
    %6 = vector.load %arg4[%c0_5, %c0_6] : memref<16x1xf32, #tpu.memory_space<vmem>>, vector<16x1xf32>
    %7 = vector.broadcast %6 : vector<16x1xf32> to vector<16x32xf32>
    %8 = arith.addf %5, %7 : vector<16x32xf32>
    %cst_7 = arith.constant 0.000000e+00 : f32
    %9 = vector.broadcast %cst_7 : f32 to vector<16x32xf32>
    %10 = arith.maximumf %8, %9 : vector<16x32xf32>
    %c0_8 = arith.constant 0 : index
    %c0_9 = arith.constant 0 : index
    %11 = vector.load %arg5[%c0_8, %c0_9] : memref<16x32xf32, #tpu.memory_space<vmem>>, vector<16x32xf32>
    tpu.vector_store %arg5[%c0_8, %c0_9], %10 {strides = array<i32>} : memref<16x32xf32, #tpu.memory_space<vmem>>, vector<16x32xf32>,
    return
  }
  func.func @transform_0(%arg0: i32) -> (i32, i32) {
    %c0_i32 = arith.constant 0 : i32
    %c0_i32_0 = arith.constant 0 : i32
    return %c0_i32, %arg0 : i32, i32
  }
  func.func @transform_1(%arg0: i32) -> (i32, i32) {
    %c0_i32 = arith.constant 0 : i32
    %c0_i32_0 = arith.constant 0 : i32
    %c0_i32_1 = arith.constant 0 : i32
    return %c0_i32, %c0_i32_0 : i32, i32
  }
  func.func @transform_2(%arg0: i32) -> (i32, i32) {
    %c0_i32 = arith.constant 0 : i32
    %c0_i32_0 = arith.constant 0 : i32
    %c0_i32_1 = arith.constant 0 : i32
    return %c0_i32, %c0_i32_0 : i32, i32
  }
  func.func @transform_3(%arg0: i32) -> (i32, i32) {
    %c0_i32 = arith.constant 0 : i32
    %c0_i32_0 = arith.constant 0 : i32
    %c0_i32_1 = arith.constant 0 : i32
    return %c0_i32, %c0_i32_0 : i32, i32
  }
  func.func @transform_4(%arg0: i32) -> (i32, i32) {
    %c0_i32 = arith.constant 0 : i32
    %c0_i32_0 = arith.constant 0 : i32
    return %c0_i32, %arg0 : i32, i32
  }
}

module attributes {stable_mosaic.version = 11 : i64} {
  func.func @_mm_bn_kernel(%arg0: i32, %arg1: memref<144x32xbf16, #tpu.memory_space<vmem>>, %arg2: memref<16x144xbf16, #tpu.memory_space<vmem>>, %arg3: memref<16x1xf32, #tpu.memory_space<vmem>>, %arg4: memref<16x1xf32, #tpu.memory_space<vmem>>, %arg5: memref<16x32xf32, #tpu.memory_space<vmem>>, %arg6: memref<16x32xf32, #tpu.memory_space<vmem>>) attributes {dimension_semantics = [#tpu.dimension_semantics<parallel>], iteration_bounds = array<i64: 1>, scalar_prefetch = 0 : i64, scratch_operands = 0 : i64, tpu.core_type = #tpu.core_type<tc>, window_params = [{transform_indices = @transform_0, window_bounds = array<i64: 144, 32>}, {pipeline_mode = #tpu.pipeline_mode<synchronous>, transform_indices = @transform_1, window_bounds = array<i64: 16, 144>}, {pipeline_mode = #tpu.pipeline_mode<synchronous>, transform_indices = @transform_2, window_bounds = array<i64: 16, 1>}, {pipeline_mode = #tpu.pipeline_mode<synchronous>, transform_indices = @transform_3, window_bounds = array<i64: 16, 1>}, {transform_indices = @transform_4, window_bounds = array<i64: 16, 32>}, {transform_indices = @transform_5, window_bounds = array<i64: 16, 32>}]} {
    %c0 = arith.constant 0 : index
    %c0_0 = arith.constant 0 : index
    %0 = vector.load %arg1[%c0, %c0_0] : memref<144x32xbf16, #tpu.memory_space<vmem>>, vector<144x32xbf16>
    %c0_1 = arith.constant 0 : index
    %c0_2 = arith.constant 0 : index
    %1 = vector.load %arg2[%c0_1, %c0_2] : memref<16x144xbf16, #tpu.memory_space<vmem>>, vector<16x144xbf16>
    %cst = arith.constant dense<0.000000e+00> : vector<16x32xf32>
    %2 = tpu.matmul %1, %0, %cst {dimension_numbers = #tpu.dot_dimension_numbers<[1], [0], [0], [1], [0, 0, 1, 1], [], []>} : vector<16x144xbf16>, vector<144x32xbf16>, vector<16x32xf32> -> vector<16x32xf32>
    %c0_3 = arith.constant 0 : index
    %c0_4 = arith.constant 0 : index
    %3 = vector.load %arg3[%c0_3, %c0_4] : memref<16x1xf32, #tpu.memory_space<vmem>>, vector<16x1xf32>
    %4 = vector.broadcast %3 : vector<16x1xf32> to vector<16x32xf32>
    %5 = arith.mulf %2, %4 : vector<16x32xf32>
    %c0_5 = arith.constant 0 : index
    %c0_6 = arith.constant 0 : index
    %6 = vector.load %arg4[%c0_5, %c0_6] : memref<16x1xf32, #tpu.memory_space<vmem>>, vector<16x1xf32>
    %7 = vector.broadcast %6 : vector<16x1xf32> to vector<16x32xf32>
    %8 = arith.addf %5, %7 : vector<16x32xf32>
    %c0_7 = arith.constant 0 : index
    %c0_8 = arith.constant 0 : index
    %9 = vector.load %arg5[%c0_7, %c0_8] : memref<16x32xf32, #tpu.memory_space<vmem>>, vector<16x32xf32>
    %10 = arith.addf %8, %9 : vector<16x32xf32>
    %c0_9 = arith.constant 0 : index
    %c0_10 = arith.constant 0 : index
    %11 = vector.load %arg6[%c0_9, %c0_10] : memref<16x32xf32, #tpu.memory_space<vmem>>, vector<16x32xf32>
    tpu.vector_store %arg6[%c0_9, %c0_10], %10 {strides = array<i32>} : memref<16x32xf32, #tpu.memory_space<vmem>>, vector<16x32xf32>,
    return
  }
  func.func @transform_0(%arg0: i32) -> (i32, i32) {
    %c0_i32 = arith.constant 0 : i32
    %c0_i32_0 = arith.constant 0 : i32
    return %c0_i32, %arg0 : i32, i32
  }
  func.func @transform_1(%arg0: i32) -> (i32, i32) {
    %c0_i32 = arith.constant 0 : i32
    %c0_i32_0 = arith.constant 0 : i32
    %c0_i32_1 = arith.constant 0 : i32
    return %c0_i32, %c0_i32_0 : i32, i32
  }
  func.func @transform_2(%arg0: i32) -> (i32, i32) {
    %c0_i32 = arith.constant 0 : i32
    %c0_i32_0 = arith.constant 0 : i32
    %c0_i32_1 = arith.constant 0 : i32
    return %c0_i32, %c0_i32_0 : i32, i32
  }
  func.func @transform_3(%arg0: i32) -> (i32, i32) {
    %c0_i32 = arith.constant 0 : i32
    %c0_i32_0 = arith.constant 0 : i32
    %c0_i32_1 = arith.constant 0 : i32
    return %c0_i32, %c0_i32_0 : i32, i32
  }
  func.func @transform_4(%arg0: i32) -> (i32, i32) {
    %c0_i32 = arith.constant 0 : i32
    %c0_i32_0 = arith.constant 0 : i32
    return %c0_i32, %arg0 : i32, i32
  }
  func.func @transform_5(%arg0: i32) -> (i32, i32) {
    %c0_i32 = arith.constant 0 : i32
    %c0_i32_0 = arith.constant 0 : i32
    return %c0_i32, %arg0 : i32, i32
  }
}

module attributes {stable_mosaic.version = 11 : i64} {
  func.func @_maxpool_bn_kernel(%arg0: i32, %arg1: memref<9x16x32xf32, #tpu.memory_space<vmem>>, %arg2: memref<16x1xf32, #tpu.memory_space<vmem>>, %arg3: memref<16x1xf32, #tpu.memory_space<vmem>>, %arg4: memref<16x32xf32, #tpu.memory_space<vmem>>, %arg5: memref<16x32xf32, #tpu.memory_space<vmem>>) attributes {dimension_semantics = [#tpu.dimension_semantics<parallel>], iteration_bounds = array<i64: 1>, scalar_prefetch = 0 : i64, scratch_operands = 0 : i64, tpu.core_type = #tpu.core_type<tc>, window_params = [{transform_indices = @transform_0, window_bounds = array<i64: 9, 16, 32>}, {pipeline_mode = #tpu.pipeline_mode<synchronous>, transform_indices = @transform_1, window_bounds = array<i64: 16, 1>}, {pipeline_mode = #tpu.pipeline_mode<synchronous>, transform_indices = @transform_2, window_bounds = array<i64: 16, 1>}, {transform_indices = @transform_3, window_bounds = array<i64: 16, 32>}, {transform_indices = @transform_4, window_bounds = array<i64: 16, 32>}]} {
    %c0 = arith.constant 0 : index
    %c0_0 = arith.constant 0 : index
    %c0_1 = arith.constant 0 : index
    %0 = vector.load %arg1[%c0, %c0_0, %c0_1] : memref<9x16x32xf32, #tpu.memory_space<vmem>>, vector<1x16x32xf32>
    %1 = vector.shape_cast %0 : vector<1x16x32xf32> to vector<16x32xf32>
    %c1 = arith.constant 1 : index
    %c0_2 = arith.constant 0 : index
    %c0_3 = arith.constant 0 : index
    %2 = vector.load %arg1[%c1, %c0_2, %c0_3] : memref<9x16x32xf32, #tpu.memory_space<vmem>>, vector<1x16x32xf32>
    %3 = vector.shape_cast %2 : vector<1x16x32xf32> to vector<16x32xf32>
    %4 = arith.maximumf %1, %3 : vector<16x32xf32>
    %c2 = arith.constant 2 : index
    %c0_4 = arith.constant 0 : index
    %c0_5 = arith.constant 0 : index
    %5 = vector.load %arg1[%c2, %c0_4, %c0_5] : memref<9x16x32xf32, #tpu.memory_space<vmem>>, vector<1x16x32xf32>
    %6 = vector.shape_cast %5 : vector<1x16x32xf32> to vector<16x32xf32>
    %7 = arith.maximumf %4, %6 : vector<16x32xf32>
    %c3 = arith.constant 3 : index
    %c0_6 = arith.constant 0 : index
    %c0_7 = arith.constant 0 : index
    %8 = vector.load %arg1[%c3, %c0_6, %c0_7] : memref<9x16x32xf32, #tpu.memory_space<vmem>>, vector<1x16x32xf32>
    %9 = vector.shape_cast %8 : vector<1x16x32xf32> to vector<16x32xf32>
    %10 = arith.maximumf %7, %9 : vector<16x32xf32>
    %c4 = arith.constant 4 : index
    %c0_8 = arith.constant 0 : index
    %c0_9 = arith.constant 0 : index
    %11 = vector.load %arg1[%c4, %c0_8, %c0_9] : memref<9x16x32xf32, #tpu.memory_space<vmem>>, vector<1x16x32xf32>
    %12 = vector.shape_cast %11 : vector<1x16x32xf32> to vector<16x32xf32>
    %13 = arith.maximumf %10, %12 : vector<16x32xf32>
    %c5 = arith.constant 5 : index
    %c0_10 = arith.constant 0 : index
    %c0_11 = arith.constant 0 : index
    %14 = vector.load %arg1[%c5, %c0_10, %c0_11] : memref<9x16x32xf32, #tpu.memory_space<vmem>>, vector<1x16x32xf32>
    %15 = vector.shape_cast %14 : vector<1x16x32xf32> to vector<16x32xf32>
    %16 = arith.maximumf %13, %15 : vector<16x32xf32>
    %c6 = arith.constant 6 : index
    %c0_12 = arith.constant 0 : index
    %c0_13 = arith.constant 0 : index
    %17 = vector.load %arg1[%c6, %c0_12, %c0_13] : memref<9x16x32xf32, #tpu.memory_space<vmem>>, vector<1x16x32xf32>
    %18 = vector.shape_cast %17 : vector<1x16x32xf32> to vector<16x32xf32>
    %19 = arith.maximumf %16, %18 : vector<16x32xf32>
    %c7 = arith.constant 7 : index
    %c0_14 = arith.constant 0 : index
    %c0_15 = arith.constant 0 : index
    %20 = vector.load %arg1[%c7, %c0_14, %c0_15] : memref<9x16x32xf32, #tpu.memory_space<vmem>>, vector<1x16x32xf32>
    %21 = vector.shape_cast %20 : vector<1x16x32xf32> to vector<16x32xf32>
    %22 = arith.maximumf %19, %21 : vector<16x32xf32>
    %c8 = arith.constant 8 : index
    %c0_16 = arith.constant 0 : index
    %c0_17 = arith.constant 0 : index
    %23 = vector.load %arg1[%c8, %c0_16, %c0_17] : memref<9x16x32xf32, #tpu.memory_space<vmem>>, vector<1x16x32xf32>
    %24 = vector.shape_cast %23 : vector<1x16x32xf32> to vector<16x32xf32>
    %25 = arith.maximumf %22, %24 : vector<16x32xf32>
    %c0_18 = arith.constant 0 : index
    %c0_19 = arith.constant 0 : index
    %26 = vector.load %arg2[%c0_18, %c0_19] : memref<16x1xf32, #tpu.memory_space<vmem>>, vector<16x1xf32>
    %27 = vector.broadcast %26 : vector<16x1xf32> to vector<16x32xf32>
    %28 = arith.mulf %25, %27 : vector<16x32xf32>
    %c0_20 = arith.constant 0 : index
    %c0_21 = arith.constant 0 : index
    %29 = vector.load %arg3[%c0_20, %c0_21] : memref<16x1xf32, #tpu.memory_space<vmem>>, vector<16x1xf32>
    %30 = vector.broadcast %29 : vector<16x1xf32> to vector<16x32xf32>
    %31 = arith.addf %28, %30 : vector<16x32xf32>
    %c0_22 = arith.constant 0 : index
    %c0_23 = arith.constant 0 : index
    %32 = vector.load %arg4[%c0_22, %c0_23] : memref<16x32xf32, #tpu.memory_space<vmem>>, vector<16x32xf32>
    %33 = arith.addf %31, %32 : vector<16x32xf32>
    %c0_24 = arith.constant 0 : index
    %c0_25 = arith.constant 0 : index
    %34 = vector.load %arg5[%c0_24, %c0_25] : memref<16x32xf32, #tpu.memory_space<vmem>>, vector<16x32xf32>
    tpu.vector_store %arg5[%c0_24, %c0_25], %33 {strides = array<i32>} : memref<16x32xf32, #tpu.memory_space<vmem>>, vector<16x32xf32>,
    return
  }
  func.func @transform_0(%arg0: i32) -> (i32, i32, i32) {
    %c0_i32 = arith.constant 0 : i32
    %c0_i32_0 = arith.constant 0 : i32
    %c0_i32_1 = arith.constant 0 : i32
    return %c0_i32, %c0_i32_0, %arg0 : i32, i32, i32
  }
  func.func @transform_1(%arg0: i32) -> (i32, i32) {
    %c0_i32 = arith.constant 0 : i32
    %c0_i32_0 = arith.constant 0 : i32
    %c0_i32_1 = arith.constant 0 : i32
    return %c0_i32, %c0_i32_0 : i32, i32
  }
  func.func @transform_2(%arg0: i32) -> (i32, i32) {
    %c0_i32 = arith.constant 0 : i32
    %c0_i32_0 = arith.constant 0 : i32
    %c0_i32_1 = arith.constant 0 : i32
    return %c0_i32, %c0_i32_0 : i32, i32
  }
  func.func @transform_3(%arg0: i32) -> (i32, i32) {
    %c0_i32 = arith.constant 0 : i32
    %c0_i32_0 = arith.constant 0 : i32
    return %c0_i32, %arg0 : i32, i32
  }
  func.func @transform_4(%arg0: i32) -> (i32, i32) {
    %c0_i32 = arith.constant 0 : i32
    %c0_i32_0 = arith.constant 0 : i32
    return %c0_i32, %arg0 : i32, i32
  }
}

module attributes {stable_mosaic.version = 11 : i64} {
  func.func @_avgpool_bn_kernel(%arg0: i32, %arg1: memref<9x16x32xf32, #tpu.memory_space<vmem>>, %arg2: memref<1x32xf32, #tpu.memory_space<vmem>>, %arg3: memref<16x1xf32, #tpu.memory_space<vmem>>, %arg4: memref<16x1xf32, #tpu.memory_space<vmem>>, %arg5: memref<16x32xf32, #tpu.memory_space<vmem>>, %arg6: memref<16x32xf32, #tpu.memory_space<vmem>>) attributes {dimension_semantics = [#tpu.dimension_semantics<parallel>], iteration_bounds = array<i64: 1>, scalar_prefetch = 0 : i64, scratch_operands = 0 : i64, tpu.core_type = #tpu.core_type<tc>, window_params = [{transform_indices = @transform_0, window_bounds = array<i64: 9, 16, 32>}, {transform_indices = @transform_1, window_bounds = array<i64: 1, 32>}, {pipeline_mode = #tpu.pipeline_mode<synchronous>, transform_indices = @transform_2, window_bounds = array<i64: 16, 1>}, {pipeline_mode = #tpu.pipeline_mode<synchronous>, transform_indices = @transform_3, window_bounds = array<i64: 16, 1>}, {transform_indices = @transform_4, window_bounds = array<i64: 16, 32>}, {transform_indices = @transform_5, window_bounds = array<i64: 16, 32>}]} {
    %c0 = arith.constant 0 : index
    %c0_0 = arith.constant 0 : index
    %c0_1 = arith.constant 0 : index
    %0 = vector.load %arg1[%c0, %c0_0, %c0_1] : memref<9x16x32xf32, #tpu.memory_space<vmem>>, vector<1x16x32xf32>
    %1 = vector.shape_cast %0 : vector<1x16x32xf32> to vector<16x32xf32>
    %c1 = arith.constant 1 : index
    %c0_2 = arith.constant 0 : index
    %c0_3 = arith.constant 0 : index
    %2 = vector.load %arg1[%c1, %c0_2, %c0_3] : memref<9x16x32xf32, #tpu.memory_space<vmem>>, vector<1x16x32xf32>
    %3 = vector.shape_cast %2 : vector<1x16x32xf32> to vector<16x32xf32>
    %4 = arith.addf %1, %3 : vector<16x32xf32>
    %c2 = arith.constant 2 : index
    %c0_4 = arith.constant 0 : index
    %c0_5 = arith.constant 0 : index
    %5 = vector.load %arg1[%c2, %c0_4, %c0_5] : memref<9x16x32xf32, #tpu.memory_space<vmem>>, vector<1x16x32xf32>
    %6 = vector.shape_cast %5 : vector<1x16x32xf32> to vector<16x32xf32>
    %7 = arith.addf %4, %6 : vector<16x32xf32>
    %c3 = arith.constant 3 : index
    %c0_6 = arith.constant 0 : index
    %c0_7 = arith.constant 0 : index
    %8 = vector.load %arg1[%c3, %c0_6, %c0_7] : memref<9x16x32xf32, #tpu.memory_space<vmem>>, vector<1x16x32xf32>
    %9 = vector.shape_cast %8 : vector<1x16x32xf32> to vector<16x32xf32>
    %10 = arith.addf %7, %9 : vector<16x32xf32>
    %c4 = arith.constant 4 : index
    %c0_8 = arith.constant 0 : index
    %c0_9 = arith.constant 0 : index
    %11 = vector.load %arg1[%c4, %c0_8, %c0_9] : memref<9x16x32xf32, #tpu.memory_space<vmem>>, vector<1x16x32xf32>
    %12 = vector.shape_cast %11 : vector<1x16x32xf32> to vector<16x32xf32>
    %13 = arith.addf %10, %12 : vector<16x32xf32>
    %c5 = arith.constant 5 : index
    %c0_10 = arith.constant 0 : index
    %c0_11 = arith.constant 0 : index
    %14 = vector.load %arg1[%c5, %c0_10, %c0_11] : memref<9x16x32xf32, #tpu.memory_space<vmem>>, vector<1x16x32xf32>
    %15 = vector.shape_cast %14 : vector<1x16x32xf32> to vector<16x32xf32>
    %16 = arith.addf %13, %15 : vector<16x32xf32>
    %c6 = arith.constant 6 : index
    %c0_12 = arith.constant 0 : index
    %c0_13 = arith.constant 0 : index
    %17 = vector.load %arg1[%c6, %c0_12, %c0_13] : memref<9x16x32xf32, #tpu.memory_space<vmem>>, vector<1x16x32xf32>
    %18 = vector.shape_cast %17 : vector<1x16x32xf32> to vector<16x32xf32>
    %19 = arith.addf %16, %18 : vector<16x32xf32>
    %c7 = arith.constant 7 : index
    %c0_14 = arith.constant 0 : index
    %c0_15 = arith.constant 0 : index
    %20 = vector.load %arg1[%c7, %c0_14, %c0_15] : memref<9x16x32xf32, #tpu.memory_space<vmem>>, vector<1x16x32xf32>
    %21 = vector.shape_cast %20 : vector<1x16x32xf32> to vector<16x32xf32>
    %22 = arith.addf %19, %21 : vector<16x32xf32>
    %c8 = arith.constant 8 : index
    %c0_16 = arith.constant 0 : index
    %c0_17 = arith.constant 0 : index
    %23 = vector.load %arg1[%c8, %c0_16, %c0_17] : memref<9x16x32xf32, #tpu.memory_space<vmem>>, vector<1x16x32xf32>
    %24 = vector.shape_cast %23 : vector<1x16x32xf32> to vector<16x32xf32>
    %25 = arith.addf %22, %24 : vector<16x32xf32>
    %c0_18 = arith.constant 0 : index
    %c0_19 = arith.constant 0 : index
    %26 = vector.load %arg2[%c0_18, %c0_19] : memref<1x32xf32, #tpu.memory_space<vmem>>, vector<1x32xf32>
    %27 = vector.broadcast %26 : vector<1x32xf32> to vector<16x32xf32>
    %28 = arith.mulf %25, %27 : vector<16x32xf32>
    %c0_20 = arith.constant 0 : index
    %c0_21 = arith.constant 0 : index
    %29 = vector.load %arg3[%c0_20, %c0_21] : memref<16x1xf32, #tpu.memory_space<vmem>>, vector<16x1xf32>
    %30 = vector.broadcast %29 : vector<16x1xf32> to vector<16x32xf32>
    %31 = arith.mulf %28, %30 : vector<16x32xf32>
    %c0_22 = arith.constant 0 : index
    %c0_23 = arith.constant 0 : index
    %32 = vector.load %arg4[%c0_22, %c0_23] : memref<16x1xf32, #tpu.memory_space<vmem>>, vector<16x1xf32>
    %33 = vector.broadcast %32 : vector<16x1xf32> to vector<16x32xf32>
    %34 = arith.addf %31, %33 : vector<16x32xf32>
    %c0_24 = arith.constant 0 : index
    %c0_25 = arith.constant 0 : index
    %35 = vector.load %arg5[%c0_24, %c0_25] : memref<16x32xf32, #tpu.memory_space<vmem>>, vector<16x32xf32>
    %36 = arith.addf %34, %35 : vector<16x32xf32>
    %c0_26 = arith.constant 0 : index
    %c0_27 = arith.constant 0 : index
    %37 = vector.load %arg6[%c0_26, %c0_27] : memref<16x32xf32, #tpu.memory_space<vmem>>, vector<16x32xf32>
    tpu.vector_store %arg6[%c0_26, %c0_27], %36 {strides = array<i32>} : memref<16x32xf32, #tpu.memory_space<vmem>>, vector<16x32xf32>,
    return
  }
  func.func @transform_0(%arg0: i32) -> (i32, i32, i32) {
    %c0_i32 = arith.constant 0 : i32
    %c0_i32_0 = arith.constant 0 : i32
    %c0_i32_1 = arith.constant 0 : i32
    return %c0_i32, %c0_i32_0, %arg0 : i32, i32, i32
  }
  func.func @transform_1(%arg0: i32) -> (i32, i32) {
    %c0_i32 = arith.constant 0 : i32
    %c0_i32_0 = arith.constant 0 : i32
    return %c0_i32, %arg0 : i32, i32
  }
  func.func @transform_2(%arg0: i32) -> (i32, i32) {
    %c0_i32 = arith.constant 0 : i32
    %c0_i32_0 = arith.constant 0 : i32
    %c0_i32_1 = arith.constant 0 : i32
    return %c0_i32, %c0_i32_0 : i32, i32
  }
  func.func @transform_3(%arg0: i32) -> (i32, i32) {
    %c0_i32 = arith.constant 0 : i32
    %c0_i32_0 = arith.constant 0 : i32
    %c0_i32_1 = arith.constant 0 : i32
    return %c0_i32, %c0_i32_0 : i32, i32
  }
  func.func @transform_4(%arg0: i32) -> (i32, i32) {
    %c0_i32 = arith.constant 0 : i32
    %c0_i32_0 = arith.constant 0 : i32
    return %c0_i32, %arg0 : i32, i32
  }
  func.func @transform_5(%arg0: i32) -> (i32, i32) {
    %c0_i32 = arith.constant 0 : i32
    %c0_i32_0 = arith.constant 0 : i32
    return %c0_i32, %arg0 : i32, i32
  }
}

module attributes {stable_mosaic.version = 11 : i64} {
  func.func @_tail_kernel(%arg0: memref<64x2x16xf32, #tpu.memory_space<vmem>>, %arg1: memref<64x64xbf16, #tpu.memory_space<vmem>>, %arg2: memref<64x1xf32, #tpu.memory_space<vmem>>, %arg3: memref<128x64xbf16, #tpu.memory_space<vmem>>, %arg4: memref<128x1xf32, #tpu.memory_space<vmem>>, %arg5: memref<128x2xf32, #tpu.memory_space<vmem>>) attributes {dimension_semantics = [], scalar_prefetch = 0 : i64, scratch_operands = 0 : i64, tpu.core_type = #tpu.core_type<tc>} {
    %c0 = arith.constant 0 : index
    %c0_0 = arith.constant 0 : index
    %c0_1 = arith.constant 0 : index
    %0 = vector.load %arg0[%c0, %c0_0, %c0_1] : memref<64x2x16xf32, #tpu.memory_space<vmem>>, vector<64x2x16xf32>
    %cst = arith.constant dense<0.000000e+00> : vector<64x2xf32>
    %1 = vector.multi_reduction <add>, %0, %cst [2] : vector<64x2x16xf32> to vector<64x2xf32>
    %cst_2 = arith.constant 6.250000e-02 : f32
    %2 = vector.broadcast %cst_2 : f32 to vector<64x2xf32>
    %3 = arith.mulf %1, %2 : vector<64x2xf32>
    %c0_3 = arith.constant 0 : index
    %c0_4 = arith.constant 0 : index
    %4 = vector.load %arg1[%c0_3, %c0_4] : memref<64x64xbf16, #tpu.memory_space<vmem>>, vector<64x64xbf16>
    %5 = arith.truncf %3 : vector<64x2xf32> to vector<64x2xbf16>
    %cst_5 = arith.constant dense<0.000000e+00> : vector<64x2xf32>
    %6 = tpu.matmul %4, %5, %cst_5 {dimension_numbers = #tpu.dot_dimension_numbers<[1], [0], [0], [1], [0, 0, 1, 1], [], []>} : vector<64x64xbf16>, vector<64x2xbf16>, vector<64x2xf32> -> vector<64x2xf32>
    %c0_6 = arith.constant 0 : index
    %c0_7 = arith.constant 0 : index
    %7 = vector.load %arg2[%c0_6, %c0_7] : memref<64x1xf32, #tpu.memory_space<vmem>>, vector<64x1xf32>
    %8 = vector.broadcast %7 : vector<64x1xf32> to vector<64x2xf32>
    %9 = arith.addf %6, %8 : vector<64x2xf32>
    %cst_8 = arith.constant 0.000000e+00 : f32
    %10 = vector.broadcast %cst_8 : f32 to vector<64x2xf32>
    %11 = arith.maximumf %9, %10 : vector<64x2xf32>
    %c0_9 = arith.constant 0 : index
    %c0_10 = arith.constant 0 : index
    %12 = vector.load %arg3[%c0_9, %c0_10] : memref<128x64xbf16, #tpu.memory_space<vmem>>, vector<128x64xbf16>
    %13 = arith.truncf %11 : vector<64x2xf32> to vector<64x2xbf16>
    %cst_11 = arith.constant dense<0.000000e+00> : vector<128x2xf32>
    %14 = tpu.matmul %12, %13, %cst_11 {dimension_numbers = #tpu.dot_dimension_numbers<[1], [0], [0], [1], [0, 0, 1, 1], [], []>} : vector<128x64xbf16>, vector<64x2xbf16>, vector<128x2xf32> -> vector<128x2xf32>
    %c0_12 = arith.constant 0 : index
    %c0_13 = arith.constant 0 : index
    %15 = vector.load %arg4[%c0_12, %c0_13] : memref<128x1xf32, #tpu.memory_space<vmem>>, vector<128x1xf32>
    %16 = vector.broadcast %15 : vector<128x1xf32> to vector<128x2xf32>
    %17 = arith.addf %14, %16 : vector<128x2xf32>
    %c0_14 = arith.constant 0 : index
    %c0_15 = arith.constant 0 : index
    %18 = vector.load %arg5[%c0_14, %c0_15] : memref<128x2xf32, #tpu.memory_space<vmem>>, vector<128x2xf32>
    tpu.vector_store %arg5[%c0_14, %c0_15], %17 {strides = array<i32>} : memref<128x2xf32, #tpu.memory_space<vmem>>, vector<128x2xf32>,
    return
  }
}

</mosaic_0001>

<bundles_post_ra>
// kernel: _lambda_.28
= control target key start
LH: loop header
LB: loop body
LE: loop exit
PB: predicated region body
PF: predicated region fallthrough
CT: control target
= control target key end

     0   :  { %vm73_vm0 = vcmask 1044480   ;;  %vm74_vm1 = vcmask 1045504   ;;  %v255_v1 = vmov 65535   ;;  %v256_v3 = vmov 0   ;;  %s345_s0 = inlined_call_operand.vmem [shape: bf16[27,512], index: 0, kind: input, shape index: {}]   ;;  %s346_s2 = inlined_call_operand.vmem [shape: f32[12,1], index: 2, kind: input, shape index: {}]   ;;  %s347_s3 = inlined_call_operand.vmem [shape: f32[12,1], index: 3, kind: input, shape index: {}]   ;;  %s348_s1 = inlined_call_operand.vmem [shape: bf16[12,27], index: 1, kind: input, shape index: {}]   ;;  %s349_s4 = inlined_call_operand.vmem [shape: f32[12,512], index: 4, kind: output, shape index: {}]  }
   0x1   :  { %v242_v0 = vld [vmem:[%s345_s0 + $0x4] ss:$16 sps:$4 sm:$0xff]   ;;  %v75_v2 = vsel %vm73_vm0, 4294967295, %v255_v1  ;;  %121 = vmatprep.mubr.bf16.mxu0 %v256_v3  ;;  %164 = vmatprep.mubr.bf16.mxu1 %v256_v3  ;;  %v244_v4 = vld [vmem:[%s345_s0 + $0xc] ss:$16 sps:$4 sm:$0xff]   ;;  %vm69_vm2 = vcmask 220160  }
   0x2   :  { %240 = vset.pattern.permute.xlu0 %v256_v3  ;;  %241 = vset.pattern.permute.xlu1 %v256_v3  ;;  %v246_v5 = vld [vmem:[%s345_s0] ss:$16 sps:$4 sm:$0xff]   ;;  %v247_v6 = vld [vmem:[%s345_s0 + $0x8] ss:$16 sps:$4 sm:$0xff]   ;;  %v76_v7 = vsel %vm74_vm1, %v75_v2, 0 }
   0x3   :  { %89 = vmatprep.subr.bf16.mxu0 %v242_v0  ;;  %132 = vmatprep.subr.bf16.mxu1 %v244_v4  ;;  %v248_v8 = vld [vmem:[%s345_s0 + $0x24] ss:$16 sps:$4 sm:$0x3f]   ;;  %v250_v9 = vld [vmem:[%s345_s0 + $0x2c] ss:$16 sps:$4 sm:$0x3f]  }
   0x4   :  { %90 = vmatpush1.bf16.msra.mxu0 %v246_v5  ;;  %133 = vmatpush1.bf16.msra.mxu1 %v247_v6  ;;  %v175_v10 = vld [vmem:[%s346_s2] sm:$0xff]  ;;  %v81_v11 = vand.u32 %v248_v8, %v76_v7  ;;  %v253_v13 = vld [vmem:[%s345_s0 + $0x28] ss:$16 sps:$4 sm:$0x3f]   ;;  %v87_v14 = vand.u32 %v250_v9, %v76_v7 }
   0x5   :  { %v252_v12 = vld [vmem:[%s345_s0 + $0x20] ss:$16 sps:$4 sm:$0x3f]   ;;  %179 = vperm.xlu0 %240, %v175_v10   ;;  %v84_v16 = vand.u32 %v253_v13, %v76_v7  ;;  %v176_v18 = vld [vmem:[%s346_s2 + $0x8] sm:$0xf] }
   0x6   :  { %91 = vmatprep.subr.bf16.mxu0 %v81_v11  ;;  %v78_v15 = vand.u32 %v252_v12, %v76_v7  ;;  %v195_v17 = vld [vmem:[%s347_s3] sm:$0xff]  ;;  %134 = vmatprep.subr.bf16.mxu1 %v87_v14  ;;  %v196_v20 = vld [vmem:[%s347_s3 + $0x8] sm:$0xf] }
   0x7   :  { %v254_v19 = vld [vmem:[%s348_s1] sm:$0x3f]   ;;  %199 = vperm.xlu1 %241, %v195_v17  }
   0x8   :  { %92 = vmatpush1.bf16.msra.mxu0 %v78_v15  ;;  %135 = vmatpush1.bf16.msra.mxu1 %v84_v16 }
   0x9   :  { %184 = vperm.xlu0 %240, %v176_v18  }
   0xb   :  { %236 = vmatmul.mubr.msk.bf16.vlgmr.msra.gmra.mrb[0].mxu0 %vm69_vm2, %v254_v19  ;;  %237 = vmatmul.mubr.msk.bf16.vlgmr.msra.gmra.mrb[0].mxu1 %vm69_vm2, %v254_v19 }
   0xc   :  { %204 = vperm.xlu1 %241, %v196_v20  }
  0x84   :  { %v180_v21 = vpop.permute.xlu0 %179 }
  0x86   :  { %v200_v22 = vpop.permute.xlu1 %199 }
  0x88   :  { %v185_v23 = vpop.permute.xlu0 %184 }
  0x8b   :  { %v205_v40 = vpop.permute.xlu1 %204 }
  0xde   :  { %v123_v24 = vpop.f32.mrb[0].mxu0  ;;  %v166_v25 = vpop.f32.mrb[0].mxu1 }
  0xdf   :  { %v187_v26 = vmul.f32 %v180_v21, %v123_v24  ;;  %v189_v27 = vmul.f32 %v180_v21, %v166_v25  ;;  %v125_v28 = vpop.f32.mrb[1].mxu0  ;;  %v168_v29 = vpop.f32.mrb[1].mxu1 }
  0xe0   :  { %v188_v30 = vmul.f32 %v180_v21, %v125_v28  ;;  %v190_v31 = vmul.f32 %v180_v21, %v168_v29  ;;  %v127_v32 = vpop.f32.mrb[2].mxu0  ;;  %v170_v33 = vpop.f32.mrb[2].mxu1 }
  0xe1   :  { %v207_v34 = vadd.f32 %v200_v22, %v187_v26  ;;  %v209_v35 = vadd.f32 %v200_v22, %v189_v27  ;;  %v191_v36 = vmul.f32 %v185_v23, %v127_v32  ;;  %v193_v37 = vmul.f32 %v185_v23, %v170_v33  ;;  %v129_v38 = vpop.f32.mrb[3].mxu0  ;;  %v172_v39 = vpop.f32.mrb[3].mxu1 }
  0xe2   :  { %v208_v41 = vadd.f32 %v200_v22, %v188_v30  ;;  %v210_v42 = vadd.f32 %v200_v22, %v190_v31  ;;  %v192_v43 = vmul.f32 %v185_v23, %v129_v38  ;;  %v194_v44 = vmul.f32 %v185_v23, %v172_v39 }
  0xe3   :  { %215 = vst [vmem:[%s349_s4] sm:$0xff] %v207_v34  ;;  %217 = vst [vmem:[%s349_s4 + $0x10] sm:$0xff] %v209_v35  ;;  %v211_v45 = vadd.f32 %v205_v40, %v191_v36  ;;  %v213_v46 = vadd.f32 %v205_v40, %v193_v37 }
  0xe4   :  { %216 = vst [vmem:[%s349_s4 + $0x8] sm:$0xff] %v208_v41  ;;  %218 = vst [vmem:[%s349_s4 + $0x18] sm:$0xff] %v210_v42  ;;  %v212_v47 = vadd.f32 %v205_v40, %v192_v43  ;;  %v214_v48 = vadd.f32 %v205_v40, %v194_v44 }
  0xe5   :  { %219 = vst [vmem:[%s349_s4 + $0x20] sm:$0xf] %v211_v45  ;;  %221 = vst [vmem:[%s349_s4 + $0x30] sm:$0xf] %v213_v46 }
  0xe6   :  { %220 = vst [vmem:[%s349_s4 + $0x28] sm:$0xf] %v212_v47  ;;  %222 = vst [vmem:[%s349_s4 + $0x38] sm:$0xf] %v214_v48 }

// kernel: _lambda_.29
= control target key start
LH: loop header
LB: loop body
LE: loop exit
PB: predicated region body
PF: predicated region fallthrough
CT: control target
= control target key end

     0   :  { %v178_v3 = vmov 0   ;;  %vm43_vm0 = vcmask 1045504   ;;  %vm39_vm1 = vcmask 97280   ;;  %s247_s0 = inlined_call_operand.vmem [shape: f32[12,512], index: 0, kind: input, shape index: {}]   ;;  %s248_s2 = inlined_call_operand.vmem [shape: f32[4,1], index: 2, kind: input, shape index: {}]   ;;  %s249_s3 = inlined_call_operand.vmem [shape: f32[4,1], index: 3, kind: input, shape index: {}]   ;;  %s250_s1 = inlined_call_operand.vmem [shape: bf16[4,12], index: 1, kind: input, shape index: {}]   ;;  %s251_s4 = inlined_call_operand.vmem [shape: f32[4,512], index: 4, kind: output, shape index: {}]  }
   0x1   :  { %v19_v0 = vld [vmem:[%s247_s0 + $0x8] sm:$0xff]  ;;  %v21_v2 = vld [vmem:[%s247_s0 + $0x18] sm:$0xff]  ;;  %88 = vmatprep.mubr.bf16.mxu0 %v178_v3  ;;  %129 = vmatprep.mubr.bf16.mxu1 %v178_v3  ;;  %v18_v8 = vld [vmem:[%s247_s0] sm:$0xff] }
   0x2   :  { %v23_v1 = vld [vmem:[%s247_s0 + $0x28] sm:$0xf]  ;;  %v27_v4 = vmax.f32 %v19_v0, 0.0  ;;  %v25_v6 = vld [vmem:[%s247_s0 + $0x38] sm:$0xf]  ;;  %v29_v7 = vmax.f32 %v21_v2, 0.0  ;;  %177 = vset.pattern.permute.xlu0 %v178_v3 }
   0x3   :  { %v31_v5 = vmax.f32 %v23_v1, 0.0  ;;  %v33_v9 = vmax.f32 %v25_v6, 0.0  ;;  %v22_v10 = vld [vmem:[%s247_s0 + $0x20] sm:$0xf]  ;;  %v26_v11 = vmax.f32 %v18_v8, 0.0  ;;  %v20_v12 = vld [vmem:[%s247_s0 + $0x10] sm:$0xff] }
   0x4   :  { %v30_v14 = vmax.f32 %v22_v10, 0.0  ;;  %v24_v15 = vld [vmem:[%s247_s0 + $0x30] sm:$0xf]  ;;  %v28_v16 = vmax.f32 %v20_v12, 0.0  ;;  %v138_v19 = vld [vmem:[%s248_s2] sm:$0xf] }
   0x5   :  { %v36_v13 = vpack.c.bf16 %v31_v5, %v27_v4  ;;  %v38_v17 = vpack.c.bf16 %v33_v9, %v29_v7  ;;  %v32_v18 = vmax.f32 %v24_v15, 0.0  ;;  %141 = vperm.xlu0 %177, %v138_v19   ;;  %v148_v22 = vld [vmem:[%s249_s3] sm:$0xf] }
   0x6   :  { %v35_v20 = vpack.c.bf16 %v30_v14, %v26_v11  ;;  %v34_v25 = vld [vmem:[%s250_s1] sm:$0x3] }
   0x7   :  { %172 = vmatprep.subr.msk.bf16.mxu0 %vm43_vm0, %v36_v13  ;;  %174 = vmatprep.subr.msk.bf16.mxu1 %vm43_vm0, %v38_v17  ;;  %v37_v21 = vpack.c.bf16 %v32_v18, %v28_v16 }
   0x8   :  { %v45_v23 = vsel %vm43_vm0, %v35_v20, 0 }
   0x9   :  { %57 = vmatpush1.bf16.msra.mxu0 %v45_v23  ;;  %v51_v24 = vsel %vm43_vm0, %v37_v21, 0  ;;  %151 = vperm.xlu0 %177, %v148_v22  }
   0xa   :  { %98 = vmatpush1.bf16.msra.mxu1 %v51_v24 }
   0xc   :  { %173 = vmatmul.mubr.msk.bf16.vlgmr.msra.gmra.mrb[0].mxu0 %vm39_vm1, %v34_v25 }
   0xd   :  { %175 = vmatmul.mubr.msk.bf16.vlgmr.msra.gmra.mrb[0].mxu1 %vm39_vm1, %v34_v25 }
  0x84   :  { %v142_v26 = vpop.permute.xlu0 %141 }
  0x88   :  { %v152_v27 = vpop.permute.xlu0 %151 }
  0xdf   :  { %v90_v28 = vpop.f32.mrb[0].mxu0 }
  0xe0   :  { %v144_v29 = vmul.f32 %v142_v26, %v90_v28  ;;  %v131_v30 = vpop.f32.mrb[0].mxu1  ;;  %v92_v31 = vpop.f32.mrb[1].mxu0 }
  0xe1   :  { %v146_v32 = vmul.f32 %v142_v26, %v131_v30  ;;  %v145_v33 = vmul.f32 %v142_v26, %v92_v31  ;;  %v133_v34 = vpop.f32.mrb[1].mxu1  ;;  %v94_v35 = vpop.f32.mrb[2].mxu0 }
  0xe2   :  { %v154_v36 = vadd.f32 %v152_v27, %v144_v29  ;;  %v147_v37 = vmul.f32 %v142_v26, %v133_v34  ;;  %v135_v38 = vpop.f32.mrb[2].mxu1  ;;  %v95_v39 = vpop.f32.mrb[3].mxu0 }
  0xe3   :  { %v156_v40 = vadd.f32 %v152_v27, %v146_v32  ;;  %v155_v41 = vadd.f32 %v152_v27, %v145_v33  ;;  %v136_v42 = vpop.f32.mrb[3].mxu1 }
  0xe4   :  { %v157_v43 = vadd.f32 %v152_v27, %v147_v37 }
  0xe5   :  { %v162_v44 = vcombine.low %v154_v36, %v155_v41 }
  0xe6   :  { %v163_v45 = vcombine.low %v156_v40, %v157_v43 }
  0xe7   :  { %166 = vst [vmem:[%s251_s4] sm:$0xff] %v162_v44 }
  0xe8   :  { %167 = vst [vmem:[%s251_s4 + $0x8] sm:$0xff] %v163_v45 }

// kernel: _lambda_.33
= control target key start
LH: loop header
LB: loop body
LE: loop exit
PB: predicated region body
PF: predicated region fallthrough
CT: control target
= control target key end

     0   :  { %v250_v1 = vmov 0   ;;  %vm83_vm0 = vcmask 1041408   ;;  %vm79_vm1 = vcmask 293888   ;;  %s325_s0 = inlined_call_operand.vmem [shape: bf16[36,512], index: 0, kind: input, shape index: {}]   ;;  %s326_s2 = inlined_call_operand.vmem [shape: f32[4,1], index: 2, kind: input, shape index: {}]   ;;  %s327_s3 = inlined_call_operand.vmem [shape: f32[4,1], index: 3, kind: input, shape index: {}]   ;;  %s328_s1 = inlined_call_operand.vmem [shape: bf16[4,36], index: 1, kind: input, shape index: {}]   ;;  %s329_s4 = inlined_call_operand.vmem [shape: f32[4,512], index: 4, kind: output, shape index: {}]  }
   0x1   :  { %v234_v0 = vld [vmem:[%s325_s0 + $0x4] ss:$16 sps:$4 sm:$0xff]   ;;  %128 = vmatprep.mubr.bf16.mxu0 %v250_v1  ;;  %169 = vmatprep.mubr.bf16.mxu1 %v250_v1  ;;  %v236_v2 = vld [vmem:[%s325_s0 + $0xc] ss:$16 sps:$4 sm:$0xff]   ;;  %v238_v3 = vld [vmem:[%s325_s0] ss:$16 sps:$4 sm:$0xff]  }
   0x2   :  { %233 = vset.pattern.permute.xlu0 %v250_v1  ;;  %96 = vmatprep.subr.bf16.mxu0 %v234_v0  ;;  %v239_v4 = vld [vmem:[%s325_s0 + $0x8] ss:$16 sps:$4 sm:$0xff]   ;;  %v240_v5 = vld [vmem:[%s325_s0 + $0x24] ss:$16 sps:$4 sm:$0xff]   ;;  %v242_v6 = vld [vmem:[%s325_s0 + $0x2c] ss:$16 sps:$4 sm:$0xff]  }
   0x3   :  { %137 = vmatprep.subr.bf16.mxu1 %v236_v2  ;;  %97 = vmatpush1.bf16.msra.mxu0 %v238_v3  ;;  %v244_v7 = vld [vmem:[%s325_s0 + $0x20] ss:$16 sps:$4 sm:$0xff]   ;;  %v245_v8 = vld [vmem:[%s325_s0 + $0x28] ss:$16 sps:$4 sm:$0xff]  }
   0x4   :  { %138 = vmatpush1.bf16.msra.mxu1 %v239_v4  ;;  %98 = vmatprep.subr.bf16.mxu0 %v240_v5  ;;  %v26_v9 = vld [vmem:[%s325_s0 + $0x40] sm:$0x33]  ;;  %v27_v10 = vld [vmem:[%s325_s0 + $0x48] sm:$0x33] }
   0x5   :  { %139 = vmatprep.subr.bf16.mxu1 %v242_v6  ;;  %v225_v11 = vcombine.high %v26_v9, %v26_v9  ;;  %v227_v12 = vcombine.high %v27_v10, %v27_v10  ;;  %v224_v13 = vcombine.low %v26_v9, %v26_v9  ;;  %v226_v14 = vcombine.low %v27_v10, %v27_v10  ;;  %v178_v15 = vld [vmem:[%s326_s2] sm:$0xf] }
   0x6   :  { %181 = vperm.xlu0 %233, %v178_v15   ;;  %v188_v16 = vld [vmem:[%s327_s3] sm:$0xf] }
   0x7   :  { %99 = vmatpush1.bf16.msra.mxu0 %v244_v7  ;;  %v85_v17 = vsel %vm83_vm0, %v224_v13, 0  ;;  %v91_v18 = vsel %vm83_vm0, %v226_v14, 0  ;;  %v28_v19 = vld [vmem:[%s328_s1] sm:$0x3] }
   0x8   :  { %140 = vmatpush1.bf16.msra.mxu1 %v245_v8  ;;  %228 = vmatprep.subr.msk.bf16.mxu0 %vm83_vm0, %v225_v11 }
   0x9   :  { %230 = vmatprep.subr.msk.bf16.mxu1 %vm83_vm0, %v227_v12 }
   0xa   :  { %191 = vperm.xlu0 %233, %v188_v16  }
   0xb   :  { %101 = vmatpush1.bf16.msra.mxu0 %v85_v17 }
   0xc   :  { %142 = vmatpush1.bf16.msra.mxu1 %v91_v18 }
   0xe   :  { %229 = vmatmul.mubr.msk.bf16.vlgmr.msra.gmra.mrb[0].mxu0 %vm79_vm1, %v28_v19 }
   0xf   :  { %231 = vmatmul.mubr.msk.bf16.vlgmr.msra.gmra.mrb[0].mxu1 %vm79_vm1, %v28_v19 }
  0x85   :  { %v182_v20 = vpop.permute.xlu0 %181 }
  0x89   :  { %v192_v21 = vpop.permute.xlu0 %191 }
  0xe1   :  { %v130_v22 = vpop.f32.mrb[0].mxu0 }
  0xe2   :  { %v171_v23 = vpop.f32.mrb[0].mxu1  ;;  %v184_v24 = vmul.f32 %v182_v20, %v130_v22  ;;  %v132_v26 = vpop.f32.mrb[1].mxu0 }
  0xe3   :  { %v186_v25 = vmul.f32 %v182_v20, %v171_v23  ;;  %v173_v27 = vpop.f32.mrb[1].mxu1  ;;  %v185_v28 = vmul.f32 %v182_v20, %v132_v26  ;;  %v134_v30 = vpop.f32.mrb[2].mxu0 }
  0xe4   :  { %v187_v29 = vmul.f32 %v182_v20, %v173_v27  ;;  %v175_v31 = vpop.f32.mrb[2].mxu1  ;;  %v194_v32 = vadd.f32 %v192_v21, %v184_v24  ;;  %v135_v34 = vpop.f32.mrb[3].mxu0 }
  0xe5   :  { %v196_v33 = vadd.f32 %v192_v21, %v186_v25  ;;  %v176_v35 = vpop.f32.mrb[3].mxu1  ;;  %v195_v36 = vadd.f32 %v192_v21, %v185_v28 }
  0xe6   :  { %v197_v37 = vadd.f32 %v192_v21, %v187_v29  ;;  %v198_v38 = vmax.f32 %v194_v32, 0.0 }
  0xe7   :  { %v200_v39 = vmax.f32 %v196_v33, 0.0  ;;  %v199_v40 = vmax.f32 %v195_v36, 0.0 }
  0xe8   :  { %v201_v41 = vmax.f32 %v197_v37, 0.0 }
  0xe9   :  { %v206_v42 = vcombine.low %v198_v38, %v199_v40 }
  0xea   :  { %v207_v43 = vcombine.low %v200_v39, %v201_v41 }
  0xeb   :  { %210 = vst [vmem:[%s329_s4] sm:$0xff] %v206_v42 }
  0xec   :  { %211 = vst [vmem:[%s329_s4 + $0x8] sm:$0xff] %v207_v43 }

// kernel: _lambda_.34
= control target key start
LH: loop header
LB: loop body
LE: loop exit
PB: predicated region body
PF: predicated region fallthrough
CT: control target
= control target key end

     0   :  { %v246_v1 = vmov 0   ;;  %vm83_vm0 = vcmask 1041408   ;;  %vm79_vm1 = vcmask 293888   ;;  %s321_s0 = inlined_call_operand.vmem [shape: bf16[36,512], index: 0, kind: input, shape index: {}]   ;;  %s322_s2 = inlined_call_operand.vmem [shape: f32[4,1], index: 2, kind: input, shape index: {}]   ;;  %s323_s3 = inlined_call_operand.vmem [shape: f32[4,1], index: 3, kind: input, shape index: {}]   ;;  %s324_s1 = inlined_call_operand.vmem [shape: bf16[4,36], index: 1, kind: input, shape index: {}]   ;;  %s325_s4 = inlined_call_operand.vmem [shape: f32[4,512], index: 4, kind: output, shape index: {}]  }
   0x1   :  { %v230_v0 = vld [vmem:[%s321_s0 + $0x4] ss:$16 sps:$4 sm:$0xff]   ;;  %128 = vmatprep.mubr.bf16.mxu0 %v246_v1  ;;  %169 = vmatprep.mubr.bf16.mxu1 %v246_v1  ;;  %v232_v2 = vld [vmem:[%s321_s0 + $0xc] ss:$16 sps:$4 sm:$0xff]   ;;  %v234_v3 = vld [vmem:[%s321_s0] ss:$16 sps:$4 sm:$0xff]  }
   0x2   :  { %229 = vset.pattern.permute.xlu0 %v246_v1  ;;  %96 = vmatprep.subr.bf16.mxu0 %v230_v0  ;;  %v235_v4 = vld [vmem:[%s321_s0 + $0x8] ss:$16 sps:$4 sm:$0xff]   ;;  %v236_v5 = vld [vmem:[%s321_s0 + $0x24] ss:$16 sps:$4 sm:$0xff]   ;;  %v238_v6 = vld [vmem:[%s321_s0 + $0x2c] ss:$16 sps:$4 sm:$0xff]  }
   0x3   :  { %137 = vmatprep.subr.bf16.mxu1 %v232_v2  ;;  %97 = vmatpush1.bf16.msra.mxu0 %v234_v3  ;;  %v240_v7 = vld [vmem:[%s321_s0 + $0x20] ss:$16 sps:$4 sm:$0xff]   ;;  %v241_v8 = vld [vmem:[%s321_s0 + $0x28] ss:$16 sps:$4 sm:$0xff]  }
   0x4   :  { %138 = vmatpush1.bf16.msra.mxu1 %v235_v4  ;;  %98 = vmatprep.subr.bf16.mxu0 %v236_v5  ;;  %v26_v9 = vld [vmem:[%s321_s0 + $0x40] sm:$0x33]  ;;  %v27_v10 = vld [vmem:[%s321_s0 + $0x48] sm:$0x33] }
   0x5   :  { %139 = vmatprep.subr.bf16.mxu1 %v238_v6  ;;  %v221_v11 = vcombine.high %v26_v9, %v26_v9  ;;  %v223_v12 = vcombine.high %v27_v10, %v27_v10  ;;  %v220_v13 = vcombine.low %v26_v9, %v26_v9  ;;  %v222_v14 = vcombine.low %v27_v10, %v27_v10  ;;  %v178_v15 = vld [vmem:[%s322_s2] sm:$0xf] }
   0x6   :  { %181 = vperm.xlu0 %229, %v178_v15   ;;  %v188_v16 = vld [vmem:[%s323_s3] sm:$0xf] }
   0x7   :  { %99 = vmatpush1.bf16.msra.mxu0 %v240_v7  ;;  %v85_v17 = vsel %vm83_vm0, %v220_v13, 0  ;;  %v91_v18 = vsel %vm83_vm0, %v222_v14, 0  ;;  %v28_v19 = vld [vmem:[%s324_s1] sm:$0x3] }
   0x8   :  { %140 = vmatpush1.bf16.msra.mxu1 %v241_v8  ;;  %224 = vmatprep.subr.msk.bf16.mxu0 %vm83_vm0, %v221_v11 }
   0x9   :  { %226 = vmatprep.subr.msk.bf16.mxu1 %vm83_vm0, %v223_v12 }
   0xa   :  { %191 = vperm.xlu0 %229, %v188_v16  }
   0xb   :  { %101 = vmatpush1.bf16.msra.mxu0 %v85_v17 }
   0xc   :  { %142 = vmatpush1.bf16.msra.mxu1 %v91_v18 }
   0xe   :  { %225 = vmatmul.mubr.msk.bf16.vlgmr.msra.gmra.mrb[0].mxu0 %vm79_vm1, %v28_v19 }
   0xf   :  { %227 = vmatmul.mubr.msk.bf16.vlgmr.msra.gmra.mrb[0].mxu1 %vm79_vm1, %v28_v19 }
  0x85   :  { %v182_v20 = vpop.permute.xlu0 %181 }
  0x89   :  { %v192_v21 = vpop.permute.xlu0 %191 }
  0xe1   :  { %v130_v22 = vpop.f32.mrb[0].mxu0 }
  0xe2   :  { %v171_v23 = vpop.f32.mrb[0].mxu1  ;;  %v184_v24 = vmul.f32 %v182_v20, %v130_v22  ;;  %v132_v26 = vpop.f32.mrb[1].mxu0 }
  0xe3   :  { %v186_v25 = vmul.f32 %v182_v20, %v171_v23  ;;  %v173_v27 = vpop.f32.mrb[1].mxu1  ;;  %v185_v28 = vmul.f32 %v182_v20, %v132_v26  ;;  %v134_v30 = vpop.f32.mrb[2].mxu0 }
  0xe4   :  { %v187_v29 = vmul.f32 %v182_v20, %v173_v27  ;;  %v175_v31 = vpop.f32.mrb[2].mxu1  ;;  %v194_v32 = vadd.f32 %v192_v21, %v184_v24  ;;  %v135_v34 = vpop.f32.mrb[3].mxu0 }
  0xe5   :  { %v196_v33 = vadd.f32 %v192_v21, %v186_v25  ;;  %v176_v35 = vpop.f32.mrb[3].mxu1  ;;  %v195_v36 = vadd.f32 %v192_v21, %v185_v28 }
  0xe6   :  { %v197_v37 = vadd.f32 %v192_v21, %v187_v29 }
  0xe7   :  { %v202_v38 = vcombine.low %v194_v32, %v195_v36 }
  0xe8   :  { %v203_v39 = vcombine.low %v196_v33, %v197_v37 }
  0xe9   :  { %206 = vst [vmem:[%s325_s4] sm:$0xff] %v202_v38 }
  0xea   :  { %207 = vst [vmem:[%s325_s4 + $0x8] sm:$0xff] %v203_v39 }

// kernel: _lambda_.36
= control target key start
LH: loop header
LB: loop body
LE: loop exit
PB: predicated region body
PF: predicated region fallthrough
CT: control target
= control target key end

     0   :  { %v263_v1 = vmov 0   ;;  %vm86_vm0 = vcmask 1041408   ;;  %vm82_vm1 = vcmask 293888   ;;  %s349_s0 = inlined_call_operand.vmem [shape: bf16[36,512], index: 0, kind: input, shape index: {}]   ;;  %s350_s2 = inlined_call_operand.vmem [shape: f32[4,1], index: 2, kind: input, shape index: {}]   ;;  %s351_s3 = inlined_call_operand.vmem [shape: f32[4,1], index: 3, kind: input, shape index: {}]   ;;  %s352_s1 = inlined_call_operand.vmem [shape: bf16[4,36], index: 1, kind: input, shape index: {}]   ;;  %s353_s4 = inlined_call_operand.vmem [shape: f32[4,512], index: 4, kind: input, shape index: {}]   ;;  %s354_s5 = inlined_call_operand.vmem [shape: f32[4,512], index: 5, kind: output, shape index: {}]  }
   0x1   :  { %v245_v0 = vld [vmem:[%s349_s0 + $0x4] ss:$16 sps:$4 sm:$0xff]   ;;  %131 = vmatprep.mubr.bf16.mxu0 %v263_v1  ;;  %172 = vmatprep.mubr.bf16.mxu1 %v263_v1  ;;  %v247_v2 = vld [vmem:[%s349_s0 + $0xc] ss:$16 sps:$4 sm:$0xff]   ;;  %v249_v3 = vld [vmem:[%s349_s0] ss:$16 sps:$4 sm:$0xff]  }
   0x2   :  { %244 = vset.pattern.permute.xlu0 %v263_v1  ;;  %99 = vmatprep.subr.bf16.mxu0 %v245_v0  ;;  %v250_v4 = vld [vmem:[%s349_s0 + $0x8] ss:$16 sps:$4 sm:$0xff]   ;;  %v251_v5 = vld [vmem:[%s349_s0 + $0x24] ss:$16 sps:$4 sm:$0xff]   ;;  %v253_v6 = vld [vmem:[%s349_s0 + $0x2c] ss:$16 sps:$4 sm:$0xff]  }
   0x3   :  { %140 = vmatprep.subr.bf16.mxu1 %v247_v2  ;;  %100 = vmatpush1.bf16.msra.mxu0 %v249_v3  ;;  %v255_v7 = vld [vmem:[%s349_s0 + $0x20] ss:$16 sps:$4 sm:$0xff]   ;;  %v256_v8 = vld [vmem:[%s349_s0 + $0x28] ss:$16 sps:$4 sm:$0xff]  }
   0x4   :  { %141 = vmatpush1.bf16.msra.mxu1 %v250_v4  ;;  %101 = vmatprep.subr.bf16.mxu0 %v251_v5  ;;  %v29_v9 = vld [vmem:[%s349_s0 + $0x40] sm:$0x33]  ;;  %v30_v10 = vld [vmem:[%s349_s0 + $0x48] sm:$0x33] }
   0x5   :  { %142 = vmatprep.subr.bf16.mxu1 %v253_v6  ;;  %v236_v11 = vcombine.high %v29_v9, %v29_v9  ;;  %v238_v12 = vcombine.high %v30_v10, %v30_v10  ;;  %v235_v13 = vcombine.low %v29_v9, %v29_v9  ;;  %v237_v14 = vcombine.low %v30_v10, %v30_v10  ;;  %v181_v15 = vld [vmem:[%s350_s2] sm:$0xf]  ;;  %v202_v23 = vld [vmem:[%s353_s4 + $0x8] sm:$0xff] }
   0x6   :  { %184 = vperm.xlu0 %244, %v181_v15   ;;  %v191_v16 = vld [vmem:[%s351_s3] sm:$0xf]  ;;  %v206_v33 = vcombine.high %v202_v23, %v202_v23 }
   0x7   :  { %102 = vmatpush1.bf16.msra.mxu0 %v255_v7  ;;  %v88_v17 = vsel %vm86_vm0, %v235_v13, 0  ;;  %v94_v18 = vsel %vm86_vm0, %v237_v14, 0  ;;  %v31_v19 = vld [vmem:[%s352_s1] sm:$0x3] }
   0x8   :  { %143 = vmatpush1.bf16.msra.mxu1 %v256_v8  ;;  %239 = vmatprep.subr.msk.bf16.mxu0 %vm86_vm0, %v236_v11  ;;  %v201_v22 = vld [vmem:[%s353_s4] sm:$0xff] }
   0x9   :  { %241 = vmatprep.subr.msk.bf16.mxu1 %vm86_vm0, %v238_v12  ;;  %v205_v31 = vcombine.high %v201_v22, %v201_v22 }
   0xa   :  { %194 = vperm.xlu0 %244, %v191_v16  }
   0xb   :  { %104 = vmatpush1.bf16.msra.mxu0 %v88_v17 }
   0xc   :  { %145 = vmatpush1.bf16.msra.mxu1 %v94_v18 }
   0xe   :  { %240 = vmatmul.mubr.msk.bf16.vlgmr.msra.gmra.mrb[0].mxu0 %vm82_vm1, %v31_v19 }
   0xf   :  { %242 = vmatmul.mubr.msk.bf16.vlgmr.msra.gmra.mrb[0].mxu1 %vm82_vm1, %v31_v19 }
  0x85   :  { %v185_v20 = vpop.permute.xlu0 %184 }
  0x89   :  { %v195_v21 = vpop.permute.xlu0 %194 }
  0xe1   :  { %v133_v24 = vpop.f32.mrb[0].mxu0 }
  0xe2   :  { %v174_v25 = vpop.f32.mrb[0].mxu1  ;;  %v187_v26 = vmul.f32 %v185_v20, %v133_v24  ;;  %v135_v28 = vpop.f32.mrb[1].mxu0 }
  0xe3   :  { %v189_v27 = vmul.f32 %v185_v20, %v174_v25  ;;  %v176_v29 = vpop.f32.mrb[1].mxu1  ;;  %v188_v30 = vmul.f32 %v185_v20, %v135_v28  ;;  %v137_v34 = vpop.f32.mrb[2].mxu0 }
  0xe4   :  { %v190_v32 = vmul.f32 %v185_v20, %v176_v29  ;;  %v178_v35 = vpop.f32.mrb[2].mxu1  ;;  %v197_v36 = vadd.f32 %v195_v21, %v187_v26  ;;  %v138_v38 = vpop.f32.mrb[3].mxu0 }
  0xe5   :  { %v199_v37 = vadd.f32 %v195_v21, %v189_v27  ;;  %v179_v39 = vpop.f32.mrb[3].mxu1  ;;  %v198_v40 = vadd.f32 %v195_v21, %v188_v30 }
  0xe6   :  { %v200_v41 = vadd.f32 %v195_v21, %v190_v32  ;;  %v209_v42 = vadd.f32 %v201_v22, %v197_v36 }
  0xe7   :  { %v211_v43 = vadd.f32 %v202_v23, %v199_v37  ;;  %v210_v44 = vadd.f32 %v205_v31, %v198_v40 }
  0xe8   :  { %v212_v45 = vadd.f32 %v206_v33, %v200_v41 }
  0xe9   :  { %v217_v46 = vcombine.low %v209_v42, %v210_v44 }
  0xea   :  { %v218_v47 = vcombine.low %v211_v43, %v212_v45 }
  0xeb   :  { %221 = vst [vmem:[%s354_s5] sm:$0xff] %v217_v46 }
  0xec   :  { %222 = vst [vmem:[%s354_s5 + $0x8] sm:$0xff] %v218_v47 }

// kernel: _lambda_.38
= control target key start
LH: loop header
LB: loop body
LE: loop exit
PB: predicated region body
PF: predicated region fallthrough
CT: control target
= control target key end

     0   :  { %v118_v0 = vmov 0   ;;  %v119_v23 = vmov 839922192   ;;  %v67_v25 = vlaneseq  ;;  %s217_s1 = inlined_call_operand.vmem [shape: f32[4,1], index: 1, kind: input, shape index: {}]   ;;  %s218_s2 = inlined_call_operand.vmem [shape: f32[4,1], index: 2, kind: input, shape index: {}]   ;;  %s219_s0 = inlined_call_operand.vmem [shape: f32[9,4,512], index: 0, kind: input, shape index: {}]   ;;  %s220_s3 = inlined_call_operand.vmem [shape: f32[4,512], index: 3, kind: input, shape index: {}]   ;;  %s221_s4 = inlined_call_operand.vmem [shape: f32[4,512], index: 4, kind: output, shape index: {}]  }
   0x1   :  { %117 = vset.pattern.permute.xlu0 %v118_v0  ;;  %v59_v1 = vld [vmem:[%s217_s1] sm:$0xf]  ;;  %v18_v4 = vld [vmem:[%s219_s0 + $0x8] sm:$0xff]  ;;  %v99_v5 = vld [vmem:[%s219_s0 + $0x10] sm:$0xff]  ;;  %v65_v24 = vunpack.c.l.s4 %v119_v23 }
   0x2   :  { %62 = vperm.xlu0 %117, %v59_v1   ;;  %v74_v2 = vld [vmem:[%s218_s2] sm:$0xf]  ;;  %v100_v6 = vld [vmem:[%s219_s0 + $0x18] sm:$0xff]  ;;  %v102_v10 = vld [vmem:[%s219_s0 + $0x28] sm:$0xff]  ;;  %v68_v31 = vshrl.u32 %v67_v25, 7 }
   0x3   :  { %v17_v3 = vld [vmem:[%s219_s0] sm:$0xff]  ;;  %v23_v8 = vmax.f32 %v18_v4, %v100_v6  ;;  %v103_v13 = vld [vmem:[%s219_s0 + $0x30] sm:$0xff]  ;;  %v104_v14 = vld [vmem:[%s219_s0 + $0x38] sm:$0xff]  ;;  %v66_v30 = vunpack.c.0.s8 %v65_v24 }
   0x4   :  { %v22_v7 = vmax.f32 %v17_v3, %v99_v5  ;;  %v101_v9 = vld [vmem:[%s219_s0 + $0x20] sm:$0xff]  ;;  %v106_v18 = vld [vmem:[%s219_s0 + $0x48] sm:$0xff]  ;;  %v107_v21 = vld [vmem:[%s219_s0 + $0x50] sm:$0xff] }
   0x5   :  { %v28_v12 = vmax.f32 %v23_v8, %v102_v10  ;;  %v105_v17 = vld [vmem:[%s219_s0 + $0x40] sm:$0xff]  ;;  %v108_v22 = vld [vmem:[%s219_s0 + $0x58] sm:$0xff]  ;;  %v110_v29 = vld [vmem:[%s219_s0 + $0x68] sm:$0xff]  ;;  %v69_v36 = vsub.s32 %v66_v30, %v68_v31 }
   0x6   :  { %77 = vperm.xlu0 %117, %v74_v2   ;;  %v27_v11 = vmax.f32 %v22_v7, %v101_v9  ;;  %v109_v28 = vld [vmem:[%s219_s0 + $0x60] sm:$0xff]  ;;  %v111_v34 = vld [vmem:[%s219_s0 + $0x70] sm:$0xff]  ;;  %v112_v35 = vld [vmem:[%s219_s0 + $0x78] sm:$0xff] }
   0x7   :  { %v33_v16 = vmax.f32 %v28_v12, %v104_v14  ;;  %v113_v39 = vld [vmem:[%s219_s0 + $0x80] sm:$0xff]  ;;  %v114_v40 = vld [vmem:[%s219_s0 + $0x88] sm:$0xff] }
   0x8   :  { %v32_v15 = vmax.f32 %v27_v11, %v103_v13  ;;  %v89_v49 = vld [vmem:[%s220_s3] sm:$0xff]  ;;  %v90_v50 = vld [vmem:[%s220_s3 + $0x8] sm:$0xff] }
   0x9   :  { %v38_v20 = vmax.f32 %v33_v16, %v106_v18 }
   0xa   :  { %v37_v19 = vmax.f32 %v32_v15, %v105_v17 }
   0xb   :  { %v43_v27 = vmax.f32 %v38_v20, %v108_v22 }
   0xc   :  { %v42_v26 = vmax.f32 %v37_v19, %v107_v21 }
   0xd   :  { %v48_v33 = vmax.f32 %v43_v27, %v110_v29 }
   0xe   :  { %v47_v32 = vmax.f32 %v42_v26, %v109_v28 }
   0xf   :  { %v53_v38 = vmax.f32 %v48_v33, %v112_v35 }
  0x10   :  { %v52_v37 = vmax.f32 %v47_v32, %v111_v34 }
  0x11   :  { %v58_v43 = vmax.f32 %v53_v38, %v114_v40 }
  0x12   :  { %v57_v42 = vmax.f32 %v52_v37, %v113_v39 }
  0x81   :  { %v63_v41 = vpop.permute.xlu0 %62 }
  0x82   :  { %v70_v44 = vrot.slane %v63_v41, %v69_v36 }
  0x84   :  { %v72_v46 = vmul.f32 %v70_v44, %v57_v42  ;;  %v73_v47 = vmul.f32 %v70_v44, %v58_v43 }
  0x85   :  { %v78_v45 = vpop.permute.xlu0 %77 }
  0x86   :  { %v85_v48 = vrot.slane %v78_v45, %v69_v36 }
  0x88   :  { %v87_v51 = vadd.f32 %v85_v48, %v72_v46  ;;  %v88_v52 = vadd.f32 %v85_v48, %v73_v47 }
  0x8a   :  { %v91_v53 = vadd.f32 %v89_v49, %v87_v51  ;;  %v92_v54 = vadd.f32 %v90_v50, %v88_v52 }
  0x8c   :  { %93 = vst [vmem:[%s221_s4] sm:$0xff] %v91_v53  ;;  %94 = vst [vmem:[%s221_s4 + $0x8] sm:$0xff] %v92_v54 }

// kernel: _lambda_.37
= control target key start
LH: loop header
LB: loop body
LE: loop exit
PB: predicated region body
PF: predicated region fallthrough
CT: control target
= control target key end

     0   :  { %v145_v0 = vmov 0   ;;  %v64_v19 = vlaneseq  ;;  %v146_v31 = vmov 839922192   ;;  %s252_s2 = inlined_call_operand.vmem [shape: f32[4,1], index: 2, kind: input, shape index: {}]   ;;  %s253_s3 = inlined_call_operand.vmem [shape: f32[4,1], index: 3, kind: input, shape index: {}]   ;;  %s254_s0 = inlined_call_operand.vmem [shape: f32[9,4,512], index: 0, kind: input, shape index: {}]   ;;  %s255_s1 = inlined_call_operand.vmem [shape: f32[1,512], index: 1, kind: input, shape index: {}]   ;;  %s256_s4 = inlined_call_operand.vmem [shape: f32[4,512], index: 4, kind: input, shape index: {}]   ;;  %s257_s5 = inlined_call_operand.vmem [shape: f32[4,512], index: 5, kind: output, shape index: {}]  }
   0x1   :  { %144 = vset.pattern.permute.xlu0 %v145_v0  ;;  %v86_v1 = vld [vmem:[%s252_s2] sm:$0xf]  ;;  %v21_v4 = vld [vmem:[%s254_s0 + $0x8] sm:$0xff]  ;;  %v126_v5 = vld [vmem:[%s254_s0 + $0x10] sm:$0xff]  ;;  %v92_v32 = vunpack.c.l.s4 %v146_v31 }
   0x2   :  { %89 = vperm.xlu0 %144, %v86_v1   ;;  %v101_v2 = vld [vmem:[%s253_s3] sm:$0xf]  ;;  %v127_v6 = vld [vmem:[%s254_s0 + $0x18] sm:$0xff]  ;;  %v129_v10 = vld [vmem:[%s254_s0 + $0x28] sm:$0xff]  ;;  %v65_v24 = vshrl.u32 %v64_v19, 7 }
   0x3   :  { %v20_v3 = vld [vmem:[%s254_s0] sm:$0xff]  ;;  %v26_v8 = vadd.f32 %v127_v6, %v21_v4  ;;  %v130_v13 = vld [vmem:[%s254_s0 + $0x30] sm:$0xff]  ;;  %v131_v14 = vld [vmem:[%s254_s0 + $0x38] sm:$0xff]  ;;  %v93_v40 = vunpack.c.0.s8 %v92_v32 }
   0x4   :  { %v25_v7 = vadd.f32 %v126_v5, %v20_v3  ;;  %v128_v9 = vld [vmem:[%s254_s0 + $0x20] sm:$0xff]  ;;  %v133_v18 = vld [vmem:[%s254_s0 + $0x48] sm:$0xff]  ;;  %v134_v22 = vld [vmem:[%s254_s0 + $0x50] sm:$0xff]  ;;  %v66_v29 = vsub.s32 0, %v65_v24  ;;  %v70_v30 = vsub.s32 1, %v65_v24  ;;  %v74_v33 = vsub.s32 2, %v65_v24 }
   0x5   :  { %v31_v12 = vadd.f32 %v129_v10, %v26_v8  ;;  %v132_v17 = vld [vmem:[%s254_s0 + $0x40] sm:$0xff]  ;;  %v135_v23 = vld [vmem:[%s254_s0 + $0x58] sm:$0xff]  ;;  %v137_v28 = vld [vmem:[%s254_s0 + $0x68] sm:$0xff]  ;;  %v78_v34 = vsub.s32 3, %v65_v24  ;;  %v96_v49 = vsub.s32 %v93_v40, %v65_v24 }
   0x6   :  { %104 = vperm.xlu0 %144, %v101_v2   ;;  %v30_v11 = vadd.f32 %v128_v9, %v25_v7  ;;  %v136_v27 = vld [vmem:[%s254_s0 + $0x60] sm:$0xff]  ;;  %v138_v38 = vld [vmem:[%s254_s0 + $0x70] sm:$0xff]  ;;  %v139_v39 = vld [vmem:[%s254_s0 + $0x78] sm:$0xff] }
   0x7   :  { %v36_v16 = vadd.f32 %v131_v14, %v31_v12  ;;  %v62_v37 = vld [vmem:[%s255_s1] sm:$0xf]  ;;  %v141_v48 = vld [vmem:[%s254_s0 + $0x88] sm:$0xff] }
   0x8   :  { %v35_v15 = vadd.f32 %v130_v13, %v30_v11  ;;  %v67_v41 = vrot.slane %v62_v37, %v66_v29  ;;  %v71_v42 = vrot.slane %v62_v37, %v70_v30  ;;  %v75_v45 = vrot.slane %v62_v37, %v74_v33  ;;  %v140_v47 = vld [vmem:[%s254_s0 + $0x80] sm:$0xff]  ;;  %v117_v63 = vld [vmem:[%s256_s4 + $0x8] sm:$0xff] }
   0x9   :  { %v41_v21 = vadd.f32 %v133_v18, %v36_v16  ;;  %v79_v46 = vrot.slane %v62_v37, %v78_v34  ;;  %v116_v62 = vld [vmem:[%s256_s4] sm:$0xff] }
   0xa   :  { %v40_v20 = vadd.f32 %v132_v17, %v35_v15  ;;  %v80_v52 = vcombine.low %v67_v41, %v71_v42 }
   0xb   :  { %v46_v26 = vadd.f32 %v135_v23, %v41_v21  ;;  %v81_v53 = vcombine.low %v75_v45, %v79_v46 }
   0xc   :  { %v45_v25 = vadd.f32 %v134_v22, %v40_v20 }
   0xd   :  { %v51_v36 = vadd.f32 %v137_v28, %v46_v26 }
   0xe   :  { %v50_v35 = vadd.f32 %v136_v27, %v45_v25 }
   0xf   :  { %v56_v44 = vadd.f32 %v139_v39, %v51_v36 }
  0x10   :  { %v55_v43 = vadd.f32 %v138_v38, %v50_v35 }
  0x11   :  { %v61_v51 = vadd.f32 %v141_v48, %v56_v44 }
  0x12   :  { %v60_v50 = vadd.f32 %v140_v47, %v55_v43 }
  0x13   :  { %v85_v56 = vmul.f32 %v81_v53, %v61_v51 }
  0x14   :  { %v84_v55 = vmul.f32 %v80_v52, %v60_v50 }
  0x81   :  { %v90_v54 = vpop.permute.xlu0 %89 }
  0x82   :  { %v97_v57 = vrot.slane %v90_v54, %v96_v49 }
  0x84   :  { %v99_v59 = vmul.f32 %v97_v57, %v84_v55  ;;  %v100_v60 = vmul.f32 %v97_v57, %v85_v56 }
  0x85   :  { %v105_v58 = vpop.permute.xlu0 %104 }
  0x86   :  { %v112_v61 = vrot.slane %v105_v58, %v96_v49 }
  0x88   :  { %v114_v0 = vadd.f32 %v112_v61, %v99_v59  ;;  %v115_v1 = vadd.f32 %v112_v61, %v100_v60 }
  0x8a   :  { %v118_v2 = vadd.f32 %v116_v62, %v114_v0  ;;  %v119_v3 = vadd.f32 %v117_v63, %v115_v1 }
  0x8c   :  { %120 = vst [vmem:[%s257_s5] sm:$0xff] %v118_v2  ;;  %121 = vst [vmem:[%s257_s5 + $0x8] sm:$0xff] %v119_v3 }

// kernel: _lambda_.47
= control target key start
LH: loop header
LB: loop body
LE: loop exit
PB: predicated region body
PF: predicated region fallthrough
CT: control target
= control target key end

     0   :  { %v133_v0 = vmov 0.0   ;;  %vm134_vm0 = vmmov 0   ;;  %v135_v8 = vmov 0   ;;  %vm35_vm1 = vcmask 261120   ;;  %s194_s0 = inlined_call_operand.vmem [shape: f32[32,128], index: 0, kind: input, shape index: {}]   ;;  %s195_s2 = inlined_call_operand.vmem [shape: f32[16,1], index: 2, kind: input, shape index: {}]   ;;  %s196_s1 = inlined_call_operand.vmem [shape: bf16[16,32], index: 1, kind: input, shape index: {}]   ;;  %s197_s3 = inlined_call_operand.vmem [shape: f32[16,1], index: 3, kind: input, shape index: {}]   ;;  %s198_s4 = inlined_call_operand.vmem [shape: f32[16,128], index: 4, kind: output, shape index: {}]  }
   0x1   :  { %119 = vmatprep.subr.bf16.mxu0 %v133_v0  ;;  %v18_v1 = vld [vmem:[%s194_s0] sm:$0xff]  ;;  %v19_v2 = vld [vmem:[%s194_s0 + $0x8] sm:$0xff]  ;;  %v20_v3 = vld [vmem:[%s194_s0 + $0x10] sm:$0xff]  ;;  %123 = vmatprep.mubr.msk.bf16.mxu0 %vm134_vm0, %v133_v0 }
   0x2   :  { %v22_v4 = vmax.f32 %v18_v1, 0.0  ;;  %v23_v5 = vmax.f32 %v19_v2, 0.0  ;;  %v21_v6 = vld [vmem:[%s194_s0 + $0x18] sm:$0xff]  ;;  %v24_v7 = vmax.f32 %v20_v3, 0.0  ;;  %130 = vset.pattern.permute.xlu0 %v135_v8  ;;  %131 = vset.pattern.permute.xlu1 %v135_v8  ;;  %v80_v10 = vld [vmem:[%s195_s2] sm:$0xff]  ;;  %v81_v13 = vld [vmem:[%s195_s2 + $0x8] sm:$0xff] }
   0x3   :  { %v25_v9 = vmax.f32 %v21_v6, 0.0  ;;  %84 = vperm.xlu0 %130, %v80_v10   ;;  %v94_v12 = vld [vmem:[%s197_s3] sm:$0xff]  ;;  %v95_v15 = vld [vmem:[%s197_s3 + $0x8] sm:$0xff] }
   0x4   :  { %v28_v11 = vpack.c.bf16 %v23_v5, %v22_v4  ;;  %98 = vperm.xlu1 %131, %v94_v12   ;;  %v132_v16 = vld [vmem:[%s196_s1] sm:$0xff]  }
   0x5   :  { %v29_v14 = vpack.c.bf16 %v25_v9, %v24_v7 }
   0x6   :  { %120 = vmatpush3.bf16.msra.mxu0 %v28_v11 }
   0x7   :  { %121 = vmatprep.subr.bf16.mxu0 %v133_v0  ;;  %89 = vperm.xlu0 %130, %v81_v13  }
   0x8   :  { %103 = vperm.xlu1 %131, %v95_v15  }
   0xa   :  { %122 = vmatpush3.bf16.msra.mxu0 %v29_v14 }
   0xd   :  { %124 = vmatmul.mubr.msk.bf16.vlgmr.msra.gmra.mrb[0].mxu0 %vm35_vm1, %v132_v16 }
  0x82   :  { %v85_v17 = vpop.permute.xlu0 %84 }
  0x83   :  { %v99_v18 = vpop.permute.xlu1 %98 }
  0x86   :  { %v90_v22 = vpop.permute.xlu0 %89 }
  0x87   :  { %v104_v27 = vpop.permute.xlu1 %103 }
  0xe0   :  { %v73_v19 = vpop.f32.mrb[0].mxu0 }
  0xe1   :  { %v92_v20 = vmul.f32 %v85_v17, %v73_v19  ;;  %v125_v21 = vpop.f32.mrb[1].mxu0 }
  0xe2   :  { %v76_v23 = vpop.f32.mrb[2].mxu0 }
  0xe3   :  { %v106_v24 = vadd.f32 %v99_v18, %v92_v20  ;;  %v93_v25 = vmul.f32 %v90_v22, %v76_v23  ;;  %v126_v26 = vpop.f32.mrb[3].mxu0 }
  0xe5   :  { %108 = vst [vmem:[%s198_s4] sm:$0xff] %v106_v24  ;;  %v107_v28 = vadd.f32 %v104_v27, %v93_v25 }
  0xe7   :  { %109 = vst [vmem:[%s198_s4 + $0x8] sm:$0xff] %v107_v28 }

// kernel: _lambda_.49
= control target key start
LH: loop header
LB: loop body
LE: loop exit
PB: predicated region body
PF: predicated region fallthrough
CT: control target
= control target key end

     0   :  { %v110_v0 = vmov 0   ;;  %vm84_vm0 = vcmask 261120   ;;  %s203_s2 = inlined_call_operand.vmem [shape: f32[16,1], index: 2, kind: input, shape index: {}]   ;;  %s204_s1 = inlined_call_operand.vmem [shape: f32[16,1], index: 1, kind: input, shape index: {}]   ;;  %s205_s0 = inlined_call_operand.vmem [shape: f32[9,16,32], index: 0, kind: input, shape index: {}]   ;;  %s206_s3 = inlined_call_operand.vmem [shape: f32[16,32], index: 3, kind: output, shape index: {}]  }
   0x1   :  { %109 = vset.pattern.permute.xlu1 %v110_v0  ;;  %108 = vset.pattern.permute.xlu0 %v110_v0  ;;  %v70_v1 = vld [vmem:[%s203_s2] sm:$0xff]  ;;  %v71_v3 = vld [vmem:[%s203_s2 + $0x8] sm:$0xff]  ;;  %v91_v6 = vld [vmem:[%s205_s0 + $0x10] sm:$0xff] }
   0x2   :  { %v56_v2 = vld [vmem:[%s204_s1] sm:$0xff]  ;;  %74 = vperm.xlu1 %109, %v70_v1   ;;  %v57_v4 = vld [vmem:[%s204_s1 + $0x8] sm:$0xff]  ;;  %v92_v10 = vld [vmem:[%s205_s0 + $0x18] sm:$0xff] }
   0x3   :  { %60 = vperm.xlu0 %108, %v56_v2   ;;  %v14_v5 = vld [vmem:[%s205_s0] sm:$0xff]  ;;  %v15_v9 = vld [vmem:[%s205_s0 + $0x8] sm:$0xff]  ;;  %v95_v13 = vld [vmem:[%s205_s0 + $0x30] sm:$0xff] }
   0x4   :  { %v19_v7 = vmax.f32 %v14_v5, %v91_v6  ;;  %v93_v8 = vld [vmem:[%s205_s0 + $0x20] sm:$0xff]  ;;  %v20_v12 = vmax.f32 %v15_v9, %v92_v10  ;;  %v94_v14 = vld [vmem:[%s205_s0 + $0x28] sm:$0xff]  ;;  %v96_v18 = vld [vmem:[%s205_s0 + $0x38] sm:$0xff] }
   0x5   :  { %v97_v17 = vld [vmem:[%s205_s0 + $0x40] sm:$0xff]  ;;  %v99_v21 = vld [vmem:[%s205_s0 + $0x50] sm:$0xff]  ;;  %v98_v22 = vld [vmem:[%s205_s0 + $0x48] sm:$0xff] }
   0x6   :  { %79 = vperm.xlu1 %109, %v71_v3   ;;  %v24_v11 = vmax.f32 %v19_v7, %v93_v8  ;;  %v25_v16 = vmax.f32 %v20_v12, %v94_v14  ;;  %v101_v25 = vld [vmem:[%s205_s0 + $0x60] sm:$0xff]  ;;  %v100_v26 = vld [vmem:[%s205_s0 + $0x58] sm:$0xff]  ;;  %v103_v29 = vld [vmem:[%s205_s0 + $0x70] sm:$0xff] }
   0x7   :  { %65 = vperm.xlu0 %108, %v57_v4   ;;  %v102_v30 = vld [vmem:[%s205_s0 + $0x68] sm:$0xff]  ;;  %v105_v33 = vld [vmem:[%s205_s0 + $0x80] sm:$0xff]  ;;  %v104_v34 = vld [vmem:[%s205_s0 + $0x78] sm:$0xff] }
   0x8   :  { %v29_v15 = vmax.f32 %v24_v11, %v95_v13  ;;  %v30_v20 = vmax.f32 %v25_v16, %v96_v18  ;;  %v106_v37 = vld [vmem:[%s205_s0 + $0x88] sm:$0xff] }
   0xa   :  { %v34_v19 = vmax.f32 %v29_v15, %v97_v17  ;;  %v35_v24 = vmax.f32 %v30_v20, %v98_v22 }
   0xc   :  { %v39_v23 = vmax.f32 %v34_v19, %v99_v21  ;;  %v40_v28 = vmax.f32 %v35_v24, %v100_v26 }
   0xe   :  { %v44_v27 = vmax.f32 %v39_v23, %v101_v25  ;;  %v45_v32 = vmax.f32 %v40_v28, %v102_v30 }
  0x10   :  { %v49_v31 = vmax.f32 %v44_v27, %v103_v29  ;;  %v50_v36 = vmax.f32 %v45_v32, %v104_v34 }
  0x12   :  { %v54_v35 = vmax.f32 %v49_v31, %v105_v33  ;;  %v55_v41 = vmax.f32 %v50_v36, %v106_v37 }
  0x81   :  { %v75_v38 = vpop.permute.xlu1 %74 }
  0x82   :  { %v61_v39 = vpop.permute.xlu0 %60 }
  0x83   :  { %v68_v40 = vmul.f32 %v61_v39, %v54_v35 }
  0x85   :  { %v82_v42 = vadd.f32 %v75_v38, %v68_v40  ;;  %v80_v45 = vpop.permute.xlu1 %79 }
  0x86   :  { %v66_v43 = vpop.permute.xlu0 %65 }
  0x87   :  { %85 = vst.msk [vmem:[%s206_s3] sm:$0xff] %vm84_vm0, %v82_v42  ;;  %v69_v44 = vmul.f32 %v66_v43, %v55_v41 }
  0x89   :  { %v83_v46 = vadd.f32 %v80_v45, %v69_v44 }
  0x8b   :  { %86 = vst.msk [vmem:[%s206_s3 + $0x8] sm:$0xff] %vm84_vm0, %v83_v46 }

// kernel: _lambda_.40
= control target key start
LH: loop header
LB: loop body
LE: loop exit
PB: predicated region body
PF: predicated region fallthrough
CT: control target
= control target key end

     0   :  { %v157_v3 = vmov 0   ;;  %vm39_vm0 = vcmask 130048   ;;  %s228_s0 = inlined_call_operand.vmem [shape: f32[16,512], index: 0, kind: input, shape index: {}]   ;;  %s229_s2 = inlined_call_operand.vmem [shape: f32[8,1], index: 2, kind: input, shape index: {}]   ;;  %s230_s3 = inlined_call_operand.vmem [shape: f32[8,1], index: 3, kind: input, shape index: {}]   ;;  %s231_s1 = inlined_call_operand.vmem [shape: bf16[8,16], index: 1, kind: input, shape index: {}]   ;;  %s232_s4 = inlined_call_operand.vmem [shape: f32[8,512], index: 4, kind: output, shape index: {}]  }
   0x1   :  { %v19_v0 = vld [vmem:[%s228_s0 + $0x8] sm:$0xff]  ;;  %v21_v2 = vld [vmem:[%s228_s0 + $0x18] sm:$0xff]  ;;  %75 = vmatprep.mubr.bf16.mxu0 %v157_v3  ;;  %116 = vmatprep.mubr.bf16.mxu1 %v157_v3  ;;  %v18_v8 = vld [vmem:[%s228_s0] sm:$0xff] }
   0x2   :  { %v23_v1 = vld [vmem:[%s228_s0 + $0x28] sm:$0xff]  ;;  %v27_v4 = vmax.f32 %v19_v0, 0.0  ;;  %v25_v6 = vld [vmem:[%s228_s0 + $0x38] sm:$0xff]  ;;  %v29_v7 = vmax.f32 %v21_v2, 0.0  ;;  %v22_v9 = vld [vmem:[%s228_s0 + $0x20] sm:$0xff]  ;;  %156 = vset.pattern.permute.xlu0 %v157_v3  ;;  %v26_v11 = vmax.f32 %v18_v8, 0.0 }
   0x3   :  { %v31_v5 = vmax.f32 %v23_v1, 0.0  ;;  %v33_v10 = vmax.f32 %v25_v6, 0.0  ;;  %v30_v12 = vmax.f32 %v22_v9, 0.0  ;;  %v20_v13 = vld [vmem:[%s228_s0 + $0x10] sm:$0xff]  ;;  %v125_v15 = vld [vmem:[%s229_s2] sm:$0xff] }
   0x4   :  { %v24_v14 = vld [vmem:[%s228_s0 + $0x30] sm:$0xff]  ;;  %v28_v17 = vmax.f32 %v20_v13, 0.0  ;;  %128 = vperm.xlu0 %156, %v125_v15   ;;  %v135_v21 = vld [vmem:[%s230_s3] sm:$0xff] }
   0x5   :  { %v36_v16 = vpack.c.bf16 %v31_v5, %v27_v4  ;;  %v32_v18 = vmax.f32 %v24_v14, 0.0  ;;  %v38_v19 = vpack.c.bf16 %v33_v10, %v29_v7  ;;  %v35_v20 = vpack.c.bf16 %v30_v12, %v26_v11  ;;  %v34_v23 = vld [vmem:[%s231_s1] sm:$0xf] }
   0x7   :  { %43 = vmatprep.subr.bf16.mxu0 %v36_v16  ;;  %v37_v22 = vpack.c.bf16 %v32_v18, %v28_v17  ;;  %84 = vmatprep.subr.bf16.mxu1 %v38_v19 }
   0x8   :  { %44 = vmatpush1.bf16.msra.mxu0 %v35_v20  ;;  %138 = vperm.xlu0 %156, %v135_v21  }
   0x9   :  { %85 = vmatpush1.bf16.msra.mxu1 %v37_v22 }
   0xb   :  { %153 = vmatmul.mubr.msk.bf16.vlgmr.msra.gmra.mrb[0].mxu0 %vm39_vm0, %v34_v23 }
   0xc   :  { %154 = vmatmul.mubr.msk.bf16.vlgmr.msra.gmra.mrb[0].mxu1 %vm39_vm0, %v34_v23 }
  0x83   :  { %v129_v24 = vpop.permute.xlu0 %128 }
  0x87   :  { %v139_v25 = vpop.permute.xlu0 %138 }
  0xde   :  { %v77_v26 = vpop.f32.mrb[0].mxu0 }
  0xdf   :  { %v131_v27 = vmul.f32 %v129_v24, %v77_v26  ;;  %v118_v28 = vpop.f32.mrb[0].mxu1  ;;  %v79_v29 = vpop.f32.mrb[1].mxu0 }
  0xe0   :  { %v133_v30 = vmul.f32 %v129_v24, %v118_v28  ;;  %v132_v31 = vmul.f32 %v129_v24, %v79_v29  ;;  %v120_v32 = vpop.f32.mrb[1].mxu1  ;;  %v81_v33 = vpop.f32.mrb[2].mxu0 }
  0xe1   :  { %v141_v34 = vadd.f32 %v139_v25, %v131_v27  ;;  %v134_v35 = vmul.f32 %v129_v24, %v120_v32  ;;  %v122_v36 = vpop.f32.mrb[2].mxu1  ;;  %v82_v37 = vpop.f32.mrb[3].mxu0 }
  0xe2   :  { %v143_v38 = vadd.f32 %v139_v25, %v133_v30  ;;  %v142_v39 = vadd.f32 %v139_v25, %v132_v31  ;;  %v123_v40 = vpop.f32.mrb[3].mxu1 }
  0xe3   :  { %145 = vst [vmem:[%s232_s4] sm:$0xff] %v141_v34  ;;  %v144_v41 = vadd.f32 %v139_v25, %v134_v35 }
  0xe4   :  { %147 = vst [vmem:[%s232_s4 + $0x10] sm:$0xff] %v143_v38  ;;  %146 = vst [vmem:[%s232_s4 + $0x8] sm:$0xff] %v142_v39 }
  0xe5   :  { %148 = vst [vmem:[%s232_s4 + $0x18] sm:$0xff] %v144_v41 }

// kernel: _lambda_.42
= control target key start
LH: loop header
LB: loop body
LE: loop exit
PB: predicated region body
PF: predicated region fallthrough
CT: control target
= control target key end

     0   :  { %v158_v0 = vmov 0.0   ;;  %vm159_vm0 = vmmov 0   ;;  %v160_v2 = vmov 0   ;;  %vm59_vm1 = vcmask 1043456   ;;  %s213_s0 = inlined_call_operand.vmem [shape: bf16[72,128], index: 0, kind: input, shape index: {}]   ;;  %s214_s2 = inlined_call_operand.vmem [shape: f32[8,1], index: 2, kind: input, shape index: {}]   ;;  %s215_s3 = inlined_call_operand.vmem [shape: f32[8,1], index: 3, kind: input, shape index: {}]   ;;  %s216_s1 = inlined_call_operand.vmem [shape: bf16[8,72], index: 1, kind: input, shape index: {}]   ;;  %s217_s4 = inlined_call_operand.vmem [shape: f32[8,128], index: 4, kind: output, shape index: {}]  }
   0x1   :  { %135 = vmatprep.subr.bf16.mxu0 %v158_v0  ;;  %v153_v1 = vld [vmem:[%s213_s0] sm:$0xff]   ;;  %145 = vmatprep.mubr.msk.bf16.mxu0 %vm159_vm0, %v158_v0  ;;  %v154_v3 = vld [vmem:[%s213_s0 + $0x8] sm:$0xff]   ;;  %v155_v5 = vld [vmem:[%s213_s0 + $0x10] sm:$0xff]   ;;  %vm55_vm2 = vcmask 588800  }
   0x2   :  { %152 = vset.pattern.permute.xlu0 %v160_v2  ;;  %136 = vmatpush3.bf16.msra.mxu0 %v153_v1  ;;  %v103_v4 = vld [vmem:[%s214_s2] sm:$0xff]  ;;  %v156_v7 = vld [vmem:[%s213_s0 + $0x18] sm:$0xff]  }
   0x3   :  { %137 = vmatprep.subr.bf16.mxu0 %v158_v0  ;;  %106 = vperm.xlu0 %152, %v103_v4   ;;  %v110_v6 = vld [vmem:[%s215_s3] sm:$0xff] }
   0x4   :  { %v157_v8 = vld [vmem:[%s213_s0 + $0x20] ss:$0 sps:$4 sm:$0xff]  }
   0x5   :  { %v61_v9 = vsel %vm59_vm1, %v157_v8, 0  ;;  %v27_v10 = vld [vmem:[%s216_s1] sm:$0xf] }
   0x6   :  { %138 = vmatpush3.bf16.msra.mxu0 %v154_v3 }
   0x7   :  { %139 = vmatprep.subr.bf16.mxu0 %v158_v0  ;;  %113 = vperm.xlu0 %152, %v110_v6  }
   0xa   :  { %140 = vmatpush3.bf16.msra.mxu0 %v155_v5 }
   0xb   :  { %141 = vmatprep.subr.bf16.mxu0 %v158_v0 }
   0xe   :  { %142 = vmatpush3.bf16.msra.mxu0 %v156_v7 }
   0xf   :  { %143 = vmatprep.subr.bf16.mxu0 %v158_v0 }
  0x12   :  { %144 = vmatpush3.bf16.msra.mxu0 %v61_v9 }
  0x15   :  { %146 = vmatmul.mubr.msk.bf16.vlgmr.msra.gmra.mrb[0].mxu0 %vm55_vm2, %v27_v10 }
  0x82   :  { %v107_v11 = vpop.permute.xlu0 %106 }
  0x86   :  { %v114_v15 = vpop.permute.xlu0 %113 }
  0xe8   :  { %v97_v12 = vpop.f32.mrb[0].mxu0 }
  0xe9   :  { %v109_v13 = vmul.f32 %v107_v11, %v97_v12  ;;  %v147_v14 = vpop.f32.mrb[1].mxu0 }
  0xea   :  { %v100_v16 = vpop.f32.mrb[2].mxu0 }
  0xeb   :  { %v116_v17 = vadd.f32 %v114_v15, %v109_v13  ;;  %v148_v18 = vpop.f32.mrb[3].mxu0 }
  0xed   :  { %v117_v19 = vmax.f32 %v116_v17, 0.0 }
  0xef   :  { %118 = vst [vmem:[%s217_s4] sm:$0xff] %v117_v19 }

// kernel: _lambda_.39
= control target key start
LH: loop header
LB: loop body
LE: loop exit
PB: predicated region body
PF: predicated region fallthrough
CT: control target
= control target key end

     0   :  { %vm43_vm0 = vcmask 1045504   ;;  %v172_v3 = vmov 0   ;;  %vm39_vm1 = vcmask 97280   ;;  %s247_s0 = inlined_call_operand.vmem [shape: f32[12,512], index: 0, kind: input, shape index: {}]   ;;  %s248_s2 = inlined_call_operand.vmem [shape: f32[8,1], index: 2, kind: input, shape index: {}]   ;;  %s249_s3 = inlined_call_operand.vmem [shape: f32[8,1], index: 3, kind: input, shape index: {}]   ;;  %s250_s1 = inlined_call_operand.vmem [shape: bf16[8,12], index: 1, kind: input, shape index: {}]   ;;  %s251_s4 = inlined_call_operand.vmem [shape: f32[8,512], index: 4, kind: output, shape index: {}]  }
   0x1   :  { %v19_v0 = vld [vmem:[%s247_s0 + $0x8] sm:$0xff]  ;;  %v21_v2 = vld [vmem:[%s247_s0 + $0x18] sm:$0xff]  ;;  %88 = vmatprep.mubr.bf16.mxu0 %v172_v3  ;;  %129 = vmatprep.mubr.bf16.mxu1 %v172_v3  ;;  %v18_v8 = vld [vmem:[%s247_s0] sm:$0xff] }
   0x2   :  { %v23_v1 = vld [vmem:[%s247_s0 + $0x28] sm:$0xf]  ;;  %v27_v4 = vmax.f32 %v19_v0, 0.0  ;;  %v25_v6 = vld [vmem:[%s247_s0 + $0x38] sm:$0xf]  ;;  %v29_v7 = vmax.f32 %v21_v2, 0.0  ;;  %171 = vset.pattern.permute.xlu0 %v172_v3 }
   0x3   :  { %v31_v5 = vmax.f32 %v23_v1, 0.0  ;;  %v33_v9 = vmax.f32 %v25_v6, 0.0  ;;  %v22_v10 = vld [vmem:[%s247_s0 + $0x20] sm:$0xf]  ;;  %v26_v11 = vmax.f32 %v18_v8, 0.0  ;;  %v20_v12 = vld [vmem:[%s247_s0 + $0x10] sm:$0xff] }
   0x4   :  { %v138_v13 = vld [vmem:[%s248_s2] sm:$0xff]  ;;  %v30_v15 = vmax.f32 %v22_v10, 0.0  ;;  %v24_v16 = vld [vmem:[%s247_s0 + $0x30] sm:$0xf]  ;;  %v28_v17 = vmax.f32 %v20_v12, 0.0 }
   0x5   :  { %v36_v14 = vpack.c.bf16 %v31_v5, %v27_v4  ;;  %141 = vperm.xlu0 %171, %v138_v13   ;;  %v38_v18 = vpack.c.bf16 %v33_v9, %v29_v7  ;;  %v32_v19 = vmax.f32 %v24_v16, 0.0  ;;  %v148_v20 = vld [vmem:[%s249_s3] sm:$0xff] }
   0x6   :  { %v35_v21 = vpack.c.bf16 %v30_v15, %v26_v11  ;;  %v34_v25 = vld [vmem:[%s250_s1] sm:$0xf] }
   0x7   :  { %166 = vmatprep.subr.msk.bf16.mxu0 %vm43_vm0, %v36_v14  ;;  %168 = vmatprep.subr.msk.bf16.mxu1 %vm43_vm0, %v38_v18  ;;  %v37_v22 = vpack.c.bf16 %v32_v19, %v28_v17 }
   0x8   :  { %v45_v23 = vsel %vm43_vm0, %v35_v21, 0 }
   0x9   :  { %151 = vperm.xlu0 %171, %v148_v20   ;;  %57 = vmatpush1.bf16.msra.mxu0 %v45_v23  ;;  %v51_v24 = vsel %vm43_vm0, %v37_v22, 0 }
   0xa   :  { %98 = vmatpush1.bf16.msra.mxu1 %v51_v24 }
   0xc   :  { %167 = vmatmul.mubr.msk.bf16.vlgmr.msra.gmra.mrb[0].mxu0 %vm39_vm1, %v34_v25 }
   0xd   :  { %169 = vmatmul.mubr.msk.bf16.vlgmr.msra.gmra.mrb[0].mxu1 %vm39_vm1, %v34_v25 }
  0x84   :  { %v142_v26 = vpop.permute.xlu0 %141 }
  0x88   :  { %v152_v27 = vpop.permute.xlu0 %151 }
  0xdf   :  { %v90_v28 = vpop.f32.mrb[0].mxu0 }
  0xe0   :  { %v144_v29 = vmul.f32 %v142_v26, %v90_v28  ;;  %v131_v30 = vpop.f32.mrb[0].mxu1  ;;  %v92_v31 = vpop.f32.mrb[1].mxu0 }
  0xe1   :  { %v146_v32 = vmul.f32 %v142_v26, %v131_v30  ;;  %v145_v33 = vmul.f32 %v142_v26, %v92_v31  ;;  %v133_v34 = vpop.f32.mrb[1].mxu1  ;;  %v94_v35 = vpop.f32.mrb[2].mxu0 }
  0xe2   :  { %v154_v36 = vadd.f32 %v152_v27, %v144_v29  ;;  %v147_v37 = vmul.f32 %v142_v26, %v133_v34  ;;  %v135_v38 = vpop.f32.mrb[2].mxu1  ;;  %v95_v39 = vpop.f32.mrb[3].mxu0 }
  0xe3   :  { %v156_v40 = vadd.f32 %v152_v27, %v146_v32  ;;  %v155_v41 = vadd.f32 %v152_v27, %v145_v33  ;;  %v136_v42 = vpop.f32.mrb[3].mxu1 }
  0xe4   :  { %158 = vst [vmem:[%s251_s4] sm:$0xff] %v154_v36  ;;  %v157_v43 = vadd.f32 %v152_v27, %v147_v37 }
  0xe5   :  { %160 = vst [vmem:[%s251_s4 + $0x10] sm:$0xff] %v156_v40  ;;  %159 = vst [vmem:[%s251_s4 + $0x8] sm:$0xff] %v155_v41 }
  0xe6   :  { %161 = vst [vmem:[%s251_s4 + $0x18] sm:$0xff] %v157_v43 }

// kernel: _lambda_.41
= control target key start
LH: loop header
LB: loop body
LE: loop exit
PB: predicated region body
PF: predicated region fallthrough
CT: control target
= control target key end

     0   :  { %v68_v0 = vmov 0   ;;  %s125_s1 = inlined_call_operand.vmem [shape: f32[8,1], index: 1, kind: input, shape index: {}]   ;;  %s126_s2 = inlined_call_operand.vmem [shape: f32[8,1], index: 2, kind: input, shape index: {}]   ;;  %s127_s0 = inlined_call_operand.vmem [shape: f32[9,8,128], index: 0, kind: input, shape index: {}]   ;;  %s128_s3 = inlined_call_operand.vmem [shape: f32[8,128], index: 3, kind: output, shape index: {}]  }
   0x1   :  { %67 = vset.pattern.permute.xlu0 %v68_v0  ;;  %v39_v1 = vld [vmem:[%s125_s1] sm:$0xff]  ;;  %v58_v4 = vld [vmem:[%s127_s0 + $0x8] sm:$0xff]  ;;  %v59_v6 = vld [vmem:[%s127_s0 + $0x10] sm:$0xff] }
   0x2   :  { %42 = vperm.xlu0 %67, %v39_v1   ;;  %v46_v2 = vld [vmem:[%s126_s2] sm:$0xff]  ;;  %v60_v8 = vld [vmem:[%s127_s0 + $0x18] sm:$0xff]  ;;  %v62_v12 = vld [vmem:[%s127_s0 + $0x28] sm:$0xff] }
   0x3   :  { %v14_v3 = vld [vmem:[%s127_s0] sm:$0xff]  ;;  %v63_v14 = vld [vmem:[%s127_s0 + $0x30] sm:$0xff]  ;;  %v64_v16 = vld [vmem:[%s127_s0 + $0x38] sm:$0xff] }
   0x4   :  { %v17_v5 = vmax.f32 %v14_v3, %v58_v4  ;;  %v61_v10 = vld [vmem:[%s127_s0 + $0x20] sm:$0xff] }
   0x5   :  { %v65_v18 = vld [vmem:[%s127_s0 + $0x40] sm:$0xff] }
   0x6   :  { %49 = vperm.xlu0 %67, %v46_v2   ;;  %v20_v7 = vmax.f32 %v17_v5, %v59_v6 }
   0x8   :  { %v23_v9 = vmax.f32 %v20_v7, %v60_v8 }
   0xa   :  { %v26_v11 = vmax.f32 %v23_v9, %v61_v10 }
   0xc   :  { %v29_v13 = vmax.f32 %v26_v11, %v62_v12 }
   0xe   :  { %v32_v15 = vmax.f32 %v29_v13, %v63_v14 }
  0x10   :  { %v35_v17 = vmax.f32 %v32_v15, %v64_v16 }
  0x12   :  { %v38_v19 = vmax.f32 %v35_v17, %v65_v18 }
  0x81   :  { %v43_v20 = vpop.permute.xlu0 %42 }
  0x82   :  { %v45_v21 = vmul.f32 %v43_v20, %v38_v19 }
  0x85   :  { %v50_v22 = vpop.permute.xlu0 %49 }
  0x86   :  { %v52_v23 = vadd.f32 %v50_v22, %v45_v21 }
  0x88   :  { %53 = vst [vmem:[%s128_s3] sm:$0xff] %v52_v23 }

// kernel: _lambda_.43
= control target key start
LH: loop header
LB: loop body
LE: loop exit
PB: predicated region body
PF: predicated region fallthrough
CT: control target
= control target key end

     0   :  { %v162_v0 = vmov 0.0   ;;  %vm163_vm0 = vmmov 0   ;;  %v164_v2 = vmov 0   ;;  %vm62_vm1 = vcmask 1043456   ;;  %s225_s0 = inlined_call_operand.vmem [shape: bf16[72,128], index: 0, kind: input, shape index: {}]   ;;  %s226_s2 = inlined_call_operand.vmem [shape: f32[8,1], index: 2, kind: input, shape index: {}]   ;;  %s227_s3 = inlined_call_operand.vmem [shape: f32[8,1], index: 3, kind: input, shape index: {}]   ;;  %s228_s1 = inlined_call_operand.vmem [shape: bf16[8,72], index: 1, kind: input, shape index: {}]   ;;  %s229_s4 = inlined_call_operand.vmem [shape: f32[8,128], index: 4, kind: input, shape index: {}]   ;;  %s230_s5 = inlined_call_operand.vmem [shape: f32[8,128], index: 5, kind: output, shape index: {}]  }
   0x1   :  { %139 = vmatprep.subr.bf16.mxu0 %v162_v0  ;;  %v157_v1 = vld [vmem:[%s225_s0] sm:$0xff]   ;;  %149 = vmatprep.mubr.msk.bf16.mxu0 %vm163_vm0, %v162_v0  ;;  %v158_v3 = vld [vmem:[%s225_s0 + $0x8] sm:$0xff]   ;;  %v159_v5 = vld [vmem:[%s225_s0 + $0x10] sm:$0xff]   ;;  %vm58_vm2 = vcmask 588800  }
   0x2   :  { %156 = vset.pattern.permute.xlu0 %v164_v2  ;;  %140 = vmatpush3.bf16.msra.mxu0 %v157_v1  ;;  %v106_v4 = vld [vmem:[%s226_s2] sm:$0xff]  ;;  %v160_v7 = vld [vmem:[%s225_s0 + $0x18] sm:$0xff]  }
   0x3   :  { %141 = vmatprep.subr.bf16.mxu0 %v162_v0  ;;  %109 = vperm.xlu0 %156, %v106_v4   ;;  %v113_v6 = vld [vmem:[%s227_s3] sm:$0xff] }
   0x4   :  { %v161_v8 = vld [vmem:[%s225_s0 + $0x20] ss:$0 sps:$4 sm:$0xff]  }
   0x5   :  { %v64_v9 = vsel %vm62_vm1, %v161_v8, 0  ;;  %v30_v10 = vld [vmem:[%s228_s1] sm:$0xf] }
   0x6   :  { %142 = vmatpush3.bf16.msra.mxu0 %v158_v3  ;;  %v120_v16 = vld [vmem:[%s229_s4] sm:$0xff] }
   0x7   :  { %143 = vmatprep.subr.bf16.mxu0 %v162_v0  ;;  %116 = vperm.xlu0 %156, %v113_v6  }
   0xa   :  { %144 = vmatpush3.bf16.msra.mxu0 %v159_v5 }
   0xb   :  { %145 = vmatprep.subr.bf16.mxu0 %v162_v0 }
   0xe   :  { %146 = vmatpush3.bf16.msra.mxu0 %v160_v7 }
   0xf   :  { %147 = vmatprep.subr.bf16.mxu0 %v162_v0 }
  0x12   :  { %148 = vmatpush3.bf16.msra.mxu0 %v64_v9 }
  0x15   :  { %150 = vmatmul.mubr.msk.bf16.vlgmr.msra.gmra.mrb[0].mxu0 %vm58_vm2, %v30_v10 }
  0x82   :  { %v110_v11 = vpop.permute.xlu0 %109 }
  0x86   :  { %v117_v15 = vpop.permute.xlu0 %116 }
  0xe8   :  { %v100_v12 = vpop.f32.mrb[0].mxu0 }
  0xe9   :  { %v112_v13 = vmul.f32 %v110_v11, %v100_v12  ;;  %v151_v14 = vpop.f32.mrb[1].mxu0 }
  0xea   :  { %v103_v17 = vpop.f32.mrb[2].mxu0 }
  0xeb   :  { %v119_v18 = vadd.f32 %v117_v15, %v112_v13  ;;  %v152_v19 = vpop.f32.mrb[3].mxu0 }
  0xed   :  { %v121_v20 = vadd.f32 %v120_v16, %v119_v18 }
  0xef   :  { %122 = vst [vmem:[%s230_s5] sm:$0xff] %v121_v20 }

// kernel: _lambda_.44
= control target key start
LH: loop header
LB: loop body
LE: loop exit
PB: predicated region body
PF: predicated region fallthrough
CT: control target
= control target key end

     0   :  { %v73_v0 = vmov 0   ;;  %s138_s1 = inlined_call_operand.vmem [shape: f32[8,1], index: 1, kind: input, shape index: {}]   ;;  %s139_s2 = inlined_call_operand.vmem [shape: f32[8,1], index: 2, kind: input, shape index: {}]   ;;  %s140_s0 = inlined_call_operand.vmem [shape: f32[9,8,128], index: 0, kind: input, shape index: {}]   ;;  %s141_s3 = inlined_call_operand.vmem [shape: f32[8,128], index: 3, kind: input, shape index: {}]   ;;  %s142_s4 = inlined_call_operand.vmem [shape: f32[8,128], index: 4, kind: output, shape index: {}]  }
   0x1   :  { %72 = vset.pattern.permute.xlu0 %v73_v0  ;;  %v42_v1 = vld [vmem:[%s138_s1] sm:$0xff]  ;;  %v63_v4 = vld [vmem:[%s140_s0 + $0x8] sm:$0xff]  ;;  %v64_v6 = vld [vmem:[%s140_s0 + $0x10] sm:$0xff] }
   0x2   :  { %45 = vperm.xlu0 %72, %v42_v1   ;;  %v49_v2 = vld [vmem:[%s139_s2] sm:$0xff]  ;;  %v65_v8 = vld [vmem:[%s140_s0 + $0x18] sm:$0xff]  ;;  %v67_v12 = vld [vmem:[%s140_s0 + $0x28] sm:$0xff] }
   0x3   :  { %v17_v3 = vld [vmem:[%s140_s0] sm:$0xff]  ;;  %v68_v14 = vld [vmem:[%s140_s0 + $0x30] sm:$0xff]  ;;  %v69_v16 = vld [vmem:[%s140_s0 + $0x38] sm:$0xff] }
   0x4   :  { %v20_v5 = vmax.f32 %v17_v3, %v63_v4  ;;  %v66_v10 = vld [vmem:[%s140_s0 + $0x20] sm:$0xff] }
   0x5   :  { %v70_v18 = vld [vmem:[%s140_s0 + $0x40] sm:$0xff] }
   0x6   :  { %52 = vperm.xlu0 %72, %v49_v2   ;;  %v23_v7 = vmax.f32 %v20_v5, %v64_v6  ;;  %v56_v22 = vld [vmem:[%s141_s3] sm:$0xff] }
   0x8   :  { %v26_v9 = vmax.f32 %v23_v7, %v65_v8 }
   0xa   :  { %v29_v11 = vmax.f32 %v26_v9, %v66_v10 }
   0xc   :  { %v32_v13 = vmax.f32 %v29_v11, %v67_v12 }
   0xe   :  { %v35_v15 = vmax.f32 %v32_v13, %v68_v14 }
  0x10   :  { %v38_v17 = vmax.f32 %v35_v15, %v69_v16 }
  0x12   :  { %v41_v19 = vmax.f32 %v38_v17, %v70_v18 }
  0x81   :  { %v46_v20 = vpop.permute.xlu0 %45 }
  0x82   :  { %v48_v21 = vmul.f32 %v46_v20, %v41_v19 }
  0x85   :  { %v53_v23 = vpop.permute.xlu0 %52 }
  0x86   :  { %v55_v24 = vadd.f32 %v53_v23, %v48_v21 }
  0x88   :  { %v57_v25 = vadd.f32 %v56_v22, %v55_v24 }
  0x8a   :  { %58 = vst [vmem:[%s142_s4] sm:$0xff] %v57_v25 }

// kernel: _lambda_.45
= control target key start
LH: loop header
LB: loop body
LE: loop exit
PB: predicated region body
PF: predicated region fallthrough
CT: control target
= control target key end

     0   :  { %v85_v0 = vmov 0   ;;  %s158_s2 = inlined_call_operand.vmem [shape: f32[8,1], index: 2, kind: input, shape index: {}]   ;;  %s159_s3 = inlined_call_operand.vmem [shape: f32[8,1], index: 3, kind: input, shape index: {}]   ;;  %s160_s0 = inlined_call_operand.vmem [shape: f32[9,8,128], index: 0, kind: input, shape index: {}]   ;;  %s161_s1 = inlined_call_operand.vmem [shape: f32[1,128], index: 1, kind: input, shape index: {}]   ;;  %s162_s4 = inlined_call_operand.vmem [shape: f32[8,128], index: 4, kind: input, shape index: {}]   ;;  %s163_s5 = inlined_call_operand.vmem [shape: f32[8,128], index: 5, kind: output, shape index: {}]  }
   0x1   :  { %84 = vset.pattern.permute.xlu0 %v85_v0  ;;  %v53_v1 = vld [vmem:[%s158_s2] sm:$0xff]  ;;  %v74_v4 = vld [vmem:[%s160_s0 + $0x8] sm:$0xff]  ;;  %v75_v6 = vld [vmem:[%s160_s0 + $0x10] sm:$0xff] }
   0x2   :  { %56 = vperm.xlu0 %84, %v53_v1   ;;  %v60_v2 = vld [vmem:[%s159_s3] sm:$0xff]  ;;  %v76_v8 = vld [vmem:[%s160_s0 + $0x18] sm:$0xff]  ;;  %v78_v12 = vld [vmem:[%s160_s0 + $0x28] sm:$0xff] }
   0x3   :  { %v20_v3 = vld [vmem:[%s160_s0] sm:$0xff]  ;;  %v79_v14 = vld [vmem:[%s160_s0 + $0x30] sm:$0xff]  ;;  %v80_v16 = vld [vmem:[%s160_s0 + $0x38] sm:$0xff] }
   0x4   :  { %v23_v5 = vadd.f32 %v74_v4, %v20_v3  ;;  %v77_v10 = vld [vmem:[%s160_s0 + $0x20] sm:$0xff] }
   0x5   :  { %v81_v18 = vld [vmem:[%s160_s0 + $0x40] sm:$0xff] }
   0x6   :  { %63 = vperm.xlu0 %84, %v60_v2   ;;  %v26_v7 = vadd.f32 %v75_v6, %v23_v5  ;;  %v82_v20 = vld [vmem:[%s161_s1] ss:$0 sm:$0xff] }
   0x7   :  { %v67_v24 = vld [vmem:[%s162_s4] sm:$0xff] }
   0x8   :  { %v29_v9 = vadd.f32 %v76_v8, %v26_v7 }
   0xa   :  { %v32_v11 = vadd.f32 %v77_v10, %v29_v9 }
   0xc   :  { %v35_v13 = vadd.f32 %v78_v12, %v32_v11 }
   0xe   :  { %v38_v15 = vadd.f32 %v79_v14, %v35_v13 }
  0x10   :  { %v41_v17 = vadd.f32 %v80_v16, %v38_v15 }
  0x12   :  { %v44_v19 = vadd.f32 %v81_v18, %v41_v17 }
  0x14   :  { %v52_v21 = vmul.f32 %v82_v20, %v44_v19 }
  0x81   :  { %v57_v22 = vpop.permute.xlu0 %56 }
  0x82   :  { %v59_v23 = vmul.f32 %v57_v22, %v52_v21 }
  0x85   :  { %v64_v25 = vpop.permute.xlu0 %63 }
  0x86   :  { %v66_v26 = vadd.f32 %v64_v25, %v59_v23 }
  0x88   :  { %v68_v27 = vadd.f32 %v67_v24, %v66_v26 }
  0x8a   :  { %69 = vst [vmem:[%s163_s5] sm:$0xff] %v68_v27 }

// kernel: _lambda_.50
= control target key start
LH: loop header
LB: loop body
LE: loop exit
PB: predicated region body
PF: predicated region fallthrough
CT: control target
= control target key end

     0   :  { %v210_v0 = vmov 0   ;;  %vm101_vm0 = vcmask 130048   ;;  %vm176_vm1 = vcmask 261120   ;;  %s287_s0 = inlined_call_operand.vmem [shape: bf16[144,32], index: 0, kind: input, shape index: {}]   ;;  %s288_s1 = inlined_call_operand.vmem [shape: bf16[16,144], index: 1, kind: input, shape index: {}]   ;;  %s289_s2 = inlined_call_operand.vmem [shape: f32[16,1], index: 2, kind: input, shape index: {}]   ;;  %s290_s3 = inlined_call_operand.vmem [shape: f32[16,1], index: 3, kind: input, shape index: {}]   ;;  %s291_s4 = inlined_call_operand.vmem [shape: f32[16,32], index: 4, kind: output, shape index: {}]  }
   0x1   :  { %105 = vmatprep.subr.bf16.mxu0 %v210_v0  ;;  %v198_v1 = vld [vmem:[%s287_s0] sm:$0xff]   ;;  %196 = vset.pattern.permute.xlu0 %v210_v0  ;;  %v199_v2 = vld [vmem:[%s287_s0 + $0x8] sm:$0xff]   ;;  %v200_v3 = vld [vmem:[%s287_s0 + $0x10] sm:$0xff]  }
   0x2   :  { %197 = vset.pattern.permute.xlu1 %v210_v0  ;;  %106 = vmatpush1.bf16.msra.mxu0 %v198_v1  ;;  %v201_v4 = vld [vmem:[%s287_s0 + $0x18] sm:$0xff]   ;;  %v209_v5 = vld [vmem:[%s288_s1 + $0x4] ss:$8 sps:$4 sm:$0xff]   ;;  %v204_v12 = vld [vmem:[%s287_s0 + $0x30] sm:$0xff]  }
   0x3   :  { %107 = vmatprep.subr.bf16.mxu0 %v210_v0  ;;  %v146_v6 = vld [vmem:[%s289_s2] sm:$0xff]  ;;  %194 = vmatprep.mubr.msk.bf16.mxu0 %vm101_vm0, %v209_v5  ;;  %v147_v8 = vld [vmem:[%s289_s2 + $0x8] sm:$0xff]  ;;  %v205_v13 = vld [vmem:[%s287_s0 + $0x38] sm:$0xff]  }
   0x4   :  { %v160_v7 = vld [vmem:[%s290_s3] sm:$0xff]  ;;  %150 = vperm.xlu0 %196, %v146_v6   ;;  %v161_v9 = vld [vmem:[%s290_s3 + $0x8] sm:$0xff] }
   0x5   :  { %164 = vperm.xlu1 %197, %v160_v7   ;;  %v202_v10 = vld [vmem:[%s287_s0 + $0x20] sm:$0xff]   ;;  %v203_v11 = vld [vmem:[%s287_s0 + $0x28] sm:$0xff]  }
   0x6   :  { %108 = vmatpush1.bf16.msra.mxu0 %v199_v2  ;;  %v206_v14 = vld [vmem:[%s287_s0 + $0x40] sm:$0xff]  }
   0x7   :  { %109 = vmatprep.subr.bf16.mxu0 %v210_v0  ;;  %v207_v15 = vld [vmem:[%s288_s1] ss:$8 sps:$4 sm:$0xff]  }
   0x8   :  { %155 = vperm.xlu0 %196, %v147_v8  }
   0x9   :  { %169 = vperm.xlu1 %197, %v161_v9  }
   0xa   :  { %110 = vmatpush1.bf16.msra.mxu0 %v200_v3 }
   0xb   :  { %111 = vmatprep.subr.bf16.mxu0 %v210_v0 }
   0xe   :  { %112 = vmatpush1.bf16.msra.mxu0 %v201_v4 }
   0xf   :  { %113 = vmatprep.subr.bf16.mxu0 %v210_v0 }
  0x12   :  { %114 = vmatpush1.bf16.msra.mxu0 %v202_v10 }
  0x13   :  { %115 = vmatprep.subr.bf16.mxu0 %v210_v0 }
  0x16   :  { %116 = vmatpush1.bf16.msra.mxu0 %v203_v11 }
  0x17   :  { %117 = vmatprep.subr.bf16.mxu0 %v210_v0 }
  0x1a   :  { %118 = vmatpush1.bf16.msra.mxu0 %v204_v12 }
  0x1b   :  { %119 = vmatprep.subr.bf16.mxu0 %v210_v0 }
  0x1e   :  { %120 = vmatpush1.bf16.msra.mxu0 %v205_v13 }
  0x1f   :  { %121 = vmatprep.subr.bf16.mxu0 %v210_v0 }
  0x22   :  { %122 = vmatpush1.bf16.msra.mxu0 %v206_v14 }
  0x25   :  { %138 = vmatmul.mubr.bf16.vlgmr.msra.gmra.mrb[0].mxu0 %v207_v15 }
  0x83   :  { %v151_v16 = vpop.permute.xlu0 %150 }
  0x84   :  { %v165_v17 = vpop.permute.xlu1 %164 }
  0x87   :  { %v156_v21 = vpop.permute.xlu0 %155 }
  0x88   :  { %v170_v26 = vpop.permute.xlu1 %169 }
  0xf8   :  { %v139_v18 = vpop.f32.mrb[0].mxu0 }
  0xf9   :  { %v158_v19 = vmul.f32 %v151_v16, %v139_v18  ;;  %v141_v20 = vpop.f32.mrb[1].mxu0 }
  0xfa   :  { %v142_v22 = vpop.f32.mrb[2].mxu0 }
  0xfb   :  { %v172_v23 = vadd.f32 %v165_v17, %v158_v19  ;;  %v159_v24 = vmul.f32 %v156_v21, %v142_v22  ;;  %v144_v25 = vpop.f32.mrb[3].mxu0 }
  0xfd   :  { %v174_v27 = vmax.f32 %v172_v23, 0.0  ;;  %v173_v28 = vadd.f32 %v170_v26, %v159_v24 }
  0xff   :  { %177 = vst.msk [vmem:[%s291_s4] sm:$0xff] %vm176_vm1, %v174_v27  ;;  %v175_v29 = vmax.f32 %v173_v28, 0.0 }
 0x101   :  { %178 = vst.msk [vmem:[%s291_s4 + $0x8] sm:$0xff] %vm176_vm1, %v175_v29 }

// kernel: _lambda_.51
= control target key start
LH: loop header
LB: loop body
LE: loop exit
PB: predicated region body
PF: predicated region fallthrough
CT: control target
= control target key end

     0   :  { %v215_v0 = vmov 0   ;;  %vm104_vm0 = vcmask 130048   ;;  %vm181_vm1 = vcmask 261120   ;;  %s303_s0 = inlined_call_operand.vmem [shape: bf16[144,32], index: 0, kind: input, shape index: {}]   ;;  %s304_s1 = inlined_call_operand.vmem [shape: bf16[16,144], index: 1, kind: input, shape index: {}]   ;;  %s305_s2 = inlined_call_operand.vmem [shape: f32[16,1], index: 2, kind: input, shape index: {}]   ;;  %s306_s3 = inlined_call_operand.vmem [shape: f32[16,1], index: 3, kind: input, shape index: {}]   ;;  %s307_s4 = inlined_call_operand.vmem [shape: f32[16,32], index: 4, kind: input, shape index: {}]   ;;  %s308_s5 = inlined_call_operand.vmem [shape: f32[16,32], index: 5, kind: output, shape index: {}]  }
   0x1   :  { %108 = vmatprep.subr.bf16.mxu0 %v215_v0  ;;  %v203_v1 = vld [vmem:[%s303_s0] sm:$0xff]   ;;  %201 = vset.pattern.permute.xlu0 %v215_v0  ;;  %v204_v2 = vld [vmem:[%s303_s0 + $0x8] sm:$0xff]   ;;  %v205_v3 = vld [vmem:[%s303_s0 + $0x10] sm:$0xff]  }
   0x2   :  { %202 = vset.pattern.permute.xlu1 %v215_v0  ;;  %109 = vmatpush1.bf16.msra.mxu0 %v203_v1  ;;  %v206_v4 = vld [vmem:[%s303_s0 + $0x18] sm:$0xff]   ;;  %v214_v5 = vld [vmem:[%s304_s1 + $0x4] ss:$8 sps:$4 sm:$0xff]   ;;  %v209_v12 = vld [vmem:[%s303_s0 + $0x30] sm:$0xff]  }
   0x3   :  { %110 = vmatprep.subr.bf16.mxu0 %v215_v0  ;;  %v149_v6 = vld [vmem:[%s305_s2] sm:$0xff]  ;;  %199 = vmatprep.mubr.msk.bf16.mxu0 %vm104_vm0, %v214_v5  ;;  %v150_v8 = vld [vmem:[%s305_s2 + $0x8] sm:$0xff]  ;;  %v210_v13 = vld [vmem:[%s303_s0 + $0x38] sm:$0xff]  }
   0x4   :  { %v163_v7 = vld [vmem:[%s306_s3] sm:$0xff]  ;;  %153 = vperm.xlu0 %201, %v149_v6   ;;  %v164_v9 = vld [vmem:[%s306_s3 + $0x8] sm:$0xff] }
   0x5   :  { %167 = vperm.xlu1 %202, %v163_v7   ;;  %v207_v10 = vld [vmem:[%s303_s0 + $0x20] sm:$0xff]   ;;  %v208_v11 = vld [vmem:[%s303_s0 + $0x28] sm:$0xff]  }
   0x6   :  { %111 = vmatpush1.bf16.msra.mxu0 %v204_v2  ;;  %v211_v14 = vld [vmem:[%s303_s0 + $0x40] sm:$0xff]   ;;  %v178_v28 = vld [vmem:[%s307_s4 + $0x8] sm:$0xff] }
   0x7   :  { %112 = vmatprep.subr.bf16.mxu0 %v215_v0  ;;  %v212_v15 = vld [vmem:[%s304_s1] ss:$8 sps:$4 sm:$0xff]  }
   0x8   :  { %158 = vperm.xlu0 %201, %v150_v8   ;;  %v177_v22 = vld [vmem:[%s307_s4] sm:$0xff] }
   0x9   :  { %172 = vperm.xlu1 %202, %v164_v9  }
   0xa   :  { %113 = vmatpush1.bf16.msra.mxu0 %v205_v3 }
   0xb   :  { %114 = vmatprep.subr.bf16.mxu0 %v215_v0 }
   0xe   :  { %115 = vmatpush1.bf16.msra.mxu0 %v206_v4 }
   0xf   :  { %116 = vmatprep.subr.bf16.mxu0 %v215_v0 }
  0x12   :  { %117 = vmatpush1.bf16.msra.mxu0 %v207_v10 }
  0x13   :  { %118 = vmatprep.subr.bf16.mxu0 %v215_v0 }
  0x16   :  { %119 = vmatpush1.bf16.msra.mxu0 %v208_v11 }
  0x17   :  { %120 = vmatprep.subr.bf16.mxu0 %v215_v0 }
  0x1a   :  { %121 = vmatpush1.bf16.msra.mxu0 %v209_v12 }
  0x1b   :  { %122 = vmatprep.subr.bf16.mxu0 %v215_v0 }
  0x1e   :  { %123 = vmatpush1.bf16.msra.mxu0 %v210_v13 }
  0x1f   :  { %124 = vmatprep.subr.bf16.mxu0 %v215_v0 }
  0x22   :  { %125 = vmatpush1.bf16.msra.mxu0 %v211_v14 }
  0x25   :  { %141 = vmatmul.mubr.bf16.vlgmr.msra.gmra.mrb[0].mxu0 %v212_v15 }
  0x83   :  { %v154_v16 = vpop.permute.xlu0 %153 }
  0x84   :  { %v168_v17 = vpop.permute.xlu1 %167 }
  0x87   :  { %v159_v21 = vpop.permute.xlu0 %158 }
  0x88   :  { %v173_v27 = vpop.permute.xlu1 %172 }
  0xf8   :  { %v142_v18 = vpop.f32.mrb[0].mxu0 }
  0xf9   :  { %v161_v19 = vmul.f32 %v154_v16, %v142_v18  ;;  %v144_v20 = vpop.f32.mrb[1].mxu0 }
  0xfa   :  { %v145_v23 = vpop.f32.mrb[2].mxu0 }
  0xfb   :  { %v175_v24 = vadd.f32 %v168_v17, %v161_v19  ;;  %v162_v25 = vmul.f32 %v159_v21, %v145_v23  ;;  %v147_v26 = vpop.f32.mrb[3].mxu0 }
  0xfd   :  { %v179_v29 = vadd.f32 %v177_v22, %v175_v24  ;;  %v176_v30 = vadd.f32 %v173_v27, %v162_v25 }
  0xff   :  { %182 = vst.msk [vmem:[%s308_s5] sm:$0xff] %vm181_vm1, %v179_v29  ;;  %v180_v31 = vadd.f32 %v178_v28, %v176_v30 }
 0x101   :  { %183 = vst.msk [vmem:[%s308_s5 + $0x8] sm:$0xff] %vm181_vm1, %v180_v31 }

// kernel: _lambda_.52
= control target key start
LH: loop header
LB: loop body
LE: loop exit
PB: predicated region body
PF: predicated region fallthrough
CT: control target
= control target key end

     0   :  { %v117_v0 = vmov 0   ;;  %vm91_vm0 = vcmask 261120   ;;  %s221_s2 = inlined_call_operand.vmem [shape: f32[16,1], index: 2, kind: input, shape index: {}]   ;;  %s222_s1 = inlined_call_operand.vmem [shape: f32[16,1], index: 1, kind: input, shape index: {}]   ;;  %s223_s0 = inlined_call_operand.vmem [shape: f32[9,16,32], index: 0, kind: input, shape index: {}]   ;;  %s224_s3 = inlined_call_operand.vmem [shape: f32[16,32], index: 3, kind: input, shape index: {}]   ;;  %s225_s4 = inlined_call_operand.vmem [shape: f32[16,32], index: 4, kind: output, shape index: {}]  }
   0x1   :  { %116 = vset.pattern.permute.xlu1 %v117_v0  ;;  %115 = vset.pattern.permute.xlu0 %v117_v0  ;;  %v73_v1 = vld [vmem:[%s221_s2] sm:$0xff]  ;;  %v74_v3 = vld [vmem:[%s221_s2 + $0x8] sm:$0xff]  ;;  %v98_v6 = vld [vmem:[%s223_s0 + $0x10] sm:$0xff] }
   0x2   :  { %v59_v2 = vld [vmem:[%s222_s1] sm:$0xff]  ;;  %77 = vperm.xlu1 %116, %v73_v1   ;;  %v60_v4 = vld [vmem:[%s222_s1 + $0x8] sm:$0xff]  ;;  %v99_v10 = vld [vmem:[%s223_s0 + $0x18] sm:$0xff] }
   0x3   :  { %63 = vperm.xlu0 %115, %v59_v2   ;;  %v17_v5 = vld [vmem:[%s223_s0] sm:$0xff]  ;;  %v18_v9 = vld [vmem:[%s223_s0 + $0x8] sm:$0xff]  ;;  %v102_v13 = vld [vmem:[%s223_s0 + $0x30] sm:$0xff] }
   0x4   :  { %v22_v7 = vmax.f32 %v17_v5, %v98_v6  ;;  %v100_v8 = vld [vmem:[%s223_s0 + $0x20] sm:$0xff]  ;;  %v23_v12 = vmax.f32 %v18_v9, %v99_v10  ;;  %v101_v14 = vld [vmem:[%s223_s0 + $0x28] sm:$0xff]  ;;  %v103_v18 = vld [vmem:[%s223_s0 + $0x38] sm:$0xff] }
   0x5   :  { %v104_v17 = vld [vmem:[%s223_s0 + $0x40] sm:$0xff]  ;;  %v106_v21 = vld [vmem:[%s223_s0 + $0x50] sm:$0xff]  ;;  %v105_v22 = vld [vmem:[%s223_s0 + $0x48] sm:$0xff] }
   0x6   :  { %82 = vperm.xlu1 %116, %v74_v3   ;;  %v27_v11 = vmax.f32 %v22_v7, %v100_v8  ;;  %v28_v16 = vmax.f32 %v23_v12, %v101_v14  ;;  %v108_v25 = vld [vmem:[%s223_s0 + $0x60] sm:$0xff]  ;;  %v107_v26 = vld [vmem:[%s223_s0 + $0x58] sm:$0xff]  ;;  %v110_v29 = vld [vmem:[%s223_s0 + $0x70] sm:$0xff] }
   0x7   :  { %68 = vperm.xlu0 %115, %v60_v4   ;;  %v109_v30 = vld [vmem:[%s223_s0 + $0x68] sm:$0xff]  ;;  %v112_v33 = vld [vmem:[%s223_s0 + $0x80] sm:$0xff]  ;;  %v111_v34 = vld [vmem:[%s223_s0 + $0x78] sm:$0xff] }
   0x8   :  { %v32_v15 = vmax.f32 %v27_v11, %v102_v13  ;;  %v33_v20 = vmax.f32 %v28_v16, %v103_v18  ;;  %v113_v37 = vld [vmem:[%s223_s0 + $0x88] sm:$0xff]  ;;  %v87_v42 = vld [vmem:[%s224_s3] sm:$0xff] }
   0x9   :  { %v88_v48 = vld [vmem:[%s224_s3 + $0x8] sm:$0xff] }
   0xa   :  { %v37_v19 = vmax.f32 %v32_v15, %v104_v17  ;;  %v38_v24 = vmax.f32 %v33_v20, %v105_v22 }
   0xc   :  { %v42_v23 = vmax.f32 %v37_v19, %v106_v21  ;;  %v43_v28 = vmax.f32 %v38_v24, %v107_v26 }
   0xe   :  { %v47_v27 = vmax.f32 %v42_v23, %v108_v25  ;;  %v48_v32 = vmax.f32 %v43_v28, %v109_v30 }
  0x10   :  { %v52_v31 = vmax.f32 %v47_v27, %v110_v29  ;;  %v53_v36 = vmax.f32 %v48_v32, %v111_v34 }
  0x12   :  { %v57_v35 = vmax.f32 %v52_v31, %v112_v33  ;;  %v58_v41 = vmax.f32 %v53_v36, %v113_v37 }
  0x81   :  { %v78_v38 = vpop.permute.xlu1 %77 }
  0x82   :  { %v64_v39 = vpop.permute.xlu0 %63 }
  0x83   :  { %v71_v40 = vmul.f32 %v64_v39, %v57_v35 }
  0x85   :  { %v85_v43 = vadd.f32 %v78_v38, %v71_v40  ;;  %v83_v47 = vpop.permute.xlu1 %82 }
  0x86   :  { %v69_v44 = vpop.permute.xlu0 %68 }
  0x87   :  { %v89_v45 = vadd.f32 %v87_v42, %v85_v43  ;;  %v72_v46 = vmul.f32 %v69_v44, %v58_v41 }
  0x89   :  { %92 = vst.msk [vmem:[%s225_s4] sm:$0xff] %vm91_vm0, %v89_v45  ;;  %v86_v49 = vadd.f32 %v83_v47, %v72_v46 }
  0x8b   :  { %v90_v50 = vadd.f32 %v88_v48, %v86_v49 }
  0x8d   :  { %93 = vst.msk [vmem:[%s225_s4 + $0x8] sm:$0xff] %vm91_vm0, %v90_v50 }

// kernel: _lambda_.53
= control target key start
LH: loop header
LB: loop body
LE: loop exit
PB: predicated region body
PF: predicated region fallthrough
CT: control target
= control target key end

     0   :  { %v130_v0 = vmov 0   ;;  %vm103_vm0 = vcmask 261120   ;;  %s242_s3 = inlined_call_operand.vmem [shape: f32[16,1], index: 3, kind: input, shape index: {}]   ;;  %s243_s2 = inlined_call_operand.vmem [shape: f32[16,1], index: 2, kind: input, shape index: {}]   ;;  %s244_s0 = inlined_call_operand.vmem [shape: f32[9,16,32], index: 0, kind: input, shape index: {}]   ;;  %s245_s1 = inlined_call_operand.vmem [shape: f32[1,32], index: 1, kind: input, shape index: {}]   ;;  %s246_s4 = inlined_call_operand.vmem [shape: f32[16,32], index: 4, kind: input, shape index: {}]   ;;  %s247_s5 = inlined_call_operand.vmem [shape: f32[16,32], index: 5, kind: output, shape index: {}]  }
   0x1   :  { %129 = vset.pattern.permute.xlu1 %v130_v0  ;;  %128 = vset.pattern.permute.xlu0 %v130_v0  ;;  %v85_v1 = vld [vmem:[%s242_s3] sm:$0xff]  ;;  %v86_v3 = vld [vmem:[%s242_s3 + $0x8] sm:$0xff]  ;;  %v110_v6 = vld [vmem:[%s244_s0 + $0x10] sm:$0xff] }
   0x2   :  { %v71_v2 = vld [vmem:[%s243_s2] sm:$0xff]  ;;  %89 = vperm.xlu1 %129, %v85_v1   ;;  %v72_v4 = vld [vmem:[%s243_s2 + $0x8] sm:$0xff]  ;;  %v111_v10 = vld [vmem:[%s244_s0 + $0x18] sm:$0xff] }
   0x3   :  { %75 = vperm.xlu0 %128, %v71_v2   ;;  %v20_v5 = vld [vmem:[%s244_s0] sm:$0xff]  ;;  %v21_v9 = vld [vmem:[%s244_s0 + $0x8] sm:$0xff]  ;;  %v114_v13 = vld [vmem:[%s244_s0 + $0x30] sm:$0xff] }
   0x4   :  { %v25_v7 = vadd.f32 %v110_v6, %v20_v5  ;;  %v112_v8 = vld [vmem:[%s244_s0 + $0x20] sm:$0xff]  ;;  %v26_v12 = vadd.f32 %v111_v10, %v21_v9  ;;  %v113_v14 = vld [vmem:[%s244_s0 + $0x28] sm:$0xff]  ;;  %v115_v18 = vld [vmem:[%s244_s0 + $0x38] sm:$0xff] }
   0x5   :  { %v116_v17 = vld [vmem:[%s244_s0 + $0x40] sm:$0xff]  ;;  %v118_v21 = vld [vmem:[%s244_s0 + $0x50] sm:$0xff]  ;;  %v117_v22 = vld [vmem:[%s244_s0 + $0x48] sm:$0xff] }
   0x6   :  { %94 = vperm.xlu1 %129, %v86_v3   ;;  %v30_v11 = vadd.f32 %v112_v8, %v25_v7  ;;  %v31_v16 = vadd.f32 %v113_v14, %v26_v12  ;;  %v120_v25 = vld [vmem:[%s244_s0 + $0x60] sm:$0xff]  ;;  %v119_v26 = vld [vmem:[%s244_s0 + $0x58] sm:$0xff]  ;;  %v122_v29 = vld [vmem:[%s244_s0 + $0x70] sm:$0xff] }
   0x7   :  { %80 = vperm.xlu0 %128, %v72_v4   ;;  %v121_v30 = vld [vmem:[%s244_s0 + $0x68] sm:$0xff]  ;;  %v124_v33 = vld [vmem:[%s244_s0 + $0x80] sm:$0xff]  ;;  %v123_v34 = vld [vmem:[%s244_s0 + $0x78] sm:$0xff] }
   0x8   :  { %v35_v15 = vadd.f32 %v114_v13, %v30_v11  ;;  %v36_v20 = vadd.f32 %v115_v18, %v31_v16  ;;  %v126_v37 = vld [vmem:[%s245_s1] ss:$0 sm:$0xff]  ;;  %v125_v38 = vld [vmem:[%s244_s0 + $0x88] sm:$0xff] }
   0x9   :  { %v99_v45 = vld [vmem:[%s246_s4] sm:$0xff]  ;;  %v100_v51 = vld [vmem:[%s246_s4 + $0x8] sm:$0xff] }
   0xa   :  { %v40_v19 = vadd.f32 %v116_v17, %v35_v15  ;;  %v41_v24 = vadd.f32 %v117_v22, %v36_v20 }
   0xc   :  { %v45_v23 = vadd.f32 %v118_v21, %v40_v19  ;;  %v46_v28 = vadd.f32 %v119_v26, %v41_v24 }
   0xe   :  { %v50_v27 = vadd.f32 %v120_v25, %v45_v23  ;;  %v51_v32 = vadd.f32 %v121_v30, %v46_v28 }
  0x10   :  { %v55_v31 = vadd.f32 %v122_v29, %v50_v27  ;;  %v56_v36 = vadd.f32 %v123_v34, %v51_v32 }
  0x12   :  { %v60_v35 = vadd.f32 %v124_v33, %v55_v31  ;;  %v61_v40 = vadd.f32 %v125_v38, %v56_v36 }
  0x14   :  { %v69_v39 = vmul.f32 %v126_v37, %v60_v35  ;;  %v70_v44 = vmul.f32 %v126_v37, %v61_v40 }
  0x81   :  { %v90_v41 = vpop.permute.xlu1 %89 }
  0x82   :  { %v76_v42 = vpop.permute.xlu0 %75 }
  0x83   :  { %v83_v43 = vmul.f32 %v76_v42, %v69_v39 }
  0x85   :  { %v97_v46 = vadd.f32 %v90_v41, %v83_v43  ;;  %v95_v50 = vpop.permute.xlu1 %94 }
  0x86   :  { %v81_v47 = vpop.permute.xlu0 %80 }
  0x87   :  { %v101_v48 = vadd.f32 %v99_v45, %v97_v46  ;;  %v84_v49 = vmul.f32 %v81_v47, %v70_v44 }
  0x89   :  { %104 = vst.msk [vmem:[%s247_s5] sm:$0xff] %vm103_vm0, %v101_v48  ;;  %v98_v52 = vadd.f32 %v95_v50, %v84_v49 }
  0x8b   :  { %v102_v53 = vadd.f32 %v100_v51, %v98_v52 }
  0x8d   :  { %105 = vst.msk [vmem:[%s247_s5 + $0x8] sm:$0xff] %vm103_vm0, %v102_v53 }

// kernel: _lambda_.55
= control target key start
LH: loop header
LB: loop body
LE: loop exit
PB: predicated region body
PF: predicated region fallthrough
CT: control target
= control target key end

     0   :  { %vm85_vm0 = vcmask 123904   ;;  %vm939_vm1 = vcmask 523264   ;;  %vm868_vm2 = vcmask 1041409   ;;  %vm870_vm3 = vcmask 1042434   ;;  %s2179_s0 = inlined_call_operand.vmem [shape: f32[64,2,16], index: 0, kind: input, shape index: {}]   ;;  %s2180_s1 = inlined_call_operand.vmem [shape: bf16[64,64], index: 1, kind: input, shape index: {}]   ;;  %s2181_s2 = inlined_call_operand.vmem [shape: f32[64,1], index: 2, kind: input, shape index: {}]   ;;  %s2182_s4 = inlined_call_operand.vmem [shape: f32[128,1], index: 4, kind: input, shape index: {}]   ;;  %s2183_s3 = inlined_call_operand.vmem [shape: bf16[128,64], index: 3, kind: input, shape index: {}]   ;;  %s2184_s5 = inlined_call_operand.vmem [shape: f32[128,2], index: 5, kind: output, shape index: {}]  }
   0x1   :  { %v29_v0 = vld [vmem:[%s2179_s0 + $0x10] sm:$0x3]  ;;  %v21_v1 = vld [vmem:[%s2179_s0] sm:$0x3]  ;;  %v30_v2 = vld [vmem:[%s2179_s0 + $0x12] sm:$0x3] }
   0x2   :  { %v110_v3 = vsel %vm85_vm0, %v29_v0, 0.0  ;;  %v86_v4 = vsel %vm85_vm0, %v21_v1, 0.0  ;;  %v22_v5 = vld [vmem:[%s2179_s0 + $0x2] sm:$0x3]  ;;  %v113_v6 = vsel %vm85_vm0, %v30_v2, 0.0  ;;  %vm872_vm4 = vcmask 1043459  }
   0x3   :  { %111 = vadd.xlane.f32.xlu1 %v110_v3  ;;  %87 = vadd.xlane.f32.xlu0 %v86_v4  ;;  %v89_v7 = vsel %vm85_vm0, %v22_v5, 0.0  ;;  %v31_v8 = vld [vmem:[%s2179_s0 + $0x14] sm:$0x3]  ;;  %v23_v9 = vld [vmem:[%s2179_s0 + $0x4] sm:$0x3]  ;;  %vm874_vm5 = vcmask 1044484  }
   0x4   :  { %v116_v10 = vsel %vm85_vm0, %v31_v8, 0.0  ;;  %v92_v11 = vsel %vm85_vm0, %v23_v9, 0.0  ;;  %v32_v12 = vld [vmem:[%s2179_s0 + $0x16] sm:$0x3]  ;;  %v24_v13 = vld [vmem:[%s2179_s0 + $0x6] sm:$0x3] }
   0x5   :  { %v119_v14 = vsel %vm85_vm0, %v32_v12, 0.0  ;;  %v95_v15 = vsel %vm85_vm0, %v24_v13, 0.0  ;;  %v33_v16 = vld [vmem:[%s2179_s0 + $0x18] sm:$0x3]  ;;  %v25_v17 = vld [vmem:[%s2179_s0 + $0x8] sm:$0x3] }
   0x6   :  { %v34_v18 = vld [vmem:[%s2179_s0 + $0x1a] sm:$0x3]  ;;  %v26_v19 = vld [vmem:[%s2179_s0 + $0xa] sm:$0x3]  ;;  %v38_v20 = vld [vmem:[%s2179_s0 + $0x22] sm:$0x3] }
   0x7   :  { %114 = vadd.xlane.f32.xlu1 %v113_v6  ;;  %90 = vadd.xlane.f32.xlu0 %v89_v7  ;;  %v37_v21 = vld [vmem:[%s2179_s0 + $0x20] sm:$0x3]  ;;  %v46_v22 = vld [vmem:[%s2179_s0 + $0x32] sm:$0x3]  ;;  %v45_v23 = vld [vmem:[%s2179_s0 + $0x30] sm:$0x3] }
   0x8   :  { %v35_v24 = vld [vmem:[%s2179_s0 + $0x1c] sm:$0x3]  ;;  %v27_v25 = vld [vmem:[%s2179_s0 + $0xc] sm:$0x3]  ;;  %v122_v26 = vsel %vm85_vm0, %v33_v16, 0.0  ;;  %v98_v27 = vsel %vm85_vm0, %v25_v17, 0.0 }
   0x9   :  { %v125_v28 = vsel %vm85_vm0, %v34_v18, 0.0  ;;  %v101_v29 = vsel %vm85_vm0, %v26_v19, 0.0  ;;  %v137_v30 = vsel %vm85_vm0, %v38_v20, 0.0  ;;  %v134_v31 = vsel %vm85_vm0, %v37_v21, 0.0  ;;  %v51_v36 = vld [vmem:[%s2179_s0 + $0x3c] sm:$0x3] }
   0xa   :  { %v1530_v32 = vsel %vm85_vm0, %v46_v22, 0.0  ;;  %v1533_v33 = vsel %vm85_vm0, %v45_v23, 0.0  ;;  %v1536_v34 = vsel %vm85_vm0, %v35_v24, 0.0  ;;  %v1539_v35 = vsel %vm85_vm0, %v27_v25, 0.0  ;;  %v43_v37 = vld [vmem:[%s2179_s0 + $0x2c] sm:$0x3] }
   0xb   :  { %117 = vadd.xlane.f32.xlu1 %v116_v10  ;;  %93 = vadd.xlane.f32.xlu0 %v92_v11  ;;  %v1548_v38 = vsel %vm85_vm0, %v51_v36, 0.0  ;;  %v1551_v39 = vsel %vm85_vm0, %v43_v37, 0.0  ;;  %v63_v40 = vld [vmem:[%s2179_s0 + $0x54] sm:$0x3]  ;;  %v55_v41 = vld [vmem:[%s2179_s0 + $0x44] sm:$0x3] }
   0xc   :  { %v1560_v42 = vsel %vm85_vm0, %v63_v40, 0.0  ;;  %v1563_v43 = vsel %vm85_vm0, %v55_v41, 0.0  ;;  %v52_v44 = vld [vmem:[%s2179_s0 + $0x3e] sm:$0x3]  ;;  %v44_v45 = vld [vmem:[%s2179_s0 + $0x2e] sm:$0x3] }
   0xd   :  { %v1572_v46 = vsel %vm85_vm0, %v52_v44, 0.0  ;;  %v1575_v47 = vsel %vm85_vm0, %v44_v45, 0.0  ;;  %v64_v48 = vld [vmem:[%s2179_s0 + $0x56] sm:$0x3]  ;;  %v56_v49 = vld [vmem:[%s2179_s0 + $0x46] sm:$0x3] }
   0xe   :  { %v1584_v50 = vsel %vm85_vm0, %v64_v48, 0.0  ;;  %v1587_v51 = vsel %vm85_vm0, %v56_v49, 0.0  ;;  %v65_v52 = vld [vmem:[%s2179_s0 + $0x58] sm:$0x3]  ;;  %v57_v53 = vld [vmem:[%s2179_s0 + $0x48] sm:$0x3] }
   0xf   :  { %120 = vadd.xlane.f32.xlu1 %v119_v14  ;;  %96 = vadd.xlane.f32.xlu0 %v95_v15  ;;  %v1596_v54 = vsel %vm85_vm0, %v65_v52, 0.0  ;;  %v1599_v55 = vsel %vm85_vm0, %v57_v53, 0.0  ;;  %v66_v56 = vld [vmem:[%s2179_s0 + $0x5a] sm:$0x3]  ;;  %v58_v57 = vld [vmem:[%s2179_s0 + $0x4a] sm:$0x3] }
  0x10   :  { %v1608_v58 = vsel %vm85_vm0, %v66_v56, 0.0  ;;  %v1611_v59 = vsel %vm85_vm0, %v58_v57, 0.0  ;;  %v70_v60 = vld [vmem:[%s2179_s0 + $0x62] sm:$0x3]  ;;  %v69_v61 = vld [vmem:[%s2179_s0 + $0x60] sm:$0x3] }
  0x11   :  { %v1620_v62 = vsel %vm85_vm0, %v70_v60, 0.0  ;;  %v1623_v63 = vsel %vm85_vm0, %v69_v61, 0.0  ;;  %v78_v0 = vld [vmem:[%s2179_s0 + $0x72] sm:$0x3]  ;;  %v77_v1 = vld [vmem:[%s2179_s0 + $0x70] sm:$0x3] }
  0x12   :  { %v1632_v2 = vsel %vm85_vm0, %v78_v0, 0.0  ;;  %v1635_v3 = vsel %vm85_vm0, %v77_v1, 0.0  ;;  %v67_v4 = vld [vmem:[%s2179_s0 + $0x5c] sm:$0x3]  ;;  %v59_v5 = vld [vmem:[%s2179_s0 + $0x4c] sm:$0x3] }
  0x13   :  { %123 = vadd.xlane.f32.xlu1 %v122_v26  ;;  %99 = vadd.xlane.f32.xlu0 %v98_v27  ;;  %v1644_v6 = vsel %vm85_vm0, %v67_v4, 0.0  ;;  %v1647_v7 = vsel %vm85_vm0, %v59_v5, 0.0  ;;  %v79_v8 = vld [vmem:[%s2179_s0 + $0x74] sm:$0x3]  ;;  %v71_v9 = vld [vmem:[%s2179_s0 + $0x64] sm:$0x3] }
  0x14   :  { %v1656_v10 = vsel %vm85_vm0, %v79_v8, 0.0  ;;  %v1659_v11 = vsel %vm85_vm0, %v71_v9, 0.0  ;;  %v68_v12 = vld [vmem:[%s2179_s0 + $0x5e] sm:$0x3]  ;;  %v60_v13 = vld [vmem:[%s2179_s0 + $0x4e] sm:$0x3] }
  0x15   :  { %v1668_v14 = vsel %vm85_vm0, %v68_v12, 0.0  ;;  %v1671_v15 = vsel %vm85_vm0, %v60_v13, 0.0  ;;  %v80_v16 = vld [vmem:[%s2179_s0 + $0x76] sm:$0x3]  ;;  %v72_v17 = vld [vmem:[%s2179_s0 + $0x66] sm:$0x3] }
  0x16   :  { %v1680_v18 = vsel %vm85_vm0, %v80_v16, 0.0  ;;  %v1683_v19 = vsel %vm85_vm0, %v72_v17, 0.0  ;;  %v81_v20 = vld [vmem:[%s2179_s0 + $0x78] sm:$0x3]  ;;  %v73_v21 = vld [vmem:[%s2179_s0 + $0x68] sm:$0x3] }
  0x17   :  { %126 = vadd.xlane.f32.xlu1 %v125_v28  ;;  %102 = vadd.xlane.f32.xlu0 %v101_v29  ;;  %v1692_v22 = vsel %vm85_vm0, %v81_v20, 0.0  ;;  %v1695_v23 = vsel %vm85_vm0, %v73_v21, 0.0  ;;  %v82_v24 = vld [vmem:[%s2179_s0 + $0x7a] sm:$0x3]  ;;  %v74_v25 = vld [vmem:[%s2179_s0 + $0x6a] sm:$0x3] }
  0x18   :  { %v1706_v26 = vsel %vm85_vm0, %v82_v24, 0.0  ;;  %v1709_v27 = vsel %vm85_vm0, %v74_v25, 0.0  ;;  %v83_v28 = vld [vmem:[%s2179_s0 + $0x7c] sm:$0x3]  ;;  %v75_v29 = vld [vmem:[%s2179_s0 + $0x6c] sm:$0x3] }
  0x19   :  { %v47_v36 = vld [vmem:[%s2179_s0 + $0x34] sm:$0x3]  ;;  %v39_v37 = vld [vmem:[%s2179_s0 + $0x24] sm:$0x3]  ;;  %v36_v48 = vld [vmem:[%s2179_s0 + $0x1e] sm:$0x3] }
  0x1a   :  { %v164_v44 = vsel %vm85_vm0, %v47_v36, 0.0  ;;  %v140_v45 = vsel %vm85_vm0, %v39_v37, 0.0  ;;  %v28_v49 = vld [vmem:[%s2179_s0 + $0xe] sm:$0x3]  ;;  %v131_v52 = vsel %vm85_vm0, %v36_v48, 0.0  ;;  %vm876_vm6 = vcmask 1045509  }
  0x1b   :  { %138 = vadd.xlane.f32.xlu1 %v137_v30  ;;  %135 = vadd.xlane.f32.xlu0 %v134_v31  ;;  %v1718_v30 = vsel %vm85_vm0, %v83_v28, 0.0  ;;  %v1721_v31 = vsel %vm85_vm0, %v75_v29, 0.0  ;;  %v40_v53 = vld [vmem:[%s2179_s0 + $0x26] sm:$0x3]  ;;  %v49_v60 = vld [vmem:[%s2179_s0 + $0x38] sm:$0x3] }
  0x1c   :  { %v143_v57 = vsel %vm85_vm0, %v40_v53, 0.0  ;;  %v41_v61 = vld [vmem:[%s2179_s0 + $0x28] sm:$0x3]  ;;  %v170_v0 = vsel %vm85_vm0, %v49_v60, 0.0  ;;  %v50_v4 = vld [vmem:[%s2179_s0 + $0x3a] sm:$0x3] }
  0x1d   :  { %v146_v1 = vsel %vm85_vm0, %v41_v61, 0.0  ;;  %v42_v5 = vld [vmem:[%s2179_s0 + $0x2a] sm:$0x3]  ;;  %v173_v8 = vsel %vm85_vm0, %v50_v4, 0.0  ;;  %v54_v12 = vld [vmem:[%s2179_s0 + $0x42] sm:$0x3] }
  0x1e   :  { %v149_v9 = vsel %vm85_vm0, %v42_v5, 0.0  ;;  %v53_v13 = vld [vmem:[%s2179_s0 + $0x40] sm:$0x3]  ;;  %v185_v16 = vsel %vm85_vm0, %v54_v12, 0.0  ;;  %v62_v20 = vld [vmem:[%s2179_s0 + $0x52] sm:$0x3] }
  0x1f   :  { %162 = vadd.xlane.f32.xlu1 %v1530_v32  ;;  %159 = vadd.xlane.f32.xlu0 %v1533_v33  ;;  %v84_v32 = vld [vmem:[%s2179_s0 + $0x7e] sm:$0x3]  ;;  %v76_v33 = vld [vmem:[%s2179_s0 + $0x6e] sm:$0x3]  ;;  %v182_v17 = vsel %vm85_vm0, %v53_v13, 0.0  ;;  %v209_v24 = vsel %vm85_vm0, %v62_v20, 0.0 }
  0x20   :  { %v1736_v40 = vsel %vm85_vm0, %v84_v32, 0.0  ;;  %v1739_v41 = vsel %vm85_vm0, %v76_v33, 0.0  ;;  %v61_v21 = vld [vmem:[%s2179_s0 + $0x50] sm:$0x3]  ;;  %v1050_v12 = vld [vmem:[%s2182_s4 + $0x28] sm:$0xff]  ;;  %vm878_vm7 = vcmask 1046534  }
  0x21   :  { %v206_v25 = vsel %vm85_vm0, %v61_v21, 0.0  ;;  %v419_v21 = vld [vmem:[%s2181_s2 + $0x28] sm:$0xff]  ;;  %vm880_vm8 = vcmask 1047559   ;;  %vm1302_vm9 = vcmask 15360  }
  0x23   :  { %129 = vadd.xlane.f32.xlu1 %v1536_v34  ;;  %105 = vadd.xlane.f32.xlu0 %v1539_v35  ;;  %v107_v34 = vsel %vm85_vm0, %v28_v49, 0.0  ;;  %v48_v35 = vld [vmem:[%s2179_s0 + $0x36] sm:$0x3] }
  0x24   :  { %v167_v56 = vsel %vm85_vm0, %v48_v35, 0.0 }
  0x27   :  { %165 = vadd.xlane.f32.xlu1 %v164_v44  ;;  %141 = vadd.xlane.f32.xlu0 %v140_v45  ;;  %v1048_v44 = vld [vmem:[%s2182_s4 + $0x18] sm:$0xff] }
  0x2b   :  { %132 = vadd.xlane.f32.xlu1 %v131_v52  ;;  %108 = vadd.xlane.f32.xlu0 %v107_v34  ;;  %v418_v34 = vld [vmem:[%s2181_s2 + $0x20] sm:$0xff] }
  0x2f   :  { %168 = vadd.xlane.f32.xlu1 %v167_v56  ;;  %144 = vadd.xlane.f32.xlu0 %v143_v57 }
  0x33   :  { %171 = vadd.xlane.f32.xlu1 %v170_v0  ;;  %147 = vadd.xlane.f32.xlu0 %v146_v1 }
  0x37   :  { %174 = vadd.xlane.f32.xlu1 %v173_v8  ;;  %150 = vadd.xlane.f32.xlu0 %v149_v9 }
  0x3b   :  { %186 = vadd.xlane.f32.xlu1 %v185_v16  ;;  %183 = vadd.xlane.f32.xlu0 %v182_v17 }
  0x3f   :  { %210 = vadd.xlane.f32.xlu1 %v209_v24  ;;  %207 = vadd.xlane.f32.xlu0 %v206_v25 }
  0x43   :  { %177 = vadd.xlane.f32.xlu1 %v1548_v38  ;;  %153 = vadd.xlane.f32.xlu0 %v1551_v39 }
  0x47   :  { %213 = vadd.xlane.f32.xlu1 %v1560_v42  ;;  %189 = vadd.xlane.f32.xlu0 %v1563_v43 }
  0x4b   :  { %180 = vadd.xlane.f32.xlu1 %v1572_v46  ;;  %156 = vadd.xlane.f32.xlu0 %v1575_v47 }
  0x4f   :  { %216 = vadd.xlane.f32.xlu1 %v1584_v50  ;;  %192 = vadd.xlane.f32.xlu0 %v1587_v51  ;;  %v1418_v50 = vld [vmem:[%s2180_s1] sm:$0xff]  }
  0x50   :  { %1375 = vmatprep.mubr.msk.bf16.mxu0 %vm939_vm1, %v1418_v50 }
  0x53   :  { %219 = vadd.xlane.f32.xlu1 %v1596_v54  ;;  %195 = vadd.xlane.f32.xlu0 %v1599_v55 }
  0x57   :  { %222 = vadd.xlane.f32.xlu1 %v1608_v58  ;;  %198 = vadd.xlane.f32.xlu0 %v1611_v59 }
  0x5b   :  { %234 = vadd.xlane.f32.xlu1 %v1620_v62  ;;  %231 = vadd.xlane.f32.xlu0 %v1623_v63  ;;  %v610_v63 = vlaneseq }
  0x5f   :  { %258 = vadd.xlane.f32.xlu1 %v1632_v2  ;;  %255 = vadd.xlane.f32.xlu0 %v1635_v3  ;;  %v1430_v2 = vmov 0   ;;  %v415_v3 = vld [vmem:[%s2181_s2 + $0x8] sm:$0xff] }
  0x60   :  { %1417 = vset.pattern.permute.xlu1 %v1430_v2  ;;  %1416 = vset.pattern.permute.xlu0 %v1430_v2 }
  0x63   :  { %225 = vadd.xlane.f32.xlu1 %v1644_v6  ;;  %201 = vadd.xlane.f32.xlu0 %v1647_v7  ;;  %v416_v6 = vld [vmem:[%s2181_s2 + $0x10] sm:$0xff] }
  0x67   :  { %261 = vadd.xlane.f32.xlu1 %v1656_v10  ;;  %237 = vadd.xlane.f32.xlu0 %v1659_v11  ;;  %v414_v11 = vld [vmem:[%s2181_s2] sm:$0xff] }
  0x6b   :  { %228 = vadd.xlane.f32.xlu1 %v1668_v14  ;;  %204 = vadd.xlane.f32.xlu0 %v1671_v15  ;;  %v611_v14 = vand.u32 127, %v610_v63  ;;  %v613_v15 = vshrl.u32 %v610_v63, 7 }
  0x6d   :  { %v1852_v32 = vsub.s32 %v611_v14, %v613_v15 }
  0x6f   :  { %264 = vadd.xlane.f32.xlu1 %v1680_v18  ;;  %240 = vadd.xlane.f32.xlu0 %v1683_v19 }
  0x73   :  { %267 = vadd.xlane.f32.xlu1 %v1692_v22  ;;  %243 = vadd.xlane.f32.xlu0 %v1695_v23  ;;  %v1046_v22 = vld [vmem:[%s2182_s4 + $0x8] sm:$0xff] }
  0x77   :  { %270 = vadd.xlane.f32.xlu1 %v1706_v26  ;;  %246 = vadd.xlane.f32.xlu0 %v1709_v27  ;;  %v417_v27 = vld [vmem:[%s2181_s2 + $0x18] sm:$0xff] }
  0x7b   :  { %273 = vadd.xlane.f32.xlu1 %v1718_v30  ;;  %249 = vadd.xlane.f32.xlu0 %v1721_v31 }
  0x7f   :  { %276 = vadd.xlane.f32.xlu1 %v1736_v40  ;;  %252 = vadd.xlane.f32.xlu0 %v1739_v41 }
  0x90   :  { %v112_v38 = vpop.xlane.xlu1 %111  ;;  %v88_v39 = vpop.xlane.xlu0 %87  ;;  %429 = vperm.xlu1 %1417, %v415_v3   ;;  %v420_v3 = vld [vmem:[%s2181_s2 + $0x30] sm:$0xff] }
  0x91   :  { %v286_v23 = vmul.f32 0.0625, %v112_v38  ;;  %v278_v26 = vmul.f32 0.0625, %v88_v39 }
  0x93   :  { %v358_v45 = vpack.c.bf16 %v286_v23, %v286_v23  ;;  %v350_v48 = vpack.c.bf16 %v278_v26, %v278_v26 }
  0x94   :  { %v115_v42 = vpop.xlane.xlu1 %114  ;;  %v91_v43 = vpop.xlane.xlu0 %90  ;;  %434 = vperm.xlu1 %1417, %v416_v6  }
  0x95   :  { %424 = vperm.xlu0 %1416, %v414_v11   ;;  %v287_v18 = vmul.f32 0.0625, %v115_v42  ;;  %v279_v19 = vmul.f32 0.0625, %v91_v43  ;;  %v554_v13 = vunpack.c.l.b16 %v358_v45  ;;  %v546_v16 = vunpack.c.l.b16 %v350_v48  ;;  %v421_v48 = vld [vmem:[%s2181_s2 + $0x38] sm:$0xff] }
  0x97   :  { %v359_v36 = vpack.c.bf16 %v287_v18, %v287_v18  ;;  %v351_v37 = vpack.c.bf16 %v279_v19, %v279_v19 }
  0x98   :  { %v118_v46 = vpop.xlane.xlu1 %117  ;;  %v94_v47 = vpop.xlane.xlu0 %93  ;;  %439 = vperm.xlu1 %1417, %v417_v27  }
  0x99   :  { %v288_v28 = vmul.f32 0.0625, %v118_v46  ;;  %v280_v29 = vmul.f32 0.0625, %v94_v47  ;;  %1068 = vperm.xlu0 %1416, %v1046_v22   ;;  %v555_v4 = vunpack.c.l.b16 %v359_v36  ;;  %v547_v5 = vunpack.c.l.b16 %v351_v37  ;;  %v1054_v37 = vld [vmem:[%s2182_s4 + $0x48] sm:$0xff] }
  0x9b   :  { %v360_v35 = vpack.c.bf16 %v288_v28, %v288_v28  ;;  %v352_v53 = vpack.c.bf16 %v280_v29, %v280_v29  ;;  %v651_v50 = vrot.slane %v555_v4, %v1852_v32 }
  0x9c   :  { %v121_v51 = vpop.xlane.xlu1 %120  ;;  %v97_v54 = vpop.xlane.xlu0 %96  ;;  %444 = vperm.xlu1 %1417, %v418_v34  }
  0x9d   :  { %v281_v33 = vmul.f32 0.0625, %v97_v54  ;;  %v289_v40 = vmul.f32 0.0625, %v121_v51  ;;  %1078 = vperm.xlu0 %1416, %v1048_v44   ;;  %v556_v24 = vunpack.c.l.b16 %v360_v35  ;;  %v548_v25 = vunpack.c.l.b16 %v352_v53 }
  0x9e   :  { %v619_v51 = vrot.slane %v547_v5, %v1852_v32  ;;  %v1056_v5 = vld [vmem:[%s2182_s4 + $0x58] sm:$0xff] }
  0x9f   :  { %v353_v61 = vpack.c.bf16 %v281_v33, %v281_v33  ;;  %v361_v8 = vpack.c.bf16 %v289_v40, %v289_v40  ;;  %v655_v6 = vrot.slane %v556_v24, %v1852_v32  ;;  %v623_v11 = vrot.slane %v548_v25, %v1852_v32 }
  0xa0   :  { %v124_v55 = vpop.xlane.xlu1 %123  ;;  %v100_v58 = vpop.xlane.xlu0 %99  ;;  %449 = vperm.xlu1 %1417, %v419_v21  }
  0xa1   :  { %v282_v41 = vmul.f32 0.0625, %v100_v58  ;;  %v290_v49 = vmul.f32 0.0625, %v124_v55  ;;  %v549_v46 = vunpack.c.l.b16 %v353_v61  ;;  %1088 = vperm.xlu0 %1416, %v1050_v12   ;;  %v557_v54 = vunpack.c.l.b16 %v361_v8  ;;  %v1052_v58 = vld [vmem:[%s2182_s4 + $0x38] sm:$0xff] }
  0xa3   :  { %v354_v9 = vpack.c.bf16 %v282_v41, %v282_v41  ;;  %v362_v17 = vpack.c.bf16 %v290_v49, %v290_v49  ;;  %v627_v22 = vrot.slane %v549_v46, %v1852_v32  ;;  %v659_v33 = vrot.slane %v557_v54, %v1852_v32  ;;  %v1058_v46 = vld [vmem:[%s2182_s4 + $0x68] sm:$0xff] }
  0xa4   :  { %v127_v59 = vpop.xlane.xlu1 %126  ;;  %v103_v62 = vpop.xlane.xlu0 %102  ;;  %454 = vperm.xlu1 %1417, %v420_v3  }
  0xa5   :  { %v283_v52 = vmul.f32 0.0625, %v103_v62  ;;  %v291_v56 = vmul.f32 0.0625, %v127_v59  ;;  %v550_v55 = vunpack.c.l.b16 %v354_v9  ;;  %v647_v59 = vrot.slane %v554_v13, %v1852_v32  ;;  %1098 = vperm.xlu0 %1416, %v1052_v58   ;;  %v1049_v58 = vld [vmem:[%s2182_s4 + $0x20] sm:$0xff] }
  0xa6   :  { %v615_v62 = vrot.slane %v546_v16, %v1852_v32  ;;  %v558_v63 = vunpack.c.l.b16 %v362_v17  ;;  %v1045_v16 = vld [vmem:[%s2182_s4] sm:$0xff] }
  0xa7   :  { %v355_v20 = vpack.c.bf16 %v283_v52, %v283_v52  ;;  %v363_v38 = vpack.c.bf16 %v291_v56, %v291_v56  ;;  %v882_v28 = vsel %vm868_vm2, %v651_v50, %v647_v59  ;;  %v631_v36 = vrot.slane %v550_v55, %v1852_v32  ;;  %v1047_v50 = vld [vmem:[%s2182_s4 + $0x10] sm:$0xff]  ;;  %v1060_v55 = vld [vmem:[%s2182_s4 + $0x78] sm:$0xff] }
  0xa8   :  { %v1835_v7 = vpop.xlane.xlu1 %138  ;;  %v1837_v10 = vpop.xlane.xlu0 %135  ;;  %v869_v29 = vsel %vm868_vm2, %v619_v51, %v615_v62  ;;  %v663_v40 = vrot.slane %v558_v63, %v1852_v32  ;;  %v883_v49 = vsel %vm870_vm3, %v655_v6, %v882_v28  ;;  %459 = vperm.xlu1 %1417, %v421_v48  }
  0xa9   :  { %v551_v2 = vunpack.c.l.b16 %v355_v20  ;;  %v559_v14 = vunpack.c.l.b16 %v363_v38  ;;  %v871_v52 = vsel %vm870_vm3, %v623_v11, %v869_v29  ;;  %1108 = vperm.xlu0 %1416, %v1054_v37   ;;  %v295_v59 = vmul.f32 0.0625, %v1835_v7  ;;  %v1051_v11 = vld [vmem:[%s2182_s4 + $0x30] sm:$0xff]  ;;  %v1053_v29 = vld [vmem:[%s2182_s4 + $0x40] sm:$0xff] }
  0xab   :  { %v635_v41 = vrot.slane %v551_v2, %v1852_v32  ;;  %v667_v34 = vrot.slane %v559_v14, %v1852_v32  ;;  %v294_v2 = vmul.f32 0.0625, %v1837_v10  ;;  %v367_v14 = vpack.c.bf16 %v295_v59, %v295_v59 }
  0xac   :  { %v1848_v30 = vpop.xlane.xlu1 %162  ;;  %v1850_v31 = vpop.xlane.xlu0 %159  ;;  %1063 = vperm.xlu1 %1417, %v1045_v16  }
  0xad   :  { %1118 = vperm.xlu0 %1416, %v1056_v5   ;;  %v303_v3 = vmul.f32 0.0625, %v1848_v30  ;;  %v302_v6 = vmul.f32 0.0625, %v1850_v31  ;;  %v366_v10 = vpack.c.bf16 %v294_v2, %v294_v2 }
  0xaf   :  { %v374_v30 = vpack.c.bf16 %v302_v6, %v302_v6 }
  0xb0   :  { %v130_v57 = vpop.xlane.xlu1 %129  ;;  %v106_v60 = vpop.xlane.xlu0 %105  ;;  %1073 = vperm.xlu1 %1417, %v1047_v50  }
  0xb1   :  { %v292_v0 = vmul.f32 0.0625, %v130_v57  ;;  %v284_v1 = vmul.f32 0.0625, %v106_v60  ;;  %v873_v57 = vsel %vm872_vm4, %v627_v22, %v871_v52  ;;  %1128 = vperm.xlu0 %1416, %v1058_v46   ;;  %v570_v52 = vunpack.c.l.b16 %v374_v30 }
  0xb2   :  { %v875_v4 = vsel %vm874_vm5, %v631_v36, %v873_v57  ;;  %v1055_v57 = vld [vmem:[%s2182_s4 + $0x50] sm:$0xff] }
  0xb3   :  { %v356_v39 = vpack.c.bf16 %v284_v1, %v284_v1  ;;  %v364_v47 = vpack.c.bf16 %v292_v0, %v292_v0  ;;  %v884_v1 = vsel %vm872_vm4, %v659_v33, %v883_v49  ;;  %v877_v13 = vsel %vm876_vm6, %v635_v41, %v875_v4 }
  0xb4   :  { %v1866_v42 = vpop.xlane.xlu1 %165  ;;  %v1868_v43 = vpop.xlane.xlu0 %141  ;;  %v885_v8 = vsel %vm874_vm5, %v663_v40, %v884_v1  ;;  %1083 = vperm.xlu1 %1417, %v1049_v58   ;;  %v562_v41 = vunpack.c.l.b16 %v366_v10 }
  0xb5   :  { %v552_v15 = vunpack.c.l.b16 %v356_v39  ;;  %v560_v23 = vunpack.c.l.b16 %v364_v47  ;;  %v886_v24 = vsel %vm876_vm6, %v667_v34, %v885_v8  ;;  %1138 = vperm.xlu0 %1416, %v1060_v55   ;;  %v296_v7 = vmul.f32 0.0625, %v1868_v43 }
  0xb7   :  { %v639_v35 = vrot.slane %v552_v15, %v1852_v32  ;;  %v671_v60 = vrot.slane %v560_v23, %v1852_v32  ;;  %v304_v15 = vmul.f32 0.0625, %v1866_v42  ;;  %v375_v23 = vpack.c.bf16 %v303_v3, %v303_v3 }
  0xb8   :  { %v133_v18 = vpop.xlane.xlu1 %132  ;;  %v109_v19 = vpop.xlane.xlu0 %108  ;;  %1093 = vperm.xlu1 %1417, %v1051_v11   ;;  %v563_v42 = vunpack.c.l.b16 %v367_v14  ;;  %v368_v43 = vpack.c.bf16 %v296_v7, %v296_v7 }
  0xb9   :  { %v293_v26 = vmul.f32 0.0625, %v133_v18  ;;  %v285_v27 = vmul.f32 0.0625, %v109_v19  ;;  %v879_v21 = vsel %vm878_vm7, %v639_v35, %v877_v13  ;;  %v887_v38 = vsel %vm878_vm7, %v671_v60, %v886_v24 }
  0xba   :  { %v376_v33 = vpack.c.bf16 %v304_v15, %v304_v15  ;;  %v571_v49 = vunpack.c.l.b16 %v375_v23  ;;  %v683_v8 = vrot.slane %v563_v42, %v1852_v32  ;;  %v1059_v23 = vld [vmem:[%s2182_s4 + $0x70] sm:$0xff] }
  0xbb   :  { %v365_v44 = vpack.c.bf16 %v293_v26, %v293_v26  ;;  %v357_v45 = vpack.c.bf16 %v285_v27, %v285_v27 }
  0xbc   :  { %v169_v53 = vpop.xlane.xlu1 %168  ;;  %v145_v56 = vpop.xlane.xlu0 %144  ;;  %1103 = vperm.xlu1 %1417, %v1053_v29   ;;  %v572_v60 = vunpack.c.l.b16 %v376_v33  ;;  %v715_v16 = vrot.slane %v571_v49, %v1852_v32 }
  0xbd   :  { %v561_v61 = vunpack.c.l.b16 %v365_v44  ;;  %v553_v0 = vunpack.c.l.b16 %v357_v45  ;;  %v297_v22 = vmul.f32 0.0625, %v145_v56  ;;  %v305_v26 = vmul.f32 0.0625, %v169_v53 }
  0xbf   :  { %v675_v9 = vrot.slane %v561_v61, %v1852_v32  ;;  %v643_v12 = vrot.slane %v553_v0, %v1852_v32  ;;  %v369_v44 = vpack.c.bf16 %v297_v22, %v297_v22  ;;  %v377_v34 = vpack.c.bf16 %v305_v26, %v305_v26 }
  0xc0   :  { %v172_v17 = vpop.xlane.xlu1 %171  ;;  %v148_v20 = vpop.xlane.xlu0 %147  ;;  %v564_v61 = vunpack.c.l.b16 %v368_v43  ;;  %1113 = vperm.xlu1 %1417, %v1055_v57  }
  0xc1   :  { %v881_v25 = vsel %vm880_vm8, %v643_v12, %v879_v21  ;;  %v888_v39 = vsel %vm880_vm8, %v675_v9, %v887_v38  ;;  %v298_v31 = vmul.f32 0.0625, %v148_v20  ;;  %v306_v27 = vmul.f32 0.0625, %v172_v17  ;;  %v1057_v38 = vld [vmem:[%s2182_s4 + $0x60] sm:$0xff] }
  0xc2   :  { %v931_v47 = vpack.c.b16 %v888_v39, %v881_v25  ;;  %v679_v9 = vrot.slane %v562_v41, %v1852_v32  ;;  %v565_v12 = vunpack.c.l.b16 %v369_v44  ;;  %v711_v17 = vrot.slane %v570_v52, %v1852_v32 }
  0xc3   :  { %v370_v35 = vpack.c.bf16 %v298_v31, %v298_v31  ;;  %v378_v53 = vpack.c.bf16 %v306_v27, %v306_v27  ;;  %v573_v20 = vunpack.c.l.b16 %v377_v34  ;;  %v719_v39 = vrot.slane %v572_v60, %v1852_v32 }
  0xc4   :  { %v175_v51 = vpop.xlane.xlu1 %174  ;;  %v151_v54 = vpop.xlane.xlu0 %150  ;;  %1367 = vmatprep.subr.bf16.mxu0 %v931_v47  ;;  %v687_v46 = vrot.slane %v564_v61, %v1852_v32  ;;  %v691_v55 = vrot.slane %v565_v12, %v1852_v32  ;;  %v889_v3 = vsel %vm868_vm2, %v683_v8, %v679_v9  ;;  %v896_v6 = vsel %vm868_vm2, %v715_v16, %v711_v17 }
  0xc5   :  { %1368 = vmatpush3.bf16.msra.mxu0 %v931_v47  ;;  %v299_v28 = vmul.f32 0.0625, %v151_v54  ;;  %v307_v36 = vmul.f32 0.0625, %v175_v51  ;;  %v566_v21 = vunpack.c.l.b16 %v370_v35  ;;  %v574_v24 = vunpack.c.l.b16 %v378_v53  ;;  %1123 = vperm.xlu1 %1417, %v1057_v38  }
  0xc6   :  { %v723_v11 = vrot.slane %v573_v20, %v1852_v32  ;;  %v897_v30 = vsel %vm870_vm3, %v719_v39, %v896_v6  ;;  %v890_v26 = vsel %vm870_vm3, %v687_v46, %v889_v3 }
  0xc7   :  { %v371_v56 = vpack.c.bf16 %v299_v28, %v299_v28  ;;  %v379_v0 = vpack.c.bf16 %v307_v36, %v307_v36  ;;  %v695_v14 = vrot.slane %v566_v21, %v1852_v32  ;;  %v727_v15 = vrot.slane %v574_v24, %v1852_v32 }
  0xc8   :  { %v1931_v62 = vpop.xlane.xlu1 %186  ;;  %v1933_v63 = vpop.xlane.xlu0 %183  ;;  %v891_v42 = vsel %vm872_vm4, %v691_v55, %v890_v26 }
  0xc9   :  { %v567_v25 = vunpack.c.l.b16 %v371_v56  ;;  %v575_v47 = vunpack.c.l.b16 %v379_v0  ;;  %1133 = vperm.xlu1 %1417, %v1059_v23   ;;  %v310_v8 = vmul.f32 0.0625, %v1933_v63 }
  0xcb   :  { %v699_v7 = vrot.slane %v567_v25, %v1852_v32  ;;  %v731_v31 = vrot.slane %v575_v47, %v1852_v32  ;;  %v382_v24 = vpack.c.bf16 %v310_v8, %v310_v8 }
  0xcc   :  { %v1943_v18 = vpop.xlane.xlu1 %210  ;;  %v1945_v19 = vpop.xlane.xlu0 %207 }
  0xcd   :  { %v319_v9 = vmul.f32 0.0625, %v1943_v18  ;;  %v318_v12 = vmul.f32 0.0625, %v1945_v19 }
  0xcf   :  { %v391_v38 = vpack.c.bf16 %v319_v9, %v319_v9 }
  0xd0   :  { %v178_v37 = vpop.xlane.xlu1 %177  ;;  %v154_v40 = vpop.xlane.xlu0 %153 }
  0xd1   :  { %v308_v45 = vmul.f32 0.0625, %v178_v37  ;;  %v300_v48 = vmul.f32 0.0625, %v154_v40  ;;  %v898_v37 = vsel %vm872_vm4, %v723_v11, %v897_v30  ;;  %v892_v40 = vsel %vm874_vm5, %v695_v14, %v891_v42 }
  0xd2   :  { %v899_v41 = vsel %vm874_vm5, %v727_v15, %v898_v37  ;;  %v893_v44 = vsel %vm876_vm6, %v699_v7, %v892_v40  ;;  %v587_v55 = vunpack.c.l.b16 %v391_v38 }
  0xd3   :  { %v372_v1 = vpack.c.bf16 %v300_v48, %v300_v48  ;;  %v380_v13 = vpack.c.bf16 %v308_v45, %v308_v45  ;;  %v900_v49 = vsel %vm876_vm6, %v731_v31, %v899_v41 }
  0xd4   :  { %v1953_v4 = vpop.xlane.xlu1 %213  ;;  %v1955_v5 = vpop.xlane.xlu0 %189  ;;  %v779_v31 = vrot.slane %v587_v55, %v1852_v32 }
  0xd5   :  { %v568_v50 = vunpack.c.l.b16 %v372_v1  ;;  %v576_v58 = vunpack.c.l.b16 %v380_v13  ;;  %v311_v1 = vmul.f32 0.0625, %v1931_v62  ;;  %v320_v13 = vmul.f32 0.0625, %v1953_v4 }
  0xd6   :  { %v312_v20 = vmul.f32 0.0625, %v1955_v5  ;;  %v390_v62 = vpack.c.bf16 %v318_v12, %v318_v12 }
  0xd7   :  { %v703_v27 = vrot.slane %v568_v50, %v1852_v32  ;;  %v735_v33 = vrot.slane %v576_v58, %v1852_v32  ;;  %v383_v21 = vpack.c.bf16 %v311_v1, %v311_v1  ;;  %v392_v39 = vpack.c.bf16 %v320_v13, %v320_v13 }
  0xd8   :  { %v181_v51 = vpop.xlane.xlu1 %180  ;;  %v157_v54 = vpop.xlane.xlu0 %156  ;;  %v384_v19 = vpack.c.bf16 %v312_v20, %v312_v20  ;;  %v578_v50 = vunpack.c.l.b16 %v382_v24  ;;  %v586_v58 = vunpack.c.l.b16 %v390_v62 }
  0xd9   :  { %v309_v59 = vmul.f32 0.0625, %v181_v51  ;;  %v301_v2 = vmul.f32 0.0625, %v157_v54  ;;  %v894_v35 = vsel %vm878_vm7, %v703_v27, %v893_v44  ;;  %v901_v56 = vsel %vm878_vm7, %v735_v33, %v900_v49 }
  0xda   :  { %v579_v4 = vunpack.c.l.b16 %v383_v21  ;;  %v580_v15 = vunpack.c.l.b16 %v384_v19  ;;  %v743_v23 = vrot.slane %v578_v50, %v1852_v32  ;;  %v775_v27 = vrot.slane %v586_v58, %v1852_v32 }
  0xdb   :  { %v381_v10 = vpack.c.bf16 %v309_v59, %v309_v59  ;;  %v373_v22 = vpack.c.bf16 %v301_v2, %v301_v2  ;;  %v588_v2 = vunpack.c.l.b16 %v392_v39 }
  0xdc   :  { %v217_v28 = vpop.xlane.xlu1 %216  ;;  %v193_v29 = vpop.xlane.xlu0 %192  ;;  %v751_v41 = vrot.slane %v580_v15, %v1852_v32 }
  0xdd   :  { %v577_v43 = vunpack.c.l.b16 %v381_v10  ;;  %v569_v36 = vunpack.c.l.b16 %v373_v22  ;;  %v321_v25 = vmul.f32 0.0625, %v217_v28  ;;  %v313_v63 = vmul.f32 0.0625, %v193_v29 }
  0xde   :  { %v747_v22 = vrot.slane %v579_v4, %v1852_v32  ;;  %v783_v42 = vrot.slane %v588_v2, %v1852_v32 }
  0xdf   :  { %v739_v45 = vrot.slane %v577_v43, %v1852_v32  ;;  %v707_v48 = vrot.slane %v569_v36, %v1852_v32  ;;  %v393_v51 = vpack.c.bf16 %v321_v25, %v321_v25  ;;  %v385_v3 = vpack.c.bf16 %v313_v63, %v313_v63 }
  0xe0   :  { %v220_v52 = vpop.xlane.xlu1 %219  ;;  %v196_v34 = vpop.xlane.xlu0 %195  ;;  %v903_v49 = vsel %vm868_vm2, %v747_v22, %v743_v23 }
  0xe1   :  { %v895_v53 = vsel %vm880_vm8, %v707_v48, %v894_v35  ;;  %v902_v57 = vsel %vm880_vm8, %v739_v45, %v901_v56  ;;  %v322_v46 = vmul.f32 0.0625, %v220_v52  ;;  %v314_v54 = vmul.f32 0.0625, %v196_v34 }
  0xe2   :  { %v932_v60 = vpack.c.b16 %v902_v57, %v895_v53  ;;  %v589_v30 = vunpack.c.l.b16 %v393_v51  ;;  %v581_v33 = vunpack.c.l.b16 %v385_v3  ;;  %v910_v52 = vsel %vm868_vm2, %v779_v31, %v775_v27 }
  0xe3   :  { %v394_v6 = vpack.c.bf16 %v322_v46, %v322_v46  ;;  %v386_v26 = vpack.c.bf16 %v314_v54, %v314_v54  ;;  %v911_v53 = vsel %vm870_vm3, %v783_v42, %v910_v52  ;;  %v904_v1 = vsel %vm870_vm3, %v751_v41, %v903_v49 }
  0xe4   :  { %v223_v61 = vpop.xlane.xlu1 %222  ;;  %v199_v0 = vpop.xlane.xlu0 %198  ;;  %1369 = vmatprep.subr.bf16.mxu0 %v932_v60  ;;  %v787_v45 = vrot.slane %v589_v30, %v1852_v32  ;;  %v755_v56 = vrot.slane %v581_v33, %v1852_v32 }
  0xe5   :  { %1370 = vmatpush3.bf16.msra.mxu0 %v932_v60  ;;  %v323_v5 = vmul.f32 0.0625, %v223_v61  ;;  %v315_v59 = vmul.f32 0.0625, %v199_v0  ;;  %v590_v43 = vunpack.c.l.b16 %v394_v6  ;;  %v582_v48 = vunpack.c.l.b16 %v386_v26 }
  0xe6   :  { %v912_v13 = vsel %vm872_vm4, %v787_v45, %v911_v53  ;;  %v905_v63 = vsel %vm872_vm4, %v755_v56, %v904_v1 }
  0xe7   :  { %v395_v28 = vpack.c.bf16 %v323_v5, %v323_v5  ;;  %v387_v29 = vpack.c.bf16 %v315_v59, %v315_v59  ;;  %v791_v57 = vrot.slane %v590_v43, %v1852_v32  ;;  %v759_v20 = vrot.slane %v582_v48, %v1852_v32 }
  0xe8   :  { %v1998_v16 = vpop.xlane.xlu1 %234  ;;  %v2000_v17 = vpop.xlane.xlu0 %231 }
  0xe9   :  { %v591_v34 = vunpack.c.l.b16 %v395_v28  ;;  %v583_v35 = vunpack.c.l.b16 %v387_v29  ;;  %v327_v21 = vmul.f32 0.0625, %v1998_v16  ;;  %v326_v24 = vmul.f32 0.0625, %v2000_v17 }
  0xea   :  { %v913_v46 = vsel %vm874_vm5, %v791_v57, %v912_v13  ;;  %v906_v55 = vsel %vm874_vm5, %v759_v20, %v905_v63 }
  0xeb   :  { %v795_v25 = vrot.slane %v591_v34, %v1852_v32  ;;  %v763_v38 = vrot.slane %v583_v35, %v1852_v32  ;;  %v399_v58 = vpack.c.bf16 %v327_v21, %v327_v21  ;;  %v398_v5 = vpack.c.bf16 %v326_v24, %v326_v24 }
  0xec   :  { %v2003_v47 = vpop.xlane.xlu1 %258  ;;  %v2005_v18 = vpop.xlane.xlu0 %255 }
  0xed   :  { %v335_v51 = vmul.f32 0.0625, %v2003_v47  ;;  %v334_v59 = vmul.f32 0.0625, %v2005_v18  ;;  %v914_v2 = vsel %vm876_vm6, %v795_v25, %v913_v46  ;;  %v907_v3 = vsel %vm876_vm6, %v763_v38, %v906_v55 }
  0xee   :  { %v595_v42 = vunpack.c.l.b16 %v399_v58  ;;  %v594_v33 = vunpack.c.l.b16 %v398_v5 }
  0xef   :  { %v407_v23 = vpack.c.bf16 %v335_v51, %v335_v51  ;;  %v406_v31 = vpack.c.bf16 %v334_v59, %v334_v59 }
  0xf0   :  { %v226_v11 = vpop.xlane.xlu1 %225  ;;  %v202_v14 = vpop.xlane.xlu0 %201  ;;  %v811_v56 = vrot.slane %v595_v42, %v1852_v32  ;;  %v807_v57 = vrot.slane %v594_v33, %v1852_v32 }
  0xf1   :  { %v324_v7 = vmul.f32 0.0625, %v226_v11  ;;  %v316_v10 = vmul.f32 0.0625, %v202_v14  ;;  %v603_v45 = vunpack.c.l.b16 %v407_v23  ;;  %v602_v52 = vunpack.c.l.b16 %v406_v31 }
  0xf3   :  { %v388_v36 = vpack.c.bf16 %v316_v10, %v316_v10  ;;  %v396_v44 = vpack.c.bf16 %v324_v7, %v324_v7  ;;  %v843_v13 = vrot.slane %v603_v45, %v1852_v32  ;;  %v839_v24 = vrot.slane %v602_v52, %v1852_v32  ;;  %v1422_v52 = vld [vmem:[%s2183_s3] sm:$0xff]  }
  0xf4   :  { %v262_v37 = vpop.xlane.xlu1 %261  ;;  %v238_v40 = vpop.xlane.xlu0 %237 }
  0xf5   :  { %v584_v60 = vunpack.c.l.b16 %v388_v36  ;;  %v592_v8 = vunpack.c.l.b16 %v396_v44  ;;  %v336_v14 = vmul.f32 0.0625, %v262_v37  ;;  %v328_v47 = vmul.f32 0.0625, %v238_v40 }
  0xf7   :  { %v767_v19 = vrot.slane %v584_v60, %v1852_v32  ;;  %v799_v16 = vrot.slane %v592_v8, %v1852_v32  ;;  %v408_v36 = vpack.c.bf16 %v336_v14, %v336_v14  ;;  %v400_v37 = vpack.c.bf16 %v328_v47, %v328_v47 }
  0xf8   :  { %v229_v61 = vpop.xlane.xlu1 %228  ;;  %v205_v0 = vpop.xlane.xlu0 %204 }
  0xf9   :  { %v325_v9 = vmul.f32 0.0625, %v229_v61  ;;  %v317_v12 = vmul.f32 0.0625, %v205_v0  ;;  %v908_v22 = vsel %vm878_vm7, %v767_v19, %v907_v3  ;;  %v915_v18 = vsel %vm878_vm7, %v799_v16, %v914_v2 }
  0xfa   :  { %v604_v61 = vunpack.c.l.b16 %v408_v36  ;;  %v596_v0 = vunpack.c.l.b16 %v400_v37  ;;  %v924_v2 = vsel %vm868_vm2, %v843_v13, %v839_v24 }
  0xfb   :  { %v397_v62 = vpack.c.bf16 %v325_v9, %v325_v9  ;;  %v389_v39 = vpack.c.bf16 %v317_v12, %v317_v12 }
  0xfc   :  { %v265_v4 = vpop.xlane.xlu1 %264  ;;  %v241_v50 = vpop.xlane.xlu0 %240 }
  0xfd   :  { %v593_v54 = vunpack.c.l.b16 %v397_v62  ;;  %v585_v17 = vunpack.c.l.b16 %v389_v39  ;;  %v337_v15 = vmul.f32 0.0625, %v265_v4  ;;  %v329_v30 = vmul.f32 0.0625, %v241_v50 }
  0xfe   :  { %v917_v39 = vsel %vm868_vm2, %v811_v56, %v807_v57  ;;  %v847_v4 = vrot.slane %v604_v61, %v1852_v32  ;;  %v815_v50 = vrot.slane %v596_v0, %v1852_v32 }
  0xff   :  { %v803_v6 = vrot.slane %v593_v54, %v1852_v32  ;;  %v771_v11 = vrot.slane %v585_v17, %v1852_v32  ;;  %v409_v40 = vpack.c.bf16 %v337_v15, %v337_v15  ;;  %v401_v48 = vpack.c.bf16 %v329_v30, %v329_v30 }
 0x100   :  { %v268_v7 = vpop.xlane.xlu1 %267  ;;  %v244_v10 = vpop.xlane.xlu0 %243 }
 0x101   :  { %v909_v26 = vsel %vm880_vm8, %v771_v11, %v908_v22  ;;  %v338_v27 = vmul.f32 0.0625, %v268_v7  ;;  %v330_v28 = vmul.f32 0.0625, %v244_v10  ;;  %v916_v29 = vsel %vm880_vm8, %v803_v6, %v915_v18 }
 0x102   :  { %v933_v43 = vpack.c.b16 %v916_v29, %v909_v26  ;;  %v605_v1 = vunpack.c.l.b16 %v409_v40  ;;  %v597_v20 = vunpack.c.l.b16 %v401_v48  ;;  %v925_v10 = vsel %vm870_vm3, %v847_v4, %v924_v2  ;;  %v1419_v48 = vld [vmem:[%s2180_s1 + $0x8] sm:$0xff]  }
 0x103   :  { %v410_v34 = vpack.c.bf16 %v338_v27, %v338_v27  ;;  %v402_v35 = vpack.c.bf16 %v330_v28, %v330_v28  ;;  %v918_v22 = vsel %vm870_vm3, %v815_v50, %v917_v39 }
 0x104   :  { %v271_v41 = vpop.xlane.xlu1 %270  ;;  %v247_v44 = vpop.xlane.xlu0 %246  ;;  %1371 = vmatprep.subr.bf16.mxu0 %v933_v43  ;;  %v851_v51 = vrot.slane %v605_v1, %v1852_v32  ;;  %v819_v55 = vrot.slane %v597_v20, %v1852_v32 }
 0x105   :  { %v339_v49 = vmul.f32 0.0625, %v271_v41  ;;  %v331_v53 = vmul.f32 0.0625, %v247_v44  ;;  %1372 = vmatpush3.bf16.msra.mxu0 %v933_v43  ;;  %v606_v25 = vunpack.c.l.b16 %v410_v34  ;;  %v598_v38 = vunpack.c.l.b16 %v402_v35  ;;  %v1423_v34 = vld [vmem:[%s2183_s3 + $0x10] sm:$0xff]  }
 0x106   :  { %v926_v26 = vsel %vm872_vm4, %v851_v51, %v925_v10  ;;  %v919_v18 = vsel %vm872_vm4, %v819_v55, %v918_v22  ;;  %1395 = vmatprep.mubr.msk.bf16.mxu1 %vm939_vm1, %v1423_v34  ;;  %v1428_v10 = vld [vmem:[%s2183_s3 + $0x30] sm:$0xff]   ;;  %v1429_v22 = vld [vmem:[%s2183_s3 + $0x38] sm:$0xff]  }
 0x107   :  { %v411_v60 = vpack.c.bf16 %v339_v49, %v339_v49  ;;  %v403_v8 = vpack.c.bf16 %v331_v53, %v331_v53  ;;  %v855_v3 = vrot.slane %v606_v25, %v1852_v32  ;;  %v823_v6 = vrot.slane %v598_v38, %v1852_v32  ;;  %v1420_v49 = vld [vmem:[%s2180_s1 + $0x10] sm:$0xff]  }
 0x108   :  { %v274_v9 = vpop.xlane.xlu1 %273  ;;  %v250_v12 = vpop.xlane.xlu0 %249 }
 0x109   :  { %v340_v21 = vmul.f32 0.0625, %v274_v9  ;;  %v332_v62 = vmul.f32 0.0625, %v250_v12  ;;  %v607_v63 = vunpack.c.l.b16 %v411_v60  ;;  %v599_v46 = vunpack.c.l.b16 %v403_v8 }
 0x10a   :  { %v927_v28 = vsel %vm874_vm5, %v855_v3, %v926_v26  ;;  %v920_v29 = vsel %vm874_vm5, %v823_v6, %v919_v18 }
 0x10b   :  { %v412_v19 = vpack.c.bf16 %v340_v21, %v340_v21  ;;  %v404_v16 = vpack.c.bf16 %v332_v62, %v332_v62  ;;  %v859_v14 = vrot.slane %v607_v63, %v1852_v32  ;;  %v827_v47 = vrot.slane %v599_v46, %v1852_v32 }
 0x10c   :  { %v277_v54 = vpop.xlane.xlu1 %276  ;;  %v253_v17 = vpop.xlane.xlu0 %252 }
 0x10d   :  { %v608_v58 = vunpack.c.l.b16 %v412_v19  ;;  %v341_v5 = vmul.f32 0.0625, %v277_v54  ;;  %v333_v59 = vmul.f32 0.0625, %v253_v17  ;;  %v600_v11 = vunpack.c.l.b16 %v404_v16 }
 0x10e   :  { %v928_v42 = vsel %vm876_vm6, %v859_v14, %v927_v28  ;;  %v921_v33 = vsel %vm876_vm6, %v827_v47, %v920_v29  ;;  %v1424_v14 = vld [vmem:[%s2183_s3 + $0x8] sm:$0xff]   ;;  %v1425_v47 = vld [vmem:[%s2183_s3 + $0x18] sm:$0xff]  }
 0x10f   :  { %v413_v15 = vpack.c.bf16 %v341_v5, %v341_v5  ;;  %v405_v7 = vpack.c.bf16 %v333_v59, %v333_v59  ;;  %v863_v23 = vrot.slane %v608_v58, %v1852_v32  ;;  %v831_v30 = vrot.slane %v600_v11, %v1852_v32 }
 0x110   :  { %v430_v35 = vpop.permute.xlu1 %429 }
 0x111   :  { %v609_v31 = vunpack.c.l.b16 %v413_v15  ;;  %v601_v27 = vunpack.c.l.b16 %v405_v7  ;;  %v922_v37 = vsel %vm878_vm7, %v831_v30, %v921_v33  ;;  %v929_v40 = vsel %vm878_vm7, %v863_v23, %v928_v42  ;;  %v1426_v15 = vld [vmem:[%s2183_s3 + $0x20] sm:$0xff]   ;;  %v1427_v7 = vld [vmem:[%s2183_s3 + $0x28] sm:$0xff]  }
 0x113   :  { %v867_v43 = vrot.slane %v609_v31, %v1852_v32  ;;  %v835_v36 = vrot.slane %v601_v27, %v1852_v32  ;;  %v1421_v32 = vld [vmem:[%s2180_s1 + $0x18] sm:$0xff]  }
 0x114   :  { %v435_v53 = vpop.permute.xlu1 %434  ;;  %v425_v0 = vpop.permute.xlu0 %424 }
 0x115   :  { %v923_v41 = vsel %vm880_vm8, %v835_v36, %v922_v37  ;;  %v930_v44 = vsel %vm880_vm8, %v867_v43, %v929_v40 }
 0x116   :  { %v934_v45 = vpack.c.b16 %v930_v44, %v923_v41 }
 0x118   :  { %1373 = vmatprep.subr.bf16.mxu0 %v934_v45  ;;  %v440_v56 = vpop.permute.xlu1 %439  ;;  %v1069_v30 = vpop.permute.xlu0 %1068 }
 0x119   :  { %1374 = vmatpush3.bf16.msra.mxu0 %v934_v45 }
 0x11c   :  { %1376 = vmatmul.mubr.msk.bf16.vlgmr.msra.gmra.mrb[0].mxu0 %vm939_vm1, %v1419_v48  ;;  %v445_v57 = vpop.permute.xlu1 %444  ;;  %v1079_v18 = vpop.permute.xlu0 %1078 }
 0x11d   :  { %1379 = vmatprep.mubr.msk.bf16.mxu0 %vm939_vm1, %v1420_v49 }
 0x120   :  { %v450_v60 = vpop.permute.xlu1 %449  ;;  %v1089_v27 = vpop.permute.xlu0 %1088 }
 0x124   :  { %1380 = vmatmul.mubr.msk.bf16.gmra.mrb[4].mxu0 %vm939_vm1, %v1421_v32  ;;  %v455_v21 = vpop.permute.xlu1 %454  ;;  %v1099_v29 = vpop.permute.xlu0 %1098 }
 0x125   :  { %1391 = vmatprep.mubr.msk.bf16.mxu0 %vm939_vm1, %v1422_v52 }
 0x128   :  { %v460_v51 = vpop.permute.xlu1 %459  ;;  %v1109_v33 = vpop.permute.xlu0 %1108 }
 0x12c   :  { %v1064_v23 = vpop.permute.xlu1 %1063 }
 0x130   :  { %v1074_v26 = vpop.permute.xlu1 %1073 }
 0x134   :  { %v1084_v31 = vpop.permute.xlu1 %1083 }
 0x138   :  { %v1094_v28 = vpop.permute.xlu1 %1093 }
 0x13c   :  { %v1104_v42 = vpop.permute.xlu1 %1103 }
 0x1ef   :  { %v1377_v61 = vpop.f32.mrb[0].mxu0 }
 0x1f0   :  { %v995_v1 = vadd.f32 %v1377_v61, %v435_v53  ;;  %v986_v8 = vpop.f32.mrb[1].mxu0  ;;  %v1119_v61 = vpop.permute.xlu0 %1118 }
 0x1f1   :  { %v987_v9 = vadd.f32 %v986_v8, %v425_v0  ;;  %v1378_v12 = vpop.f32.mrb[2].mxu0 }
 0x1f2   :  { %v998_v13 = vadd.f32 %v1378_v12, %v440_v56  ;;  %v989_v20 = vpop.f32.mrb[3].mxu0  ;;  %v1019_v25 = vmax.f32 %v995_v1, 0.0  ;;  %v1114_v56 = vpop.permute.xlu1 %1113 }
 0x1f3   :  { %v990_v24 = vadd.f32 %v989_v20, %v430_v35  ;;  %v1017_v62 = vmax.f32 %v987_v9, 0.0 }
 0x1f4   :  { %v1020_v38 = vmax.f32 %v998_v13, 0.0 }
 0x1f5   :  { %v1018_v39 = vmax.f32 %v990_v24, 0.0  ;;  %v1129_v24 = vpop.permute.xlu0 %1128 }
 0x1f6   :  { %v1042_v63 = vpack.c.bf16 %v1020_v38, %v1019_v25  ;;  %v1124_v9 = vpop.permute.xlu1 %1123 }
 0x1f7   :  { %v1041_v46 = vpack.c.bf16 %v1018_v39, %v1017_v62  ;;  %v1381_v19 = vpop.f32.mrb[4].mxu0 }
 0x1f8   :  { %v1011_v4 = vadd.f32 %v1381_v19, %v455_v21  ;;  %v1002_v50 = vpop.f32.mrb[5].mxu0 }
 0x1f9   :  { %v1003_v16 = vadd.f32 %v1002_v50, %v445_v57  ;;  %v1382_v54 = vpop.f32.mrb[6].mxu0  ;;  %1383 = vmatprep.subr.bf16.mxu0 %v1041_v46  ;;  %1407 = vmatprep.subr.bf16.mxu1 %v1041_v46 }
 0x1fa   :  { %v1014_v17 = vadd.f32 %v1382_v54, %v460_v51  ;;  %v1005_v55 = vpop.f32.mrb[7].mxu0  ;;  %1384 = vmatpush3.bf16.msra.mxu0 %v1041_v46  ;;  %1411 = vmatpush3.bf16.msra.mxu1 %v1041_v46  ;;  %v1023_v5 = vmax.f32 %v1011_v4, 0.0  ;;  %v1134_v38 = vpop.permute.xlu1 %1133 }
 0x1fb   :  { %v1006_v58 = vadd.f32 %v1005_v55, %v450_v60  ;;  %1385 = vmatprep.subr.bf16.mxu0 %v1042_v63  ;;  %1408 = vmatprep.subr.bf16.mxu1 %v1042_v63  ;;  %v1021_v2 = vmax.f32 %v1003_v16, 0.0  ;;  %v1139_v46 = vpop.permute.xlu0 %1138 }
 0x1fc   :  { %v1024_v59 = vmax.f32 %v1014_v17, 0.0 }
 0x1fd   :  { %v1022_v3 = vmax.f32 %v1006_v58, 0.0 }
 0x1fe   :  { %v1044_v6 = vpack.c.bf16 %v1024_v59, %v1023_v5  ;;  %1386 = vmatpush3.bf16.msra.mxu0 %v1042_v63  ;;  %1412 = vmatpush3.bf16.msra.mxu1 %v1042_v63 }
 0x1ff   :  { %v1043_v11 = vpack.c.bf16 %v1022_v3, %v1021_v2 }
 0x201   :  { %1387 = vmatprep.subr.bf16.mxu0 %v1043_v11  ;;  %1409 = vmatprep.subr.bf16.mxu1 %v1043_v11 }
 0x202   :  { %1388 = vmatpush3.bf16.msra.mxu0 %v1043_v11  ;;  %1413 = vmatpush3.bf16.msra.mxu1 %v1043_v11 }
 0x203   :  { %1389 = vmatprep.subr.bf16.mxu0 %v1044_v6  ;;  %1410 = vmatprep.subr.bf16.mxu1 %v1044_v6 }
 0x206   :  { %1390 = vmatpush3.bf16.msra.mxu0 %v1044_v6  ;;  %1414 = vmatpush3.bf16.msra.mxu1 %v1044_v6 }
 0x209   :  { %1392 = vmatmul.mubr.msk.bf16.vlgmr.msra.gmra.mrb[8].mxu0 %vm939_vm1, %v1424_v14  ;;  %1396 = vmatmul.mubr.msk.bf16.vlgmr.msra.gmra.mrb[0].mxu1 %vm939_vm1, %v1425_v47 }
 0x20a   :  { %1399 = vmatprep.mubr.msk.bf16.mxu1 %vm939_vm1, %v1426_v15 }
 0x211   :  { %1400 = vmatmul.mubr.msk.bf16.gmra.mrb[4].mxu1 %vm939_vm1, %v1427_v7 }
 0x212   :  { %1403 = vmatprep.mubr.msk.bf16.mxu1 %vm939_vm1, %v1428_v10 }
 0x219   :  { %1404 = vmatmul.mubr.msk.bf16.gmra.mrb[8].mxu1 %vm939_vm1, %v1429_v22 }
 0x2dc   :  { %v1393_v43 = vpop.f32.mrb[8].mxu0  ;;  %v1397_v36 = vpop.f32.mrb[0].mxu1 }
 0x2dd   :  { %v1248_v37 = vadd.f32 %v1393_v43, %v1074_v26  ;;  %v1264_v40 = vadd.f32 %v1397_v36, %v1094_v28  ;;  %v1239_v41 = vpop.f32.mrb[9].mxu0  ;;  %v1255_v44 = vpop.f32.mrb[1].mxu1 }
 0x2de   :  { %v1240_v45 = vadd.f32 %v1239_v41, %v1064_v23  ;;  %v1256_v48 = vadd.f32 %v1255_v44, %v1084_v31  ;;  %v1394_v49 = vpop.f32.mrb[10].mxu0  ;;  %v1398_v32 = vpop.f32.mrb[2].mxu1 }
 0x2df   :  { %1305 = vst.msk [vmem:[%s2184_s5 + $0x10] sm:$0xff] %vm1302_vm9, %v1248_v37  ;;  %1309 = vst.msk [vmem:[%s2184_s5 + $0x30] sm:$0xff] %vm1302_vm9, %v1264_v40  ;;  %v1251_v52 = vadd.f32 %v1394_v49, %v1079_v18  ;;  %v1267_v34 = vadd.f32 %v1398_v32, %v1099_v29  ;;  %v1242_v35 = vpop.f32.mrb[11].mxu0  ;;  %v1258_v53 = vpop.f32.mrb[3].mxu1 }
 0x2e0   :  { %1303 = vst.msk [vmem:[%s2184_s5] sm:$0xff] %vm1302_vm9, %v1240_v45  ;;  %1307 = vst.msk [vmem:[%s2184_s5 + $0x20] sm:$0xff] %vm1302_vm9, %v1256_v48  ;;  %v1243_v57 = vadd.f32 %v1242_v35, %v1069_v30  ;;  %v1259_v60 = vadd.f32 %v1258_v53, %v1089_v27 }
 0x2e1   :  { %1306 = vst.msk [vmem:[%s2184_s5 + $0x18] sm:$0xff] %vm1302_vm9, %v1251_v52  ;;  %1310 = vst.msk [vmem:[%s2184_s5 + $0x38] sm:$0xff] %vm1302_vm9, %v1267_v34 }
 0x2e2   :  { %1304 = vst.msk [vmem:[%s2184_s5 + $0x8] sm:$0xff] %vm1302_vm9, %v1243_v57  ;;  %1308 = vst.msk [vmem:[%s2184_s5 + $0x28] sm:$0xff] %vm1302_vm9, %v1259_v60 }
 0x2e4   :  { %v1401_v0 = vpop.f32.mrb[4].mxu1 }
 0x2e5   :  { %v1280_v1 = vadd.f32 %v1401_v0, %v1114_v56  ;;  %v1271_v8 = vpop.f32.mrb[5].mxu1 }
 0x2e6   :  { %v1272_v12 = vadd.f32 %v1271_v8, %v1104_v42  ;;  %v1402_v13 = vpop.f32.mrb[6].mxu1 }
 0x2e7   :  { %1313 = vst.msk [vmem:[%s2184_s5 + $0x50] sm:$0xff] %vm1302_vm9, %v1280_v1  ;;  %v1283_v20 = vadd.f32 %v1402_v13, %v1119_v61  ;;  %v1274_v21 = vpop.f32.mrb[7].mxu1 }
 0x2e8   :  { %1311 = vst.msk [vmem:[%s2184_s5 + $0x40] sm:$0xff] %vm1302_vm9, %v1272_v12  ;;  %v1275_v25 = vadd.f32 %v1274_v21, %v1109_v33 }
 0x2e9   :  { %1314 = vst.msk [vmem:[%s2184_s5 + $0x58] sm:$0xff] %vm1302_vm9, %v1283_v20 }
 0x2ea   :  { %1312 = vst.msk [vmem:[%s2184_s5 + $0x48] sm:$0xff] %vm1302_vm9, %v1275_v25 }
 0x2ec   :  { %v1405_v62 = vpop.f32.mrb[8].mxu1 }
 0x2ed   :  { %v1296_v39 = vadd.f32 %v1405_v62, %v1134_v38  ;;  %v1287_v63 = vpop.f32.mrb[9].mxu1 }
 0x2ee   :  { %v1288_v19 = vadd.f32 %v1287_v63, %v1124_v9  ;;  %v1406_v4 = vpop.f32.mrb[10].mxu1 }
 0x2ef   :  { %1317 = vst.msk [vmem:[%s2184_s5 + $0x70] sm:$0xff] %vm1302_vm9, %v1296_v39  ;;  %v1299_v50 = vadd.f32 %v1406_v4, %v1139_v46  ;;  %v1290_v51 = vpop.f32.mrb[11].mxu1 }
 0x2f0   :  { %1315 = vst.msk [vmem:[%s2184_s5 + $0x60] sm:$0xff] %vm1302_vm9, %v1288_v19  ;;  %v1291_v16 = vadd.f32 %v1290_v51, %v1129_v24 }
 0x2f1   :  { %1318 = vst.msk [vmem:[%s2184_s5 + $0x78] sm:$0xff] %vm1302_vm9, %v1299_v50 }
 0x2f2   :  { %1316 = vst.msk [vmem:[%s2184_s5 + $0x68] sm:$0xff] %vm1302_vm9, %v1291_v16 }

</bundles_post_ra>
